<compile_context>
chip_gen: v7x
topology: tpu7x:2x2x1
jax: 0.10.0
libtpu: 0.0.40
codegen_flags: <defaults>
</compile_context>

<pallas_src>
import functools

import jax
import jax.numpy as jnp
from jax import lax
from jax.experimental import pallas as pl
from jax.experimental.pallas import tpu as pltpu

# False -> tanh GELU (runs on the EUP, recommended); True -> exact erf GELU
# (bit-matches PyTorch nn.GELU at the cost of a long VPU polynomial).
EXACT_GELU = False


# --------------------------------------------------------------------------- #
# In-kernel helpers
# --------------------------------------------------------------------------- #
def _layernorm(x, w, b, eps=1e-5):
    # PyTorch nn.LayerNorm: biased variance, eps inside the sqrt.
    mu = jnp.mean(x, axis=-1, keepdims=True)
    var = jnp.mean((x - mu) ** 2, axis=-1, keepdims=True)
    return (x - mu) * lax.rsqrt(var + eps) * w + b


# --------------------------------------------------------------------------- #
# Kernel body: one (batch element, layer) step of the pipeline.
# --------------------------------------------------------------------------- #
def _nat_block_kernel(depth, num_heads, kernel_size,
                      x_ref,
                      ln1_w, ln1_b, qkv_wT, qkv_b, rpb_ref,
                      proj_wT, proj_b, ln2_w, ln2_b,
                      fc1_wT, fc1_b, fc2_wT, fc2_b,
                      conv_wT, dln_w, dln_b,
                      y_down_ref, y_pre_ref,
                      x_scratch):
    d = pl.program_id(1)
    L, C = x_scratch.shape
    H = num_heads
    hd = C // H
    k = kernel_size
    W = 2 * k - 1                                   # relative offsets in band

    # ---- initialise the carried activation for this batch element ----
    @pl.when(d == 0)
    def _():
        x_scratch[...] = x_ref[0]

    x = x_scratch[...]                                              # (L, C) f32

    # ---- norm1 + fused qkv projection (q-scale pre-folded into weights) ----
    hn = _layernorm(x, ln1_w[0], ln1_b[0])
    qkv = jnp.dot(hn.astype(jnp.bfloat16), qkv_wT[0],
                  preferred_element_type=jnp.float32) + qkv_b[0]    # (L, 3C)
    q = qkv[:, 0:C]
    kk = qkv[:, C:2 * C]
    v = qkv[:, 2 * C:3 * C]

    # ---- banded neighborhood geometry (dilation == 1) ----
    # query i attends to keys j in [start, start+k), start = clip(i-k//2, 0, L-k);
    # relative offset r = j - i in [-(k-1), k-1]; rpb index == r + (k-1).
    i_idx = lax.broadcasted_iota(jnp.int32, (L, W), 0)
    r_off = lax.broadcasted_iota(jnp.int32, (L, W), 1) - (k - 1)
    start = jnp.clip(i_idx - k // 2, 0, L - k)
    j_idx = i_idx + r_off
    in_band = (j_idx >= start) & (j_idx < start + k)                # (L, W)

    # K / V shifted by each relative offset (circular sublane roll on the XLU;
    # wrapped rows are always outside the window, i.e. masked by in_band).
    k_sh, v_sh = [], []
    for r_idx in range(W):
        shift = (k - 1 - r_idx) % L                                 # rolled[i] = orig[i + r]
        k_sh.append(kk if shift == 0 else pltpu.roll(kk, shift=shift, axis=0))
        v_sh.append(v if shift == 0 else pltpu.roll(v, shift=shift, axis=0))

    # Scores (H, L, W): per-offset elementwise multiply + reduce over head_dim
    # on the VPU -- no dense (L, L) tensor, no K=hd MXU matmuls, no bias blowup.
    scores = []
    for h in range(H):
        q_h = q[:, h * hd:(h + 1) * hd]
        cols = [jnp.sum(q_h * k_sh[r][:, h * hd:(h + 1) * hd],
                        axis=-1, keepdims=True) for r in range(W)]
        scores.append(jnp.concatenate(cols, axis=-1))               # (L, W)
    s = jnp.stack(scores, axis=0)                                   # (H, L, W)
    s = s + rpb_ref[0][:, None, :]                                  # rpb index == band idx
    s = jnp.where(in_band[None, :, :], s, -1e30)

    m = jnp.max(s, axis=-1, keepdims=True)
    e = jnp.exp(s - m)
    p = e * pl.reciprocal(jnp.sum(e, axis=-1, keepdims=True), approx=True)

    # PV: o[h, i, :] = sum_r p[h, i, r] * V[h, i + r, :]   (VPU multiply-add)
    outs = []
    for h in range(H):
        o_h = jnp.zeros((L, hd), jnp.float32)
        for r in range(W):
            o_h = o_h + p[h, :, r:r + 1] * v_sh[r][:, h * hd:(h + 1) * hd]
        outs.append(o_h)
    attn = jnp.concatenate(outs, axis=-1)                           # (L, C) head-major

    attn = jnp.dot(attn.astype(jnp.bfloat16), proj_wT[0],
                   preferred_element_type=jnp.float32) + proj_b[0]

    # ---- residual + MLP ----
    x = x + attn
    h2 = _layernorm(x, ln2_w[0], ln2_b[0])
    h2 = jnp.dot(h2.astype(jnp.bfloat16), fc1_wT[0],
                 preferred_element_type=jnp.float32) + fc1_b[0]
    h2 = jax.nn.gelu(h2, approximate=not EXACT_GELU)
    h2 = jnp.dot(h2.astype(jnp.bfloat16), fc2_wT[0],
                 preferred_element_type=jnp.float32) + fc2_b[0]
    x = x + h2

    x_scratch[...] = x                                              # carry to next layer

    # ---- last layer: emit pre-downsample output + fused ConvDownsampler ----
    @pl.when(d == depth - 1)
    def _():
        y_pre_ref[0] = x
        L_out = L // 2
        center = x_scratch[pl.ds(0, L_out, stride=2), :]            # x[2t]
        right = x_scratch[pl.ds(1, L_out, stride=2), :]             # x[2t+1]
        left = pltpu.roll(right, shift=1, axis=0)                   # x[2t-1] (row 0 wraps)
        row0 = lax.broadcasted_iota(jnp.int32, (L_out, C), 0) == 0
        left = jnp.where(row0, 0.0, left)                           # zero pad at t == 0
        taps = jnp.concatenate([left, center, right], axis=-1)      # (L_out, 3C)
        y = jnp.dot(taps.astype(jnp.bfloat16), conv_wT[...],
                    preferred_element_type=jnp.float32)             # (L_out, 2C)
        y_down_ref[0] = _layernorm(y, dln_w[...], dln_b[...])


# --------------------------------------------------------------------------- #
# Wrapper: host-side layout plumbing + pallas_call with grid = (B, depth).
# --------------------------------------------------------------------------- #
def nat_block_forward(x, layer_params, rpbs, down_params, num_heads, kernel_size):
    B, L, C = x.shape
    depth = len(layer_params)
    hid = layer_params[0]["fc1_w"].shape[0]
    k = kernel_size
    W = 2 * k - 1
    assert C % num_heads == 0 and L >= k and L % 2 == 0
    L_out = L // 2
    hd = C // num_heads
    scale = hd ** -0.5

    stack = lambda name: jnp.stack([p[name] for p in layer_params], axis=0)

    # fold the q scaling into the qkv weight / bias (host-side constant fold)
    scale_vec = jnp.concatenate([jnp.full((C,), scale, jnp.float32),
                                 jnp.ones((2 * C,), jnp.float32)])[None, :]
    qkv_wT = jnp.stack([p["qkv_w"].T * scale_vec
                        for p in layer_params]).astype(jnp.bfloat16)  # (d, C, 3C)
    qkv_b = jnp.stack([p["qkv_b"] * scale_vec for p in layer_params])  # (d, 1, 3C)

    proj_wT = jnp.stack([p["proj_w"].T for p in layer_params]).astype(jnp.bfloat16)
    fc1_wT = jnp.stack([p["fc1_w"].T for p in layer_params]).astype(jnp.bfloat16)
    fc2_wT = jnp.stack([p["fc2_w"].T for p in layer_params]).astype(jnp.bfloat16)

    ln1_w, ln1_b = stack("ln1_w"), stack("ln1_b")                    # (d, 1, C)
    ln2_w, ln2_b = stack("ln2_w"), stack("ln2_b")
    proj_b, fc1_b, fc2_b = stack("proj_b"), stack("fc1_b"), stack("fc2_b")
    rpb = jnp.stack(rpbs, axis=0)                                    # (d, H, 2k-1)

    conv_w = down_params["conv_w"]                                   # (2C, C, 3) torch layout
    conv_wT = jnp.concatenate([conv_w[:, :, t].T for t in range(3)],
                              axis=0).astype(jnp.bfloat16)           # (3C, 2C)
    dln_w, dln_b = down_params["ln_w"], down_params["ln_b"]

    args = (x, ln1_w, ln1_b, qkv_wT, qkv_b, rpb, proj_wT, proj_b, ln2_w, ln2_b,
            fc1_wT, fc1_b, fc2_wT, fc2_b, conv_wT, dln_w, dln_b)

    def per_layer(a):
        return pl.BlockSpec((1,) + a.shape[1:], lambda b, d: (d, 0, 0))

    def per_batch(shape):
        return pl.BlockSpec((1,) + shape, lambda b, d: (b, 0, 0))

    def shared(a):
        return pl.BlockSpec(a.shape, lambda b, d: (0, 0))

    in_specs = ([per_batch((L, C))] + [per_layer(a) for a in args[1:14]]
                + [shared(conv_wT), shared(dln_w), shared(dln_b)])
    out_specs = [per_batch((L_out, 2 * C)), per_batch((L, C))]

    # ---- VMEM budget (double-buffered layer weights + activations), clamped ----
    layer_w_bytes = (2 * (C * 3 * C + C * C + 2 * C * hid)
                     + 4 * (6 * C + hid + 3 * C + num_heads * W))
    act_bytes = 4 * (L * C * (6 + 2 * W) + L * 3 * C + 2 * L * hid
                     + 3 * num_heads * L * W + L_out * 5 * C)
    resident = (4 * layer_w_bytes                 # 2x double-buffered layer params
                + 2 * 4 * L * C                   # x input block (double buffered)
                + 4 * L * C                       # x carry scratch
                + 2 * 4 * (L * C + L_out * 2 * C)  # outputs (double buffered)
                + act_bytes
                + 2 * (3 * C * 2 * C) + 8 * 2 * C)  # downsampler params
    vmem_limit = int(min(max(2 * resident, 32 * 1024 * 1024), 64 * 1024 * 1024))

    # ---- advisory cost estimate ----
    mm_flops = depth * B * 2 * L * C * (3 * C + C + 2 * hid)
    band_flops = depth * B * 4 * W * L * C
    conv_flops = 2 * B * L_out * (3 * C) * (2 * C)
    transcendentals = depth * B * (num_heads * L * W + L * hid)
    bytes_accessed = (int(x.size) * 4 + B * (L * C + L_out * 2 * C) * 4
                      + B * sum(int(a.size) * a.dtype.itemsize for a in args[1:]))

    kernel = functools.partial(_nat_block_kernel, depth, num_heads, kernel_size)
    y_down, y_pre = pl.pallas_call(
        kernel,
        out_shape=(jax.ShapeDtypeStruct((B, L_out, 2 * C), jnp.float32),
                   jax.ShapeDtypeStruct((B, L, C), jnp.float32)),
        grid_spec=pltpu.PrefetchScalarGridSpec(
            num_scalar_prefetch=0,
            grid=(B, depth),
            in_specs=in_specs,
            out_specs=out_specs,
            scratch_shapes=[pltpu.VMEM((L, C), jnp.float32)]),
        compiler_params=pltpu.CompilerParams(
            dimension_semantics=("parallel", "arbitrary"),
            vmem_limit_bytes=vmem_limit),
        cost_estimate=pl.CostEstimate(
            flops=int(mm_flops + band_flops + conv_flops),
            transcendentals=int(transcendentals),
            bytes_accessed=int(bytes_accessed)),
    )(*args)
    return y_down, y_pre


# --------------------------------------------------------------------------- #
# Pure-JAX reference (dense attention, f32) for correctness checking.
# --------------------------------------------------------------------------- #
def nat_block_reference(x, layer_params, rpbs, down_params, num_heads, kernel_size):
    B, L, C = x.shape
    H, hd, k = num_heads, C // num_heads, kernel_size
    scale = hd ** -0.5

    def ln(v, w, b):
        mu = v.mean(-1, keepdims=True)
        var = ((v - mu) ** 2).mean(-1, keepdims=True)
        return (v - mu) * lax.rsqrt(var + 1e-5) * w + b

    i = jnp.arange(L)[:, None]
    j = jnp.arange(L)[None, :]
    start = jnp.clip(i - k // 2, 0, L - k)
    in_win = (j >= start) & (j < start + k)
    rel = jnp.clip((k - 1) + (j - i), 0, 2 * k - 2)

    for p, rpb in zip(layer_params, rpbs):
        h = ln(x, p["ln1_w"], p["ln1_b"])
        qkv = h @ p["qkv_w"].T + p["qkv_b"]
        q, kk, v = jnp.split(qkv, 3, axis=-1)
        q = q * scale
        qh = q.reshape(B, L, H, hd).transpose(0, 2, 1, 3)
        kh = kk.reshape(B, L, H, hd).transpose(0, 2, 1, 3)
        vh = v.reshape(B, L, H, hd).transpose(0, 2, 1, 3)
        s = jnp.einsum('bhqd,bhkd->bhqk', qh, kh) + rpb[:, rel][None]
        s = jnp.where(in_win[None, None], s, -jnp.inf)
        pa = jax.nn.softmax(s, axis=-1)
        o = jnp.einsum('bhqk,bhkd->bhqd', pa, vh).transpose(0, 2, 1, 3).reshape(B, L, C)
        x = x + o @ p["proj_w"].T + p["proj_b"]
        h2 = ln(x, p["ln2_w"], p["ln2_b"])
        h2 = jax.nn.gelu(h2 @ p["fc1_w"].T + p["fc1_b"], approximate=not EXACT_GELU)
        x = x + h2 @ p["fc2_w"].T + p["fc2_b"]

    L_out = L // 2
    xp = jnp.pad(x, ((0, 0), (1, 1), (0, 0)))
    idx = 2 * jnp.arange(L_out)
    taps = jnp.concatenate([xp[:, idx, :], xp[:, idx + 1, :], xp[:, idx + 2, :]], axis=-1)
    cw = down_params["conv_w"]
    wT = jnp.concatenate([cw[:, :, t].T for t in range(3)], axis=0)
    y = ln(taps @ wT, down_params["ln_w"], down_params["ln_b"])
    return y, x


# --------------------------------------------------------------------------- #
# Deterministic synthetic parameters (PyTorch layouts)
# --------------------------------------------------------------------------- #
def init_params(key, dim, depth, num_heads, kernel_size, mlp_ratio=4.0):
    hid = int(dim * mlp_ratio)
    layer_params, rpbs = [], []
    for _ in range(depth):
        key, *ks = jax.random.split(key, 10)
        layer_params.append(dict(
            ln1_w=jnp.ones((1, dim), jnp.float32),
            ln1_b=jnp.zeros((1, dim), jnp.float32),
            qkv_w=0.05 * jax.random.normal(ks[0], (3 * dim, dim), jnp.float32),
            qkv_b=0.01 * jax.random.normal(ks[1], (1, 3 * dim), jnp.float32),
            proj_w=0.05 * jax.random.normal(ks[2], (dim, dim), jnp.float32),
            proj_b=0.01 * jax.random.normal(ks[3], (1, dim), jnp.float32),
            ln2_w=jnp.ones((1, dim), jnp.float32),
            ln2_b=jnp.zeros((1, dim), jnp.float32),
            fc1_w=0.05 * jax.random.normal(ks[4], (hid, dim), jnp.float32),
            fc1_b=0.01 * jax.random.normal(ks[5], (1, hid), jnp.float32),
            fc2_w=0.05 * jax.random.normal(ks[6], (dim, hid), jnp.float32),
            fc2_b=0.01 * jax.random.normal(ks[7], (1, dim), jnp.float32),
        ))
        rpbs.append(0.02 * jax.random.normal(
            ks[8], (num_heads, 2 * kernel_size - 1), jnp.float32))
    key, k_conv = jax.random.split(key)
    down = dict(
        conv_w=0.05 * jax.random.normal(k_conv, (2 * dim, dim, 3), jnp.float32),
        ln_w=jnp.ones((1, 2 * dim), jnp.float32),
        ln_b=jnp.zeros((1, 2 * dim), jnp.float32),
    )
    return layer_params, rpbs, down


if __name__ == "__main__":
    B, L, dim = 2, 16, 32
    depth, num_heads, kernel_size = 2, 4, 5

    key = jax.random.PRNGKey(0)
    key, kx = jax.random.split(key)
    x = jax.random.normal(kx, (B, L, dim), jnp.float32)

    layer_params, rpbs, down = init_params(key, dim, depth, num_heads, kernel_size)

    y_down, y_pre = nat_block_forward(x, layer_params, rpbs, down,
                                      num_heads, kernel_size)
    jax.block_until_ready((y_down, y_pre))

    assert y_pre.shape == (B, L, dim)
    assert y_down.shape == (B, L // 2, 2 * dim)
    assert bool(jnp.all(jnp.isfinite(y_pre))) and bool(jnp.all(jnp.isfinite(y_down)))

    # correctness vs. pure-JAX reference (bf16 MXU + approx reciprocal tolerance)
    r_down, r_pre = nat_block_reference(x, layer_params, rpbs, down,
                                        num_heads, kernel_size)
    assert bool(jnp.allclose(y_pre, r_pre, atol=5e-2, rtol=5e-2))
    assert bool(jnp.allclose(y_down, r_down, atol=5e-2, rtol=5e-2))

    print("KERNEL_OK")
</pallas_src>

<mosaic_0001>
module attributes {stable_mosaic.version = 11 : i64} {
  func.func @_nat_block_kernel(%arg0: i32, %arg1: i32, %arg2: memref<1x16x32xf32, #tpu.memory_space<vmem>>, %arg3: memref<1x1x32xf32, #tpu.memory_space<vmem>>, %arg4: memref<1x1x32xf32, #tpu.memory_space<vmem>>, %arg5: memref<1x32x96xbf16, #tpu.memory_space<vmem>>, %arg6: memref<1x1x96xf32, #tpu.memory_space<vmem>>, %arg7: memref<1x4x9xf32, #tpu.memory_space<vmem>>, %arg8: memref<1x32x32xbf16, #tpu.memory_space<vmem>>, %arg9: memref<1x1x32xf32, #tpu.memory_space<vmem>>, %arg10: memref<1x1x32xf32, #tpu.memory_space<vmem>>, %arg11: memref<1x1x32xf32, #tpu.memory_space<vmem>>, %arg12: memref<1x32x128xbf16, #tpu.memory_space<vmem>>, %arg13: memref<1x1x128xf32, #tpu.memory_space<vmem>>, %arg14: memref<1x128x32xbf16, #tpu.memory_space<vmem>>, %arg15: memref<1x1x32xf32, #tpu.memory_space<vmem>>, %arg16: memref<96x64xbf16, #tpu.memory_space<vmem>>, %arg17: memref<1x64xf32, #tpu.memory_space<vmem>>, %arg18: memref<1x64xf32, #tpu.memory_space<vmem>>, %arg19: memref<1x8x64xf32, #tpu.memory_space<vmem>>, %arg20: memref<1x16x32xf32, #tpu.memory_space<vmem>>, %arg21: memref<16x32xf32, #tpu.memory_space<vmem>>) attributes {dimension_semantics = [#tpu.dimension_semantics<parallel>, #tpu.dimension_semantics<arbitrary>], iteration_bounds = array<i64: 2, 2>, scalar_prefetch = 0 : i64, scratch_operands = 1 : i64, tpu.core_type = #tpu.core_type<tc>, window_params = [{transform_indices = @transform_0, window_bounds = array<i64: 1, 16, 32>}, {transform_indices = @transform_1, window_bounds = array<i64: 1, 1, 32>}, {transform_indices = @transform_2, window_bounds = array<i64: 1, 1, 32>}, {transform_indices = @transform_3, window_bounds = array<i64: 1, 32, 96>}, {transform_indices = @transform_4, window_bounds = array<i64: 1, 1, 96>}, {transform_indices = @transform_5, window_bounds = array<i64: 1, 4, 9>}, {transform_indices = @transform_6, window_bounds = array<i64: 1, 32, 32>}, {transform_indices = @transform_7, window_bounds = array<i64: 1, 1, 32>}, {transform_indices = @transform_8, window_bounds = array<i64: 1, 1, 32>}, {transform_indices = @transform_9, window_bounds = array<i64: 1, 1, 32>}, {transform_indices = @transform_10, window_bounds = array<i64: 1, 32, 128>}, {transform_indices = @transform_11, window_bounds = array<i64: 1, 1, 128>}, {transform_indices = @transform_12, window_bounds = array<i64: 1, 128, 32>}, {transform_indices = @transform_13, window_bounds = array<i64: 1, 1, 32>}, {pipeline_mode = #tpu.pipeline_mode<synchronous>, transform_indices = @transform_14, window_bounds = array<i64: 96, 64>}, {pipeline_mode = #tpu.pipeline_mode<synchronous>, transform_indices = @transform_15, window_bounds = array<i64: 1, 64>}, {pipeline_mode = #tpu.pipeline_mode<synchronous>, transform_indices = @transform_16, window_bounds = array<i64: 1, 64>}, {transform_indices = @transform_17, window_bounds = array<i64: 1, 8, 64>}, {transform_indices = @transform_18, window_bounds = array<i64: 1, 16, 32>}]} {
    %c0_i32 = arith.constant 0 : i32
    %0 = arith.cmpi eq, %arg1, %c0_i32 : i32
    %1 = arith.extui %0 : i1 to i32
    %c0_i32_0 = arith.constant 0 : i32
    %2 = arith.cmpi ne, %1, %c0_i32_0 : i32
    scf.if %2 {
      %c0_116 = arith.constant 0 : index
      %c0_117 = arith.constant 0 : index
      %c0_118 = arith.constant 0 : index
      %540 = vector.load %arg2[%c0_116, %c0_117, %c0_118] : memref<1x16x32xf32, #tpu.memory_space<vmem>>, vector<1x16x32xf32>
      %541 = vector.shape_cast %540 : vector<1x16x32xf32> to vector<16x32xf32>
      %c0_119 = arith.constant 0 : index
      %c0_120 = arith.constant 0 : index
      %542 = vector.load %arg21[%c0_119, %c0_120] : memref<16x32xf32, #tpu.memory_space<vmem>>, vector<16x32xf32>
      tpu.vector_store %arg21[%c0_119, %c0_120], %541 {strides = array<i32>} : memref<16x32xf32, #tpu.memory_space<vmem>>, vector<16x32xf32>,
    } else {
    }
    %c0 = arith.constant 0 : index
    %c0_1 = arith.constant 0 : index
    %3 = vector.load %arg21[%c0, %c0_1] : memref<16x32xf32, #tpu.memory_space<vmem>>, vector<16x32xf32>
    %c0_2 = arith.constant 0 : index
    %c0_3 = arith.constant 0 : index
    %c0_4 = arith.constant 0 : index
    %4 = vector.load %arg3[%c0_2, %c0_3, %c0_4] : memref<1x1x32xf32, #tpu.memory_space<vmem>>, vector<1x1x32xf32>
    %5 = vector.shape_cast %4 : vector<1x1x32xf32> to vector<1x32xf32>
    %c0_5 = arith.constant 0 : index
    %c0_6 = arith.constant 0 : index
    %c0_7 = arith.constant 0 : index
    %6 = vector.load %arg4[%c0_5, %c0_6, %c0_7] : memref<1x1x32xf32, #tpu.memory_space<vmem>>, vector<1x1x32xf32>
    %7 = vector.shape_cast %6 : vector<1x1x32xf32> to vector<1x32xf32>
    %cst = arith.constant dense<0.000000e+00> : vector<16xf32>
    %8 = vector.multi_reduction <add>, %3, %cst [1] : vector<16x32xf32> to vector<16xf32>
    %9 = vector.shape_cast %8 : vector<16xf32> to vector<16x1xf32>
    %cst_8 = arith.constant 3.200000e+01 : f32
    %10 = vector.broadcast %cst_8 : f32 to vector<16x1xf32>
    %11 = arith.divf %9, %10 : vector<16x1xf32>
    %12 = vector.broadcast %11 : vector<16x1xf32> to vector<16x32xf32>
    %13 = arith.subf %3, %12 : vector<16x32xf32>
    %14 = arith.mulf %13, %13 : vector<16x32xf32>
    %cst_9 = arith.constant dense<0.000000e+00> : vector<16xf32>
    %15 = vector.multi_reduction <add>, %14, %cst_9 [1] : vector<16x32xf32> to vector<16xf32>
    %16 = vector.shape_cast %15 : vector<16xf32> to vector<16x1xf32>
    %cst_10 = arith.constant 3.200000e+01 : f32
    %17 = vector.broadcast %cst_10 : f32 to vector<16x1xf32>
    %18 = arith.divf %16, %17 : vector<16x1xf32>
    %19 = vector.broadcast %11 : vector<16x1xf32> to vector<16x32xf32>
    %20 = arith.subf %3, %19 : vector<16x32xf32>
    %cst_11 = arith.constant 9.99999974E-6 : f32
    %21 = vector.broadcast %cst_11 : f32 to vector<16x1xf32>
    %22 = arith.addf %18, %21 : vector<16x1xf32>
    %23 = math.rsqrt %22 : vector<16x1xf32>
    %24 = vector.broadcast %23 : vector<16x1xf32> to vector<16x32xf32>
    %25 = arith.mulf %20, %24 : vector<16x32xf32>
    %26 = vector.broadcast %5 : vector<1x32xf32> to vector<16x32xf32>
    %27 = arith.mulf %25, %26 : vector<16x32xf32>
    %28 = vector.broadcast %7 : vector<1x32xf32> to vector<16x32xf32>
    %29 = arith.addf %27, %28 : vector<16x32xf32>
    %30 = arith.truncf %29 : vector<16x32xf32> to vector<16x32xbf16>
    %c0_12 = arith.constant 0 : index
    %c0_13 = arith.constant 0 : index
    %c0_14 = arith.constant 0 : index
    %31 = vector.load %arg5[%c0_12, %c0_13, %c0_14] : memref<1x32x96xbf16, #tpu.memory_space<vmem>>, vector<1x32x96xbf16>
    %32 = vector.shape_cast %31 : vector<1x32x96xbf16> to vector<32x96xbf16>
    %cst_15 = arith.constant dense<0.000000e+00> : vector<16x96xf32>
    %33 = tpu.matmul %30, %32, %cst_15 {dimension_numbers = #tpu.dot_dimension_numbers<[1], [0], [0], [1], [0, 0, 1, 1], [], []>} : vector<16x32xbf16>, vector<32x96xbf16>, vector<16x96xf32> -> vector<16x96xf32>
    %c0_16 = arith.constant 0 : index
    %c0_17 = arith.constant 0 : index
    %c0_18 = arith.constant 0 : index
    %34 = vector.load %arg6[%c0_16, %c0_17, %c0_18] : memref<1x1x96xf32, #tpu.memory_space<vmem>>, vector<1x1x96xf32>
    %35 = vector.shape_cast %34 : vector<1x1x96xf32> to vector<1x96xf32>
    %36 = vector.broadcast %35 : vector<1x96xf32> to vector<16x96xf32>
    %37 = arith.addf %33, %36 : vector<16x96xf32>
    %38 = vector.extract_strided_slice %37 {offsets = [0, 0], sizes = [16, 32], strides = [1, 1]} : vector<16x96xf32> to vector<16x32xf32>
    %39 = vector.extract_strided_slice %37 {offsets = [0, 32], sizes = [16, 32], strides = [1, 1]} : vector<16x96xf32> to vector<16x32xf32>
    %40 = vector.extract_strided_slice %37 {offsets = [0, 64], sizes = [16, 32], strides = [1, 1]} : vector<16x96xf32> to vector<16x32xf32>
    %41 = tpu.iota {dimensions = array<i32: 0>} : vector<16x9xi32>
    %42 = tpu.iota {dimensions = array<i32: 1>} : vector<16x9xi32>
    %c4_i32 = arith.constant 4 : i32
    %43 = vector.broadcast %c4_i32 : i32 to vector<16x9xi32>
    %44 = arith.subi %42, %43 : vector<16x9xi32>
    %c2_i32 = arith.constant 2 : i32
    %45 = vector.broadcast %c2_i32 : i32 to vector<16x9xi32>
    %46 = arith.subi %41, %45 : vector<16x9xi32>
    %c0_i32_19 = arith.constant 0 : i32
    %c11_i32 = arith.constant 11 : i32
    %47 = vector.broadcast %c0_i32_19 : i32 to vector<16x9xi32>
    %48 = arith.maxsi %47, %46 : vector<16x9xi32>
    %49 = vector.broadcast %c11_i32 : i32 to vector<16x9xi32>
    %50 = arith.minsi %49, %48 : vector<16x9xi32>
    %51 = arith.addi %41, %44 : vector<16x9xi32>
    %52 = arith.cmpi sge, %51, %50 : vector<16x9xi32>
    %c5_i32 = arith.constant 5 : i32
    %53 = vector.broadcast %c5_i32 : i32 to vector<16x9xi32>
    %54 = arith.addi %50, %53 : vector<16x9xi32>
    %55 = arith.cmpi slt, %51, %54 : vector<16x9xi32>
    %56 = arith.andi %52, %55 : vector<16x9xi1>
    %c4_i32_20 = arith.constant 4 : i32
    %57 = tpu.dynamic_rotate %39 by %c4_i32_20 dim 0 : vector<16x32xf32>, i32 -> vector<16x32xf32>
    %c4_i32_21 = arith.constant 4 : i32
    %58 = tpu.dynamic_rotate %40 by %c4_i32_21 dim 0 : vector<16x32xf32>, i32 -> vector<16x32xf32>
    %c3_i32 = arith.constant 3 : i32
    %59 = tpu.dynamic_rotate %39 by %c3_i32 dim 0 : vector<16x32xf32>, i32 -> vector<16x32xf32>
    %c3_i32_22 = arith.constant 3 : i32
    %60 = tpu.dynamic_rotate %40 by %c3_i32_22 dim 0 : vector<16x32xf32>, i32 -> vector<16x32xf32>
    %c2_i32_23 = arith.constant 2 : i32
    %61 = tpu.dynamic_rotate %39 by %c2_i32_23 dim 0 : vector<16x32xf32>, i32 -> vector<16x32xf32>
    %c2_i32_24 = arith.constant 2 : i32
    %62 = tpu.dynamic_rotate %40 by %c2_i32_24 dim 0 : vector<16x32xf32>, i32 -> vector<16x32xf32>
    %c1_i32 = arith.constant 1 : i32
    %63 = tpu.dynamic_rotate %39 by %c1_i32 dim 0 : vector<16x32xf32>, i32 -> vector<16x32xf32>
    %c1_i32_25 = arith.constant 1 : i32
    %64 = tpu.dynamic_rotate %40 by %c1_i32_25 dim 0 : vector<16x32xf32>, i32 -> vector<16x32xf32>
    %c15_i32 = arith.constant 15 : i32
    %65 = tpu.dynamic_rotate %39 by %c15_i32 dim 0 : vector<16x32xf32>, i32 -> vector<16x32xf32>
    %c15_i32_26 = arith.constant 15 : i32
    %66 = tpu.dynamic_rotate %40 by %c15_i32_26 dim 0 : vector<16x32xf32>, i32 -> vector<16x32xf32>
    %c14_i32 = arith.constant 14 : i32
    %67 = tpu.dynamic_rotate %39 by %c14_i32 dim 0 : vector<16x32xf32>, i32 -> vector<16x32xf32>
    %c14_i32_27 = arith.constant 14 : i32
    %68 = tpu.dynamic_rotate %40 by %c14_i32_27 dim 0 : vector<16x32xf32>, i32 -> vector<16x32xf32>
    %c13_i32 = arith.constant 13 : i32
    %69 = tpu.dynamic_rotate %39 by %c13_i32 dim 0 : vector<16x32xf32>, i32 -> vector<16x32xf32>
    %c13_i32_28 = arith.constant 13 : i32
    %70 = tpu.dynamic_rotate %40 by %c13_i32_28 dim 0 : vector<16x32xf32>, i32 -> vector<16x32xf32>
    %c12_i32 = arith.constant 12 : i32
    %71 = tpu.dynamic_rotate %39 by %c12_i32 dim 0 : vector<16x32xf32>, i32 -> vector<16x32xf32>
    %c12_i32_29 = arith.constant 12 : i32
    %72 = tpu.dynamic_rotate %40 by %c12_i32_29 dim 0 : vector<16x32xf32>, i32 -> vector<16x32xf32>
    %73 = vector.extract_strided_slice %38 {offsets = [0, 0], sizes = [16, 8], strides = [1, 1]} : vector<16x32xf32> to vector<16x8xf32>
    %74 = vector.extract_strided_slice %57 {offsets = [0, 0], sizes = [16, 8], strides = [1, 1]} : vector<16x32xf32> to vector<16x8xf32>
    %75 = arith.mulf %73, %74 : vector<16x8xf32>
    %cst_30 = arith.constant dense<0.000000e+00> : vector<16xf32>
    %76 = vector.multi_reduction <add>, %75, %cst_30 [1] : vector<16x8xf32> to vector<16xf32>
    %77 = vector.shape_cast %76 : vector<16xf32> to vector<16x1xf32>
    %78 = vector.extract_strided_slice %59 {offsets = [0, 0], sizes = [16, 8], strides = [1, 1]} : vector<16x32xf32> to vector<16x8xf32>
    %79 = arith.mulf %73, %78 : vector<16x8xf32>
    %cst_31 = arith.constant dense<0.000000e+00> : vector<16xf32>
    %80 = vector.multi_reduction <add>, %79, %cst_31 [1] : vector<16x8xf32> to vector<16xf32>
    %81 = vector.shape_cast %80 : vector<16xf32> to vector<16x1xf32>
    %82 = vector.extract_strided_slice %61 {offsets = [0, 0], sizes = [16, 8], strides = [1, 1]} : vector<16x32xf32> to vector<16x8xf32>
    %83 = arith.mulf %73, %82 : vector<16x8xf32>
    %cst_32 = arith.constant dense<0.000000e+00> : vector<16xf32>
    %84 = vector.multi_reduction <add>, %83, %cst_32 [1] : vector<16x8xf32> to vector<16xf32>
    %85 = vector.shape_cast %84 : vector<16xf32> to vector<16x1xf32>
    %86 = vector.extract_strided_slice %63 {offsets = [0, 0], sizes = [16, 8], strides = [1, 1]} : vector<16x32xf32> to vector<16x8xf32>
    %87 = arith.mulf %73, %86 : vector<16x8xf32>
    %cst_33 = arith.constant dense<0.000000e+00> : vector<16xf32>
    %88 = vector.multi_reduction <add>, %87, %cst_33 [1] : vector<16x8xf32> to vector<16xf32>
    %89 = vector.shape_cast %88 : vector<16xf32> to vector<16x1xf32>
    %90 = vector.extract_strided_slice %39 {offsets = [0, 0], sizes = [16, 8], strides = [1, 1]} : vector<16x32xf32> to vector<16x8xf32>
    %91 = arith.mulf %73, %90 : vector<16x8xf32>
    %cst_34 = arith.constant dense<0.000000e+00> : vector<16xf32>
    %92 = vector.multi_reduction <add>, %91, %cst_34 [1] : vector<16x8xf32> to vector<16xf32>
    %93 = vector.shape_cast %92 : vector<16xf32> to vector<16x1xf32>
    %94 = vector.extract_strided_slice %65 {offsets = [0, 0], sizes = [16, 8], strides = [1, 1]} : vector<16x32xf32> to vector<16x8xf32>
    %95 = arith.mulf %73, %94 : vector<16x8xf32>
    %cst_35 = arith.constant dense<0.000000e+00> : vector<16xf32>
    %96 = vector.multi_reduction <add>, %95, %cst_35 [1] : vector<16x8xf32> to vector<16xf32>
    %97 = vector.shape_cast %96 : vector<16xf32> to vector<16x1xf32>
    %98 = vector.extract_strided_slice %67 {offsets = [0, 0], sizes = [16, 8], strides = [1, 1]} : vector<16x32xf32> to vector<16x8xf32>
    %99 = arith.mulf %73, %98 : vector<16x8xf32>
    %cst_36 = arith.constant dense<0.000000e+00> : vector<16xf32>
    %100 = vector.multi_reduction <add>, %99, %cst_36 [1] : vector<16x8xf32> to vector<16xf32>
    %101 = vector.shape_cast %100 : vector<16xf32> to vector<16x1xf32>
    %102 = vector.extract_strided_slice %69 {offsets = [0, 0], sizes = [16, 8], strides = [1, 1]} : vector<16x32xf32> to vector<16x8xf32>
    %103 = arith.mulf %73, %102 : vector<16x8xf32>
    %cst_37 = arith.constant dense<0.000000e+00> : vector<16xf32>
    %104 = vector.multi_reduction <add>, %103, %cst_37 [1] : vector<16x8xf32> to vector<16xf32>
    %105 = vector.shape_cast %104 : vector<16xf32> to vector<16x1xf32>
    %106 = vector.extract_strided_slice %71 {offsets = [0, 0], sizes = [16, 8], strides = [1, 1]} : vector<16x32xf32> to vector<16x8xf32>
    %107 = arith.mulf %73, %106 : vector<16x8xf32>
    %cst_38 = arith.constant dense<0.000000e+00> : vector<16xf32>
    %108 = vector.multi_reduction <add>, %107, %cst_38 [1] : vector<16x8xf32> to vector<16xf32>
    %109 = vector.shape_cast %108 : vector<16xf32> to vector<16x1xf32>
    %110 = tpu.concatenate %77, %81, %85, %89, %93, %97, %101, %105, %109 in 1 : vector<16x1xf32>, vector<16x1xf32>, vector<16x1xf32>, vector<16x1xf32>, vector<16x1xf32>, vector<16x1xf32>, vector<16x1xf32>, vector<16x1xf32>, vector<16x1xf32> -> vector<16x9xf32>
    %111 = vector.extract_strided_slice %38 {offsets = [0, 8], sizes = [16, 8], strides = [1, 1]} : vector<16x32xf32> to vector<16x8xf32>
    %112 = vector.extract_strided_slice %57 {offsets = [0, 8], sizes = [16, 8], strides = [1, 1]} : vector<16x32xf32> to vector<16x8xf32>
    %113 = arith.mulf %111, %112 : vector<16x8xf32>
    %cst_39 = arith.constant dense<0.000000e+00> : vector<16xf32>
    %114 = vector.multi_reduction <add>, %113, %cst_39 [1] : vector<16x8xf32> to vector<16xf32>
    %115 = vector.shape_cast %114 : vector<16xf32> to vector<16x1xf32>
    %116 = vector.extract_strided_slice %59 {offsets = [0, 8], sizes = [16, 8], strides = [1, 1]} : vector<16x32xf32> to vector<16x8xf32>
    %117 = arith.mulf %111, %116 : vector<16x8xf32>
    %cst_40 = arith.constant dense<0.000000e+00> : vector<16xf32>
    %118 = vector.multi_reduction <add>, %117, %cst_40 [1] : vector<16x8xf32> to vector<16xf32>
    %119 = vector.shape_cast %118 : vector<16xf32> to vector<16x1xf32>
    %120 = vector.extract_strided_slice %61 {offsets = [0, 8], sizes = [16, 8], strides = [1, 1]} : vector<16x32xf32> to vector<16x8xf32>
    %121 = arith.mulf %111, %120 : vector<16x8xf32>
    %cst_41 = arith.constant dense<0.000000e+00> : vector<16xf32>
    %122 = vector.multi_reduction <add>, %121, %cst_41 [1] : vector<16x8xf32> to vector<16xf32>
    %123 = vector.shape_cast %122 : vector<16xf32> to vector<16x1xf32>
    %124 = vector.extract_strided_slice %63 {offsets = [0, 8], sizes = [16, 8], strides = [1, 1]} : vector<16x32xf32> to vector<16x8xf32>
    %125 = arith.mulf %111, %124 : vector<16x8xf32>
    %cst_42 = arith.constant dense<0.000000e+00> : vector<16xf32>
    %126 = vector.multi_reduction <add>, %125, %cst_42 [1] : vector<16x8xf32> to vector<16xf32>
    %127 = vector.shape_cast %126 : vector<16xf32> to vector<16x1xf32>
    %128 = vector.extract_strided_slice %39 {offsets = [0, 8], sizes = [16, 8], strides = [1, 1]} : vector<16x32xf32> to vector<16x8xf32>
    %129 = arith.mulf %111, %128 : vector<16x8xf32>
    %cst_43 = arith.constant dense<0.000000e+00> : vector<16xf32>
    %130 = vector.multi_reduction <add>, %129, %cst_43 [1] : vector<16x8xf32> to vector<16xf32>
    %131 = vector.shape_cast %130 : vector<16xf32> to vector<16x1xf32>
    %132 = vector.extract_strided_slice %65 {offsets = [0, 8], sizes = [16, 8], strides = [1, 1]} : vector<16x32xf32> to vector<16x8xf32>
    %133 = arith.mulf %111, %132 : vector<16x8xf32>
    %cst_44 = arith.constant dense<0.000000e+00> : vector<16xf32>
    %134 = vector.multi_reduction <add>, %133, %cst_44 [1] : vector<16x8xf32> to vector<16xf32>
    %135 = vector.shape_cast %134 : vector<16xf32> to vector<16x1xf32>
    %136 = vector.extract_strided_slice %67 {offsets = [0, 8], sizes = [16, 8], strides = [1, 1]} : vector<16x32xf32> to vector<16x8xf32>
    %137 = arith.mulf %111, %136 : vector<16x8xf32>
    %cst_45 = arith.constant dense<0.000000e+00> : vector<16xf32>
    %138 = vector.multi_reduction <add>, %137, %cst_45 [1] : vector<16x8xf32> to vector<16xf32>
    %139 = vector.shape_cast %138 : vector<16xf32> to vector<16x1xf32>
    %140 = vector.extract_strided_slice %69 {offsets = [0, 8], sizes = [16, 8], strides = [1, 1]} : vector<16x32xf32> to vector<16x8xf32>
    %141 = arith.mulf %111, %140 : vector<16x8xf32>
    %cst_46 = arith.constant dense<0.000000e+00> : vector<16xf32>
    %142 = vector.multi_reduction <add>, %141, %cst_46 [1] : vector<16x8xf32> to vector<16xf32>
    %143 = vector.shape_cast %142 : vector<16xf32> to vector<16x1xf32>
    %144 = vector.extract_strided_slice %71 {offsets = [0, 8], sizes = [16, 8], strides = [1, 1]} : vector<16x32xf32> to vector<16x8xf32>
    %145 = arith.mulf %111, %144 : vector<16x8xf32>
    %cst_47 = arith.constant dense<0.000000e+00> : vector<16xf32>
    %146 = vector.multi_reduction <add>, %145, %cst_47 [1] : vector<16x8xf32> to vector<16xf32>
    %147 = vector.shape_cast %146 : vector<16xf32> to vector<16x1xf32>
    %148 = tpu.concatenate %115, %119, %123, %127, %131, %135, %139, %143, %147 in 1 : vector<16x1xf32>, vector<16x1xf32>, vector<16x1xf32>, vector<16x1xf32>, vector<16x1xf32>, vector<16x1xf32>, vector<16x1xf32>, vector<16x1xf32>, vector<16x1xf32> -> vector<16x9xf32>
    %149 = vector.extract_strided_slice %38 {offsets = [0, 16], sizes = [16, 8], strides = [1, 1]} : vector<16x32xf32> to vector<16x8xf32>
    %150 = vector.extract_strided_slice %57 {offsets = [0, 16], sizes = [16, 8], strides = [1, 1]} : vector<16x32xf32> to vector<16x8xf32>
    %151 = arith.mulf %149, %150 : vector<16x8xf32>
    %cst_48 = arith.constant dense<0.000000e+00> : vector<16xf32>
    %152 = vector.multi_reduction <add>, %151, %cst_48 [1] : vector<16x8xf32> to vector<16xf32>
    %153 = vector.shape_cast %152 : vector<16xf32> to vector<16x1xf32>
    %154 = vector.extract_strided_slice %59 {offsets = [0, 16], sizes = [16, 8], strides = [1, 1]} : vector<16x32xf32> to vector<16x8xf32>
    %155 = arith.mulf %149, %154 : vector<16x8xf32>
    %cst_49 = arith.constant dense<0.000000e+00> : vector<16xf32>
    %156 = vector.multi_reduction <add>, %155, %cst_49 [1] : vector<16x8xf32> to vector<16xf32>
    %157 = vector.shape_cast %156 : vector<16xf32> to vector<16x1xf32>
    %158 = vector.extract_strided_slice %61 {offsets = [0, 16], sizes = [16, 8], strides = [1, 1]} : vector<16x32xf32> to vector<16x8xf32>
    %159 = arith.mulf %149, %158 : vector<16x8xf32>
    %cst_50 = arith.constant dense<0.000000e+00> : vector<16xf32>
    %160 = vector.multi_reduction <add>, %159, %cst_50 [1] : vector<16x8xf32> to vector<16xf32>
    %161 = vector.shape_cast %160 : vector<16xf32> to vector<16x1xf32>
    %162 = vector.extract_strided_slice %63 {offsets = [0, 16], sizes = [16, 8], strides = [1, 1]} : vector<16x32xf32> to vector<16x8xf32>
    %163 = arith.mulf %149, %162 : vector<16x8xf32>
    %cst_51 = arith.constant dense<0.000000e+00> : vector<16xf32>
    %164 = vector.multi_reduction <add>, %163, %cst_51 [1] : vector<16x8xf32> to vector<16xf32>
    %165 = vector.shape_cast %164 : vector<16xf32> to vector<16x1xf32>
    %166 = vector.extract_strided_slice %39 {offsets = [0, 16], sizes = [16, 8], strides = [1, 1]} : vector<16x32xf32> to vector<16x8xf32>
    %167 = arith.mulf %149, %166 : vector<16x8xf32>
    %cst_52 = arith.constant dense<0.000000e+00> : vector<16xf32>
    %168 = vector.multi_reduction <add>, %167, %cst_52 [1] : vector<16x8xf32> to vector<16xf32>
    %169 = vector.shape_cast %168 : vector<16xf32> to vector<16x1xf32>
    %170 = vector.extract_strided_slice %65 {offsets = [0, 16], sizes = [16, 8], strides = [1, 1]} : vector<16x32xf32> to vector<16x8xf32>
    %171 = arith.mulf %149, %170 : vector<16x8xf32>
    %cst_53 = arith.constant dense<0.000000e+00> : vector<16xf32>
    %172 = vector.multi_reduction <add>, %171, %cst_53 [1] : vector<16x8xf32> to vector<16xf32>
    %173 = vector.shape_cast %172 : vector<16xf32> to vector<16x1xf32>
    %174 = vector.extract_strided_slice %67 {offsets = [0, 16], sizes = [16, 8], strides = [1, 1]} : vector<16x32xf32> to vector<16x8xf32>
    %175 = arith.mulf %149, %174 : vector<16x8xf32>
    %cst_54 = arith.constant dense<0.000000e+00> : vector<16xf32>
    %176 = vector.multi_reduction <add>, %175, %cst_54 [1] : vector<16x8xf32> to vector<16xf32>
    %177 = vector.shape_cast %176 : vector<16xf32> to vector<16x1xf32>
    %178 = vector.extract_strided_slice %69 {offsets = [0, 16], sizes = [16, 8], strides = [1, 1]} : vector<16x32xf32> to vector<16x8xf32>
    %179 = arith.mulf %149, %178 : vector<16x8xf32>
    %cst_55 = arith.constant dense<0.000000e+00> : vector<16xf32>
    %180 = vector.multi_reduction <add>, %179, %cst_55 [1] : vector<16x8xf32> to vector<16xf32>
    %181 = vector.shape_cast %180 : vector<16xf32> to vector<16x1xf32>
    %182 = vector.extract_strided_slice %71 {offsets = [0, 16], sizes = [16, 8], strides = [1, 1]} : vector<16x32xf32> to vector<16x8xf32>
    %183 = arith.mulf %149, %182 : vector<16x8xf32>
    %cst_56 = arith.constant dense<0.000000e+00> : vector<16xf32>
    %184 = vector.multi_reduction <add>, %183, %cst_56 [1] : vector<16x8xf32> to vector<16xf32>
    %185 = vector.shape_cast %184 : vector<16xf32> to vector<16x1xf32>
    %186 = tpu.concatenate %153, %157, %161, %165, %169, %173, %177, %181, %185 in 1 : vector<16x1xf32>, vector<16x1xf32>, vector<16x1xf32>, vector<16x1xf32>, vector<16x1xf32>, vector<16x1xf32>, vector<16x1xf32>, vector<16x1xf32>, vector<16x1xf32> -> vector<16x9xf32>
    %187 = vector.extract_strided_slice %38 {offsets = [0, 24], sizes = [16, 8], strides = [1, 1]} : vector<16x32xf32> to vector<16x8xf32>
    %188 = vector.extract_strided_slice %57 {offsets = [0, 24], sizes = [16, 8], strides = [1, 1]} : vector<16x32xf32> to vector<16x8xf32>
    %189 = arith.mulf %187, %188 : vector<16x8xf32>
    %cst_57 = arith.constant dense<0.000000e+00> : vector<16xf32>
    %190 = vector.multi_reduction <add>, %189, %cst_57 [1] : vector<16x8xf32> to vector<16xf32>
    %191 = vector.shape_cast %190 : vector<16xf32> to vector<16x1xf32>
    %192 = vector.extract_strided_slice %59 {offsets = [0, 24], sizes = [16, 8], strides = [1, 1]} : vector<16x32xf32> to vector<16x8xf32>
    %193 = arith.mulf %187, %192 : vector<16x8xf32>
    %cst_58 = arith.constant dense<0.000000e+00> : vector<16xf32>
    %194 = vector.multi_reduction <add>, %193, %cst_58 [1] : vector<16x8xf32> to vector<16xf32>
    %195 = vector.shape_cast %194 : vector<16xf32> to vector<16x1xf32>
    %196 = vector.extract_strided_slice %61 {offsets = [0, 24], sizes = [16, 8], strides = [1, 1]} : vector<16x32xf32> to vector<16x8xf32>
    %197 = arith.mulf %187, %196 : vector<16x8xf32>
    %cst_59 = arith.constant dense<0.000000e+00> : vector<16xf32>
    %198 = vector.multi_reduction <add>, %197, %cst_59 [1] : vector<16x8xf32> to vector<16xf32>
    %199 = vector.shape_cast %198 : vector<16xf32> to vector<16x1xf32>
    %200 = vector.extract_strided_slice %63 {offsets = [0, 24], sizes = [16, 8], strides = [1, 1]} : vector<16x32xf32> to vector<16x8xf32>
    %201 = arith.mulf %187, %200 : vector<16x8xf32>
    %cst_60 = arith.constant dense<0.000000e+00> : vector<16xf32>
    %202 = vector.multi_reduction <add>, %201, %cst_60 [1] : vector<16x8xf32> to vector<16xf32>
    %203 = vector.shape_cast %202 : vector<16xf32> to vector<16x1xf32>
    %204 = vector.extract_strided_slice %39 {offsets = [0, 24], sizes = [16, 8], strides = [1, 1]} : vector<16x32xf32> to vector<16x8xf32>
    %205 = arith.mulf %187, %204 : vector<16x8xf32>
    %cst_61 = arith.constant dense<0.000000e+00> : vector<16xf32>
    %206 = vector.multi_reduction <add>, %205, %cst_61 [1] : vector<16x8xf32> to vector<16xf32>
    %207 = vector.shape_cast %206 : vector<16xf32> to vector<16x1xf32>
    %208 = vector.extract_strided_slice %65 {offsets = [0, 24], sizes = [16, 8], strides = [1, 1]} : vector<16x32xf32> to vector<16x8xf32>
    %209 = arith.mulf %187, %208 : vector<16x8xf32>
    %cst_62 = arith.constant dense<0.000000e+00> : vector<16xf32>
    %210 = vector.multi_reduction <add>, %209, %cst_62 [1] : vector<16x8xf32> to vector<16xf32>
    %211 = vector.shape_cast %210 : vector<16xf32> to vector<16x1xf32>
    %212 = vector.extract_strided_slice %67 {offsets = [0, 24], sizes = [16, 8], strides = [1, 1]} : vector<16x32xf32> to vector<16x8xf32>
    %213 = arith.mulf %187, %212 : vector<16x8xf32>
    %cst_63 = arith.constant dense<0.000000e+00> : vector<16xf32>
    %214 = vector.multi_reduction <add>, %213, %cst_63 [1] : vector<16x8xf32> to vector<16xf32>
    %215 = vector.shape_cast %214 : vector<16xf32> to vector<16x1xf32>
    %216 = vector.extract_strided_slice %69 {offsets = [0, 24], sizes = [16, 8], strides = [1, 1]} : vector<16x32xf32> to vector<16x8xf32>
    %217 = arith.mulf %187, %216 : vector<16x8xf32>
    %cst_64 = arith.constant dense<0.000000e+00> : vector<16xf32>
    %218 = vector.multi_reduction <add>, %217, %cst_64 [1] : vector<16x8xf32> to vector<16xf32>
    %219 = vector.shape_cast %218 : vector<16xf32> to vector<16x1xf32>
    %220 = vector.extract_strided_slice %71 {offsets = [0, 24], sizes = [16, 8], strides = [1, 1]} : vector<16x32xf32> to vector<16x8xf32>
    %221 = arith.mulf %187, %220 : vector<16x8xf32>
    %cst_65 = arith.constant dense<0.000000e+00> : vector<16xf32>
    %222 = vector.multi_reduction <add>, %221, %cst_65 [1] : vector<16x8xf32> to vector<16xf32>
    %223 = vector.shape_cast %222 : vector<16xf32> to vector<16x1xf32>
    %224 = tpu.concatenate %191, %195, %199, %203, %207, %211, %215, %219, %223 in 1 : vector<16x1xf32>, vector<16x1xf32>, vector<16x1xf32>, vector<16x1xf32>, vector<16x1xf32>, vector<16x1xf32>, vector<16x1xf32>, vector<16x1xf32>, vector<16x1xf32> -> vector<16x9xf32>
    %225 = vector.shape_cast %110 : vector<16x9xf32> to vector<1x16x9xf32>
    %226 = vector.shape_cast %148 : vector<16x9xf32> to vector<1x16x9xf32>
    %227 = vector.shape_cast %186 : vector<16x9xf32> to vector<1x16x9xf32>
    %228 = vector.shape_cast %224 : vector<16x9xf32> to vector<1x16x9xf32>
    %229 = tpu.concatenate %225, %226, %227, %228 in 0 : vector<1x16x9xf32>, vector<1x16x9xf32>, vector<1x16x9xf32>, vector<1x16x9xf32> -> vector<4x16x9xf32>
    %c0_66 = arith.constant 0 : index
    %c0_67 = arith.constant 0 : index
    %c0_68 = arith.constant 0 : index
    %230 = vector.load %arg7[%c0_66, %c0_67, %c0_68] : memref<1x4x9xf32, #tpu.memory_space<vmem>>, vector<1x4x9xf32>
    %231 = vector.shape_cast %230 : vector<1x4x9xf32> to vector<4x9xf32>
    %232 = vector.shape_cast %231 : vector<4x9xf32> to vector<4x1x9xf32>
    %233 = vector.broadcast %232 : vector<4x1x9xf32> to vector<4x16x9xf32>
    %234 = arith.addf %229, %233 : vector<4x16x9xf32>
    %235 = vector.shape_cast %56 : vector<16x9xi1> to vector<1x16x9xi1>
    %cst_69 = arith.constant -1.000000e+30 : f32
    %236 = vector.shape_cast %235 : vector<1x16x9xi1> to vector<1x16x9xi1>
    %237 = vector.broadcast %236 : vector<1x16x9xi1> to vector<4x16x9xi1>
    %238 = vector.broadcast %cst_69 : f32 to vector<4x16x9xf32>
    %239 = arith.select %237, %234, %238 : vector<4x16x9xi1>, vector<4x16x9xf32>
    %cst_70 = arith.constant dense<0xFF800000> : vector<4x16xf32>
    %240 = vector.multi_reduction <maximumf>, %239, %cst_70 [2] : vector<4x16x9xf32> to vector<4x16xf32>
    %241 = vector.shape_cast %240 : vector<4x16xf32> to vector<4x16x1xf32>
    %242 = vector.broadcast %241 : vector<4x16x1xf32> to vector<4x16x9xf32>
    %243 = arith.subf %239, %242 : vector<4x16x9xf32>
    %244 = math.exp %243 : vector<4x16x9xf32>
    %cst_71 = arith.constant dense<0.000000e+00> : vector<4x16xf32>
    %245 = vector.multi_reduction <add>, %244, %cst_71 [2] : vector<4x16x9xf32> to vector<4x16xf32>
    %246 = vector.shape_cast %245 : vector<4x16xf32> to vector<4x16x1xf32>
    %247 = tpu.reciprocal %246 {approx = true} : vector<4x16x1xf32> -> vector<4x16x1xf32>
    %248 = vector.broadcast %247 : vector<4x16x1xf32> to vector<4x16x9xf32>
    %249 = arith.mulf %244, %248 : vector<4x16x9xf32>
    %cst_72 = arith.constant 0.000000e+00 : f32
    %250 = vector.broadcast %cst_72 : f32 to vector<16x8xf32>
    %251 = vector.extract_strided_slice %249 {offsets = [0, 0, 0], sizes = [1, 16, 1], strides = [1, 1, 1]} : vector<4x16x9xf32> to vector<1x16x1xf32>
    %252 = vector.shape_cast %251 : vector<1x16x1xf32> to vector<16x1xf32>
    %253 = vector.extract_strided_slice %58 {offsets = [0, 0], sizes = [16, 8], strides = [1, 1]} : vector<16x32xf32> to vector<16x8xf32>
    %254 = vector.broadcast %252 : vector<16x1xf32> to vector<16x8xf32>
    %255 = arith.mulf %254, %253 : vector<16x8xf32>
    %256 = arith.addf %250, %255 : vector<16x8xf32>
    %257 = vector.extract_strided_slice %249 {offsets = [0, 0, 1], sizes = [1, 16, 1], strides = [1, 1, 1]} : vector<4x16x9xf32> to vector<1x16x1xf32>
    %258 = vector.shape_cast %257 : vector<1x16x1xf32> to vector<16x1xf32>
    %259 = vector.extract_strided_slice %60 {offsets = [0, 0], sizes = [16, 8], strides = [1, 1]} : vector<16x32xf32> to vector<16x8xf32>
    %260 = vector.broadcast %258 : vector<16x1xf32> to vector<16x8xf32>
    %261 = arith.mulf %260, %259 : vector<16x8xf32>
    %262 = arith.addf %256, %261 : vector<16x8xf32>
    %263 = vector.extract_strided_slice %249 {offsets = [0, 0, 2], sizes = [1, 16, 1], strides = [1, 1, 1]} : vector<4x16x9xf32> to vector<1x16x1xf32>
    %264 = vector.shape_cast %263 : vector<1x16x1xf32> to vector<16x1xf32>
    %265 = vector.extract_strided_slice %62 {offsets = [0, 0], sizes = [16, 8], strides = [1, 1]} : vector<16x32xf32> to vector<16x8xf32>
    %266 = vector.broadcast %264 : vector<16x1xf32> to vector<16x8xf32>
    %267 = arith.mulf %266, %265 : vector<16x8xf32>
    %268 = arith.addf %262, %267 : vector<16x8xf32>
    %269 = vector.extract_strided_slice %249 {offsets = [0, 0, 3], sizes = [1, 16, 1], strides = [1, 1, 1]} : vector<4x16x9xf32> to vector<1x16x1xf32>
    %270 = vector.shape_cast %269 : vector<1x16x1xf32> to vector<16x1xf32>
    %271 = vector.extract_strided_slice %64 {offsets = [0, 0], sizes = [16, 8], strides = [1, 1]} : vector<16x32xf32> to vector<16x8xf32>
    %272 = vector.broadcast %270 : vector<16x1xf32> to vector<16x8xf32>
    %273 = arith.mulf %272, %271 : vector<16x8xf32>
    %274 = arith.addf %268, %273 : vector<16x8xf32>
    %275 = vector.extract_strided_slice %249 {offsets = [0, 0, 4], sizes = [1, 16, 1], strides = [1, 1, 1]} : vector<4x16x9xf32> to vector<1x16x1xf32>
    %276 = vector.shape_cast %275 : vector<1x16x1xf32> to vector<16x1xf32>
    %277 = vector.extract_strided_slice %40 {offsets = [0, 0], sizes = [16, 8], strides = [1, 1]} : vector<16x32xf32> to vector<16x8xf32>
    %278 = vector.broadcast %276 : vector<16x1xf32> to vector<16x8xf32>
    %279 = arith.mulf %278, %277 : vector<16x8xf32>
    %280 = arith.addf %274, %279 : vector<16x8xf32>
    %281 = vector.extract_strided_slice %249 {offsets = [0, 0, 5], sizes = [1, 16, 1], strides = [1, 1, 1]} : vector<4x16x9xf32> to vector<1x16x1xf32>
    %282 = vector.shape_cast %281 : vector<1x16x1xf32> to vector<16x1xf32>
    %283 = vector.extract_strided_slice %66 {offsets = [0, 0], sizes = [16, 8], strides = [1, 1]} : vector<16x32xf32> to vector<16x8xf32>
    %284 = vector.broadcast %282 : vector<16x1xf32> to vector<16x8xf32>
    %285 = arith.mulf %284, %283 : vector<16x8xf32>
    %286 = arith.addf %280, %285 : vector<16x8xf32>
    %287 = vector.extract_strided_slice %249 {offsets = [0, 0, 6], sizes = [1, 16, 1], strides = [1, 1, 1]} : vector<4x16x9xf32> to vector<1x16x1xf32>
    %288 = vector.shape_cast %287 : vector<1x16x1xf32> to vector<16x1xf32>
    %289 = vector.extract_strided_slice %68 {offsets = [0, 0], sizes = [16, 8], strides = [1, 1]} : vector<16x32xf32> to vector<16x8xf32>
    %290 = vector.broadcast %288 : vector<16x1xf32> to vector<16x8xf32>
    %291 = arith.mulf %290, %289 : vector<16x8xf32>
    %292 = arith.addf %286, %291 : vector<16x8xf32>
    %293 = vector.extract_strided_slice %249 {offsets = [0, 0, 7], sizes = [1, 16, 1], strides = [1, 1, 1]} : vector<4x16x9xf32> to vector<1x16x1xf32>
    %294 = vector.shape_cast %293 : vector<1x16x1xf32> to vector<16x1xf32>
    %295 = vector.extract_strided_slice %70 {offsets = [0, 0], sizes = [16, 8], strides = [1, 1]} : vector<16x32xf32> to vector<16x8xf32>
    %296 = vector.broadcast %294 : vector<16x1xf32> to vector<16x8xf32>
    %297 = arith.mulf %296, %295 : vector<16x8xf32>
    %298 = arith.addf %292, %297 : vector<16x8xf32>
    %299 = vector.extract_strided_slice %249 {offsets = [0, 0, 8], sizes = [1, 16, 1], strides = [1, 1, 1]} : vector<4x16x9xf32> to vector<1x16x1xf32>
    %300 = vector.shape_cast %299 : vector<1x16x1xf32> to vector<16x1xf32>
    %301 = vector.extract_strided_slice %72 {offsets = [0, 0], sizes = [16, 8], strides = [1, 1]} : vector<16x32xf32> to vector<16x8xf32>
    %302 = vector.broadcast %300 : vector<16x1xf32> to vector<16x8xf32>
    %303 = arith.mulf %302, %301 : vector<16x8xf32>
    %304 = arith.addf %298, %303 : vector<16x8xf32>
    %cst_73 = arith.constant 0.000000e+00 : f32
    %305 = vector.broadcast %cst_73 : f32 to vector<16x8xf32>
    %306 = vector.extract_strided_slice %249 {offsets = [1, 0, 0], sizes = [1, 16, 1], strides = [1, 1, 1]} : vector<4x16x9xf32> to vector<1x16x1xf32>
    %307 = vector.shape_cast %306 : vector<1x16x1xf32> to vector<16x1xf32>
    %308 = vector.extract_strided_slice %58 {offsets = [0, 8], sizes = [16, 8], strides = [1, 1]} : vector<16x32xf32> to vector<16x8xf32>
    %309 = vector.broadcast %307 : vector<16x1xf32> to vector<16x8xf32>
    %310 = arith.mulf %309, %308 : vector<16x8xf32>
    %311 = arith.addf %305, %310 : vector<16x8xf32>
    %312 = vector.extract_strided_slice %249 {offsets = [1, 0, 1], sizes = [1, 16, 1], strides = [1, 1, 1]} : vector<4x16x9xf32> to vector<1x16x1xf32>
    %313 = vector.shape_cast %312 : vector<1x16x1xf32> to vector<16x1xf32>
    %314 = vector.extract_strided_slice %60 {offsets = [0, 8], sizes = [16, 8], strides = [1, 1]} : vector<16x32xf32> to vector<16x8xf32>
    %315 = vector.broadcast %313 : vector<16x1xf32> to vector<16x8xf32>
    %316 = arith.mulf %315, %314 : vector<16x8xf32>
    %317 = arith.addf %311, %316 : vector<16x8xf32>
    %318 = vector.extract_strided_slice %249 {offsets = [1, 0, 2], sizes = [1, 16, 1], strides = [1, 1, 1]} : vector<4x16x9xf32> to vector<1x16x1xf32>
    %319 = vector.shape_cast %318 : vector<1x16x1xf32> to vector<16x1xf32>
    %320 = vector.extract_strided_slice %62 {offsets = [0, 8], sizes = [16, 8], strides = [1, 1]} : vector<16x32xf32> to vector<16x8xf32>
    %321 = vector.broadcast %319 : vector<16x1xf32> to vector<16x8xf32>
    %322 = arith.mulf %321, %320 : vector<16x8xf32>
    %323 = arith.addf %317, %322 : vector<16x8xf32>
    %324 = vector.extract_strided_slice %249 {offsets = [1, 0, 3], sizes = [1, 16, 1], strides = [1, 1, 1]} : vector<4x16x9xf32> to vector<1x16x1xf32>
    %325 = vector.shape_cast %324 : vector<1x16x1xf32> to vector<16x1xf32>
    %326 = vector.extract_strided_slice %64 {offsets = [0, 8], sizes = [16, 8], strides = [1, 1]} : vector<16x32xf32> to vector<16x8xf32>
    %327 = vector.broadcast %325 : vector<16x1xf32> to vector<16x8xf32>
    %328 = arith.mulf %327, %326 : vector<16x8xf32>
    %329 = arith.addf %323, %328 : vector<16x8xf32>
    %330 = vector.extract_strided_slice %249 {offsets = [1, 0, 4], sizes = [1, 16, 1], strides = [1, 1, 1]} : vector<4x16x9xf32> to vector<1x16x1xf32>
    %331 = vector.shape_cast %330 : vector<1x16x1xf32> to vector<16x1xf32>
    %332 = vector.extract_strided_slice %40 {offsets = [0, 8], sizes = [16, 8], strides = [1, 1]} : vector<16x32xf32> to vector<16x8xf32>
    %333 = vector.broadcast %331 : vector<16x1xf32> to vector<16x8xf32>
    %334 = arith.mulf %333, %332 : vector<16x8xf32>
    %335 = arith.addf %329, %334 : vector<16x8xf32>
    %336 = vector.extract_strided_slice %249 {offsets = [1, 0, 5], sizes = [1, 16, 1], strides = [1, 1, 1]} : vector<4x16x9xf32> to vector<1x16x1xf32>
    %337 = vector.shape_cast %336 : vector<1x16x1xf32> to vector<16x1xf32>
    %338 = vector.extract_strided_slice %66 {offsets = [0, 8], sizes = [16, 8], strides = [1, 1]} : vector<16x32xf32> to vector<16x8xf32>
    %339 = vector.broadcast %337 : vector<16x1xf32> to vector<16x8xf32>
    %340 = arith.mulf %339, %338 : vector<16x8xf32>
    %341 = arith.addf %335, %340 : vector<16x8xf32>
    %342 = vector.extract_strided_slice %249 {offsets = [1, 0, 6], sizes = [1, 16, 1], strides = [1, 1, 1]} : vector<4x16x9xf32> to vector<1x16x1xf32>
    %343 = vector.shape_cast %342 : vector<1x16x1xf32> to vector<16x1xf32>
    %344 = vector.extract_strided_slice %68 {offsets = [0, 8], sizes = [16, 8], strides = [1, 1]} : vector<16x32xf32> to vector<16x8xf32>
    %345 = vector.broadcast %343 : vector<16x1xf32> to vector<16x8xf32>
    %346 = arith.mulf %345, %344 : vector<16x8xf32>
    %347 = arith.addf %341, %346 : vector<16x8xf32>
    %348 = vector.extract_strided_slice %249 {offsets = [1, 0, 7], sizes = [1, 16, 1], strides = [1, 1, 1]} : vector<4x16x9xf32> to vector<1x16x1xf32>
    %349 = vector.shape_cast %348 : vector<1x16x1xf32> to vector<16x1xf32>
    %350 = vector.extract_strided_slice %70 {offsets = [0, 8], sizes = [16, 8], strides = [1, 1]} : vector<16x32xf32> to vector<16x8xf32>
    %351 = vector.broadcast %349 : vector<16x1xf32> to vector<16x8xf32>
    %352 = arith.mulf %351, %350 : vector<16x8xf32>
    %353 = arith.addf %347, %352 : vector<16x8xf32>
    %354 = vector.extract_strided_slice %249 {offsets = [1, 0, 8], sizes = [1, 16, 1], strides = [1, 1, 1]} : vector<4x16x9xf32> to vector<1x16x1xf32>
    %355 = vector.shape_cast %354 : vector<1x16x1xf32> to vector<16x1xf32>
    %356 = vector.extract_strided_slice %72 {offsets = [0, 8], sizes = [16, 8], strides = [1, 1]} : vector<16x32xf32> to vector<16x8xf32>
    %357 = vector.broadcast %355 : vector<16x1xf32> to vector<16x8xf32>
    %358 = arith.mulf %357, %356 : vector<16x8xf32>
    %359 = arith.addf %353, %358 : vector<16x8xf32>
    %cst_74 = arith.constant 0.000000e+00 : f32
    %360 = vector.broadcast %cst_74 : f32 to vector<16x8xf32>
    %361 = vector.extract_strided_slice %249 {offsets = [2, 0, 0], sizes = [1, 16, 1], strides = [1, 1, 1]} : vector<4x16x9xf32> to vector<1x16x1xf32>
    %362 = vector.shape_cast %361 : vector<1x16x1xf32> to vector<16x1xf32>
    %363 = vector.extract_strided_slice %58 {offsets = [0, 16], sizes = [16, 8], strides = [1, 1]} : vector<16x32xf32> to vector<16x8xf32>
    %364 = vector.broadcast %362 : vector<16x1xf32> to vector<16x8xf32>
    %365 = arith.mulf %364, %363 : vector<16x8xf32>
    %366 = arith.addf %360, %365 : vector<16x8xf32>
    %367 = vector.extract_strided_slice %249 {offsets = [2, 0, 1], sizes = [1, 16, 1], strides = [1, 1, 1]} : vector<4x16x9xf32> to vector<1x16x1xf32>
    %368 = vector.shape_cast %367 : vector<1x16x1xf32> to vector<16x1xf32>
    %369 = vector.extract_strided_slice %60 {offsets = [0, 16], sizes = [16, 8], strides = [1, 1]} : vector<16x32xf32> to vector<16x8xf32>
    %370 = vector.broadcast %368 : vector<16x1xf32> to vector<16x8xf32>
    %371 = arith.mulf %370, %369 : vector<16x8xf32>
    %372 = arith.addf %366, %371 : vector<16x8xf32>
    %373 = vector.extract_strided_slice %249 {offsets = [2, 0, 2], sizes = [1, 16, 1], strides = [1, 1, 1]} : vector<4x16x9xf32> to vector<1x16x1xf32>
    %374 = vector.shape_cast %373 : vector<1x16x1xf32> to vector<16x1xf32>
    %375 = vector.extract_strided_slice %62 {offsets = [0, 16], sizes = [16, 8], strides = [1, 1]} : vector<16x32xf32> to vector<16x8xf32>
    %376 = vector.broadcast %374 : vector<16x1xf32> to vector<16x8xf32>
    %377 = arith.mulf %376, %375 : vector<16x8xf32>
    %378 = arith.addf %372, %377 : vector<16x8xf32>
    %379 = vector.extract_strided_slice %249 {offsets = [2, 0, 3], sizes = [1, 16, 1], strides = [1, 1, 1]} : vector<4x16x9xf32> to vector<1x16x1xf32>
    %380 = vector.shape_cast %379 : vector<1x16x1xf32> to vector<16x1xf32>
    %381 = vector.extract_strided_slice %64 {offsets = [0, 16], sizes = [16, 8], strides = [1, 1]} : vector<16x32xf32> to vector<16x8xf32>
    %382 = vector.broadcast %380 : vector<16x1xf32> to vector<16x8xf32>
    %383 = arith.mulf %382, %381 : vector<16x8xf32>
    %384 = arith.addf %378, %383 : vector<16x8xf32>
    %385 = vector.extract_strided_slice %249 {offsets = [2, 0, 4], sizes = [1, 16, 1], strides = [1, 1, 1]} : vector<4x16x9xf32> to vector<1x16x1xf32>
    %386 = vector.shape_cast %385 : vector<1x16x1xf32> to vector<16x1xf32>
    %387 = vector.extract_strided_slice %40 {offsets = [0, 16], sizes = [16, 8], strides = [1, 1]} : vector<16x32xf32> to vector<16x8xf32>
    %388 = vector.broadcast %386 : vector<16x1xf32> to vector<16x8xf32>
    %389 = arith.mulf %388, %387 : vector<16x8xf32>
    %390 = arith.addf %384, %389 : vector<16x8xf32>
    %391 = vector.extract_strided_slice %249 {offsets = [2, 0, 5], sizes = [1, 16, 1], strides = [1, 1, 1]} : vector<4x16x9xf32> to vector<1x16x1xf32>
    %392 = vector.shape_cast %391 : vector<1x16x1xf32> to vector<16x1xf32>
    %393 = vector.extract_strided_slice %66 {offsets = [0, 16], sizes = [16, 8], strides = [1, 1]} : vector<16x32xf32> to vector<16x8xf32>
    %394 = vector.broadcast %392 : vector<16x1xf32> to vector<16x8xf32>
    %395 = arith.mulf %394, %393 : vector<16x8xf32>
    %396 = arith.addf %390, %395 : vector<16x8xf32>
    %397 = vector.extract_strided_slice %249 {offsets = [2, 0, 6], sizes = [1, 16, 1], strides = [1, 1, 1]} : vector<4x16x9xf32> to vector<1x16x1xf32>
    %398 = vector.shape_cast %397 : vector<1x16x1xf32> to vector<16x1xf32>
    %399 = vector.extract_strided_slice %68 {offsets = [0, 16], sizes = [16, 8], strides = [1, 1]} : vector<16x32xf32> to vector<16x8xf32>
    %400 = vector.broadcast %398 : vector<16x1xf32> to vector<16x8xf32>
    %401 = arith.mulf %400, %399 : vector<16x8xf32>
    %402 = arith.addf %396, %401 : vector<16x8xf32>
    %403 = vector.extract_strided_slice %249 {offsets = [2, 0, 7], sizes = [1, 16, 1], strides = [1, 1, 1]} : vector<4x16x9xf32> to vector<1x16x1xf32>
    %404 = vector.shape_cast %403 : vector<1x16x1xf32> to vector<16x1xf32>
    %405 = vector.extract_strided_slice %70 {offsets = [0, 16], sizes = [16, 8], strides = [1, 1]} : vector<16x32xf32> to vector<16x8xf32>
    %406 = vector.broadcast %404 : vector<16x1xf32> to vector<16x8xf32>
    %407 = arith.mulf %406, %405 : vector<16x8xf32>
    %408 = arith.addf %402, %407 : vector<16x8xf32>
    %409 = vector.extract_strided_slice %249 {offsets = [2, 0, 8], sizes = [1, 16, 1], strides = [1, 1, 1]} : vector<4x16x9xf32> to vector<1x16x1xf32>
    %410 = vector.shape_cast %409 : vector<1x16x1xf32> to vector<16x1xf32>
    %411 = vector.extract_strided_slice %72 {offsets = [0, 16], sizes = [16, 8], strides = [1, 1]} : vector<16x32xf32> to vector<16x8xf32>
    %412 = vector.broadcast %410 : vector<16x1xf32> to vector<16x8xf32>
    %413 = arith.mulf %412, %411 : vector<16x8xf32>
    %414 = arith.addf %408, %413 : vector<16x8xf32>
    %cst_75 = arith.constant 0.000000e+00 : f32
    %415 = vector.broadcast %cst_75 : f32 to vector<16x8xf32>
    %416 = vector.extract_strided_slice %249 {offsets = [3, 0, 0], sizes = [1, 16, 1], strides = [1, 1, 1]} : vector<4x16x9xf32> to vector<1x16x1xf32>
    %417 = vector.shape_cast %416 : vector<1x16x1xf32> to vector<16x1xf32>
    %418 = vector.extract_strided_slice %58 {offsets = [0, 24], sizes = [16, 8], strides = [1, 1]} : vector<16x32xf32> to vector<16x8xf32>
    %419 = vector.broadcast %417 : vector<16x1xf32> to vector<16x8xf32>
    %420 = arith.mulf %419, %418 : vector<16x8xf32>
    %421 = arith.addf %415, %420 : vector<16x8xf32>
    %422 = vector.extract_strided_slice %249 {offsets = [3, 0, 1], sizes = [1, 16, 1], strides = [1, 1, 1]} : vector<4x16x9xf32> to vector<1x16x1xf32>
    %423 = vector.shape_cast %422 : vector<1x16x1xf32> to vector<16x1xf32>
    %424 = vector.extract_strided_slice %60 {offsets = [0, 24], sizes = [16, 8], strides = [1, 1]} : vector<16x32xf32> to vector<16x8xf32>
    %425 = vector.broadcast %423 : vector<16x1xf32> to vector<16x8xf32>
    %426 = arith.mulf %425, %424 : vector<16x8xf32>
    %427 = arith.addf %421, %426 : vector<16x8xf32>
    %428 = vector.extract_strided_slice %249 {offsets = [3, 0, 2], sizes = [1, 16, 1], strides = [1, 1, 1]} : vector<4x16x9xf32> to vector<1x16x1xf32>
    %429 = vector.shape_cast %428 : vector<1x16x1xf32> to vector<16x1xf32>
    %430 = vector.extract_strided_slice %62 {offsets = [0, 24], sizes = [16, 8], strides = [1, 1]} : vector<16x32xf32> to vector<16x8xf32>
    %431 = vector.broadcast %429 : vector<16x1xf32> to vector<16x8xf32>
    %432 = arith.mulf %431, %430 : vector<16x8xf32>
    %433 = arith.addf %427, %432 : vector<16x8xf32>
    %434 = vector.extract_strided_slice %249 {offsets = [3, 0, 3], sizes = [1, 16, 1], strides = [1, 1, 1]} : vector<4x16x9xf32> to vector<1x16x1xf32>
    %435 = vector.shape_cast %434 : vector<1x16x1xf32> to vector<16x1xf32>
    %436 = vector.extract_strided_slice %64 {offsets = [0, 24], sizes = [16, 8], strides = [1, 1]} : vector<16x32xf32> to vector<16x8xf32>
    %437 = vector.broadcast %435 : vector<16x1xf32> to vector<16x8xf32>
    %438 = arith.mulf %437, %436 : vector<16x8xf32>
    %439 = arith.addf %433, %438 : vector<16x8xf32>
    %440 = vector.extract_strided_slice %249 {offsets = [3, 0, 4], sizes = [1, 16, 1], strides = [1, 1, 1]} : vector<4x16x9xf32> to vector<1x16x1xf32>
    %441 = vector.shape_cast %440 : vector<1x16x1xf32> to vector<16x1xf32>
    %442 = vector.extract_strided_slice %40 {offsets = [0, 24], sizes = [16, 8], strides = [1, 1]} : vector<16x32xf32> to vector<16x8xf32>
    %443 = vector.broadcast %441 : vector<16x1xf32> to vector<16x8xf32>
    %444 = arith.mulf %443, %442 : vector<16x8xf32>
    %445 = arith.addf %439, %444 : vector<16x8xf32>
    %446 = vector.extract_strided_slice %249 {offsets = [3, 0, 5], sizes = [1, 16, 1], strides = [1, 1, 1]} : vector<4x16x9xf32> to vector<1x16x1xf32>
    %447 = vector.shape_cast %446 : vector<1x16x1xf32> to vector<16x1xf32>
    %448 = vector.extract_strided_slice %66 {offsets = [0, 24], sizes = [16, 8], strides = [1, 1]} : vector<16x32xf32> to vector<16x8xf32>
    %449 = vector.broadcast %447 : vector<16x1xf32> to vector<16x8xf32>
    %450 = arith.mulf %449, %448 : vector<16x8xf32>
    %451 = arith.addf %445, %450 : vector<16x8xf32>
    %452 = vector.extract_strided_slice %249 {offsets = [3, 0, 6], sizes = [1, 16, 1], strides = [1, 1, 1]} : vector<4x16x9xf32> to vector<1x16x1xf32>
    %453 = vector.shape_cast %452 : vector<1x16x1xf32> to vector<16x1xf32>
    %454 = vector.extract_strided_slice %68 {offsets = [0, 24], sizes = [16, 8], strides = [1, 1]} : vector<16x32xf32> to vector<16x8xf32>
    %455 = vector.broadcast %453 : vector<16x1xf32> to vector<16x8xf32>
    %456 = arith.mulf %455, %454 : vector<16x8xf32>
    %457 = arith.addf %451, %456 : vector<16x8xf32>
    %458 = vector.extract_strided_slice %249 {offsets = [3, 0, 7], sizes = [1, 16, 1], strides = [1, 1, 1]} : vector<4x16x9xf32> to vector<1x16x1xf32>
    %459 = vector.shape_cast %458 : vector<1x16x1xf32> to vector<16x1xf32>
    %460 = vector.extract_strided_slice %70 {offsets = [0, 24], sizes = [16, 8], strides = [1, 1]} : vector<16x32xf32> to vector<16x8xf32>
    %461 = vector.broadcast %459 : vector<16x1xf32> to vector<16x8xf32>
    %462 = arith.mulf %461, %460 : vector<16x8xf32>
    %463 = arith.addf %457, %462 : vector<16x8xf32>
    %464 = vector.extract_strided_slice %249 {offsets = [3, 0, 8], sizes = [1, 16, 1], strides = [1, 1, 1]} : vector<4x16x9xf32> to vector<1x16x1xf32>
    %465 = vector.shape_cast %464 : vector<1x16x1xf32> to vector<16x1xf32>
    %466 = vector.extract_strided_slice %72 {offsets = [0, 24], sizes = [16, 8], strides = [1, 1]} : vector<16x32xf32> to vector<16x8xf32>
    %467 = vector.broadcast %465 : vector<16x1xf32> to vector<16x8xf32>
    %468 = arith.mulf %467, %466 : vector<16x8xf32>
    %469 = arith.addf %463, %468 : vector<16x8xf32>
    %470 = tpu.concatenate %304, %359, %414, %469 in 1 : vector<16x8xf32>, vector<16x8xf32>, vector<16x8xf32>, vector<16x8xf32> -> vector<16x32xf32>
    %471 = arith.truncf %470 : vector<16x32xf32> to vector<16x32xbf16>
    %c0_76 = arith.constant 0 : index
    %c0_77 = arith.constant 0 : index
    %c0_78 = arith.constant 0 : index
    %472 = vector.load %arg8[%c0_76, %c0_77, %c0_78] : memref<1x32x32xbf16, #tpu.memory_space<vmem>>, vector<1x32x32xbf16>
    %473 = vector.shape_cast %472 : vector<1x32x32xbf16> to vector<32x32xbf16>
    %cst_79 = arith.constant dense<0.000000e+00> : vector<16x32xf32>
    %474 = tpu.matmul %471, %473, %cst_79 {dimension_numbers = #tpu.dot_dimension_numbers<[1], [0], [0], [1], [0, 0, 1, 1], [], []>} : vector<16x32xbf16>, vector<32x32xbf16>, vector<16x32xf32> -> vector<16x32xf32>
    %c0_80 = arith.constant 0 : index
    %c0_81 = arith.constant 0 : index
    %c0_82 = arith.constant 0 : index
    %475 = vector.load %arg9[%c0_80, %c0_81, %c0_82] : memref<1x1x32xf32, #tpu.memory_space<vmem>>, vector<1x1x32xf32>
    %476 = vector.shape_cast %475 : vector<1x1x32xf32> to vector<1x32xf32>
    %477 = vector.broadcast %476 : vector<1x32xf32> to vector<16x32xf32>
    %478 = arith.addf %474, %477 : vector<16x32xf32>
    %479 = arith.addf %3, %478 : vector<16x32xf32>
    %c0_83 = arith.constant 0 : index
    %c0_84 = arith.constant 0 : index
    %c0_85 = arith.constant 0 : index
    %480 = vector.load %arg10[%c0_83, %c0_84, %c0_85] : memref<1x1x32xf32, #tpu.memory_space<vmem>>, vector<1x1x32xf32>
    %481 = vector.shape_cast %480 : vector<1x1x32xf32> to vector<1x32xf32>
    %c0_86 = arith.constant 0 : index
    %c0_87 = arith.constant 0 : index
    %c0_88 = arith.constant 0 : index
    %482 = vector.load %arg11[%c0_86, %c0_87, %c0_88] : memref<1x1x32xf32, #tpu.memory_space<vmem>>, vector<1x1x32xf32>
    %483 = vector.shape_cast %482 : vector<1x1x32xf32> to vector<1x32xf32>
    %cst_89 = arith.constant dense<0.000000e+00> : vector<16xf32>
    %484 = vector.multi_reduction <add>, %479, %cst_89 [1] : vector<16x32xf32> to vector<16xf32>
    %485 = vector.shape_cast %484 : vector<16xf32> to vector<16x1xf32>
    %cst_90 = arith.constant 3.200000e+01 : f32
    %486 = vector.broadcast %cst_90 : f32 to vector<16x1xf32>
    %487 = arith.divf %485, %486 : vector<16x1xf32>
    %488 = vector.broadcast %487 : vector<16x1xf32> to vector<16x32xf32>
    %489 = arith.subf %479, %488 : vector<16x32xf32>
    %490 = arith.mulf %489, %489 : vector<16x32xf32>
    %cst_91 = arith.constant dense<0.000000e+00> : vector<16xf32>
    %491 = vector.multi_reduction <add>, %490, %cst_91 [1] : vector<16x32xf32> to vector<16xf32>
    %492 = vector.shape_cast %491 : vector<16xf32> to vector<16x1xf32>
    %cst_92 = arith.constant 3.200000e+01 : f32
    %493 = vector.broadcast %cst_92 : f32 to vector<16x1xf32>
    %494 = arith.divf %492, %493 : vector<16x1xf32>
    %495 = vector.broadcast %487 : vector<16x1xf32> to vector<16x32xf32>
    %496 = arith.subf %479, %495 : vector<16x32xf32>
    %cst_93 = arith.constant 9.99999974E-6 : f32
    %497 = vector.broadcast %cst_93 : f32 to vector<16x1xf32>
    %498 = arith.addf %494, %497 : vector<16x1xf32>
    %499 = math.rsqrt %498 : vector<16x1xf32>
    %500 = vector.broadcast %499 : vector<16x1xf32> to vector<16x32xf32>
    %501 = arith.mulf %496, %500 : vector<16x32xf32>
    %502 = vector.broadcast %481 : vector<1x32xf32> to vector<16x32xf32>
    %503 = arith.mulf %501, %502 : vector<16x32xf32>
    %504 = vector.broadcast %483 : vector<1x32xf32> to vector<16x32xf32>
    %505 = arith.addf %503, %504 : vector<16x32xf32>
    %506 = arith.truncf %505 : vector<16x32xf32> to vector<16x32xbf16>
    %c0_94 = arith.constant 0 : index
    %c0_95 = arith.constant 0 : index
    %c0_96 = arith.constant 0 : index
    %507 = vector.load %arg12[%c0_94, %c0_95, %c0_96] : memref<1x32x128xbf16, #tpu.memory_space<vmem>>, vector<1x32x128xbf16>
    %508 = vector.shape_cast %507 : vector<1x32x128xbf16> to vector<32x128xbf16>
    %cst_97 = arith.constant dense<0.000000e+00> : vector<16x128xf32>
    %509 = tpu.matmul %506, %508, %cst_97 {dimension_numbers = #tpu.dot_dimension_numbers<[1], [0], [0], [1], [0, 0, 1, 1], [], []>} : vector<16x32xbf16>, vector<32x128xbf16>, vector<16x128xf32> -> vector<16x128xf32>
    %c0_98 = arith.constant 0 : index
    %c0_99 = arith.constant 0 : index
    %c0_100 = arith.constant 0 : index
    %510 = vector.load %arg13[%c0_98, %c0_99, %c0_100] : memref<1x1x128xf32, #tpu.memory_space<vmem>>, vector<1x1x128xf32>
    %511 = vector.shape_cast %510 : vector<1x1x128xf32> to vector<1x128xf32>
    %512 = vector.broadcast %511 : vector<1x128xf32> to vector<16x128xf32>
    %513 = arith.addf %509, %512 : vector<16x128xf32>
    %514 = arith.mulf %513, %513 : vector<16x128xf32>
    %515 = arith.mulf %513, %514 : vector<16x128xf32>
    %cst_101 = arith.constant 4.471500e-02 : f32
    %516 = vector.broadcast %cst_101 : f32 to vector<16x128xf32>
    %517 = arith.mulf %516, %515 : vector<16x128xf32>
    %518 = arith.addf %513, %517 : vector<16x128xf32>
    %cst_102 = arith.constant 0.797884583 : f32
    %519 = vector.broadcast %cst_102 : f32 to vector<16x128xf32>
    %520 = arith.mulf %519, %518 : vector<16x128xf32>
    %521 = math.tanh %520 : vector<16x128xf32>
    %cst_103 = arith.constant 1.000000e+00 : f32
    %522 = vector.broadcast %cst_103 : f32 to vector<16x128xf32>
    %523 = arith.addf %522, %521 : vector<16x128xf32>
    %cst_104 = arith.constant 5.000000e-01 : f32
    %524 = vector.broadcast %cst_104 : f32 to vector<16x128xf32>
    %525 = arith.mulf %524, %523 : vector<16x128xf32>
    %526 = arith.mulf %513, %525 : vector<16x128xf32>
    %527 = arith.truncf %526 : vector<16x128xf32> to vector<16x128xbf16>
    %c0_105 = arith.constant 0 : index
    %c0_106 = arith.constant 0 : index
    %c0_107 = arith.constant 0 : index
    %528 = vector.load %arg14[%c0_105, %c0_106, %c0_107] : memref<1x128x32xbf16, #tpu.memory_space<vmem>>, vector<1x128x32xbf16>
    %529 = vector.shape_cast %528 : vector<1x128x32xbf16> to vector<128x32xbf16>
    %cst_108 = arith.constant dense<0.000000e+00> : vector<16x32xf32>
    %530 = tpu.matmul %527, %529, %cst_108 {dimension_numbers = #tpu.dot_dimension_numbers<[1], [0], [0], [1], [0, 0, 1, 1], [], []>} : vector<16x128xbf16>, vector<128x32xbf16>, vector<16x32xf32> -> vector<16x32xf32>
    %c0_109 = arith.constant 0 : index
    %c0_110 = arith.constant 0 : index
    %c0_111 = arith.constant 0 : index
    %531 = vector.load %arg15[%c0_109, %c0_110, %c0_111] : memref<1x1x32xf32, #tpu.memory_space<vmem>>, vector<1x1x32xf32>
    %532 = vector.shape_cast %531 : vector<1x1x32xf32> to vector<1x32xf32>
    %533 = vector.broadcast %532 : vector<1x32xf32> to vector<16x32xf32>
    %534 = arith.addf %530, %533 : vector<16x32xf32>
    %535 = arith.addf %479, %534 : vector<16x32xf32>
    %c0_112 = arith.constant 0 : index
    %c0_113 = arith.constant 0 : index
    %536 = vector.load %arg21[%c0_112, %c0_113] : memref<16x32xf32, #tpu.memory_space<vmem>>, vector<16x32xf32>
    tpu.vector_store %arg21[%c0_112, %c0_113], %535 {strides = array<i32>} : memref<16x32xf32, #tpu.memory_space<vmem>>, vector<16x32xf32>,
    %c1_i32_114 = arith.constant 1 : i32
    %537 = arith.cmpi eq, %arg1, %c1_i32_114 : i32
    %538 = arith.extui %537 : i1 to i32
    %c0_i32_115 = arith.constant 0 : i32
    %539 = arith.cmpi ne, %538, %c0_i32_115 : i32
    scf.if %539 {
      %c0_116 = arith.constant 0 : index
      %c0_117 = arith.constant 0 : index
      %c0_118 = arith.constant 0 : index
      %540 = vector.load %arg20[%c0_116, %c0_117, %c0_118] : memref<1x16x32xf32, #tpu.memory_space<vmem>>, vector<1x16x32xf32>
      %541 = vector.shape_cast %540 : vector<1x16x32xf32> to vector<16x32xf32>
      %542 = vector.shape_cast %535 : vector<16x32xf32> to vector<1x16x32xf32>
      tpu.vector_store %arg20[%c0_116, %c0_117, %c0_118], %542 {strides = array<i32>} : memref<1x16x32xf32, #tpu.memory_space<vmem>>, vector<1x16x32xf32>,
      %c0_119 = arith.constant 0 : index
      %c0_120 = arith.constant 0 : index
      %543 = tpu.strided_load %arg21[%c0_119, %c0_120] {strides = array<i32: 2, 1>} : memref<16x32xf32, #tpu.memory_space<vmem>>, vector<8x32xf32>
      %c1 = arith.constant 1 : index
      %c0_121 = arith.constant 0 : index
      %544 = tpu.strided_load %arg21[%c1, %c0_121] {strides = array<i32: 2, 1>} : memref<16x32xf32, #tpu.memory_space<vmem>>, vector<8x32xf32>
      %c1_i32_122 = arith.constant 1 : i32
      %545 = tpu.dynamic_rotate %544 by %c1_i32_122 dim 0 : vector<8x32xf32>, i32 -> vector<8x32xf32>
      %546 = tpu.iota {dimensions = array<i32: 0>} : vector<8x32xi32>
      %c0_i32_123 = arith.constant 0 : i32
      %547 = vector.broadcast %c0_i32_123 : i32 to vector<8x32xi32>
      %548 = arith.cmpi eq, %546, %547 : vector<8x32xi32>
      %cst_124 = arith.constant 0.000000e+00 : f32
      %549 = vector.broadcast %cst_124 : f32 to vector<8x32xf32>
      %550 = arith.select %548, %549, %545 : vector<8x32xi1>, vector<8x32xf32>
      %551 = tpu.concatenate %550, %543, %544 in 1 : vector<8x32xf32>, vector<8x32xf32>, vector<8x32xf32> -> vector<8x96xf32>
      %552 = arith.truncf %551 : vector<8x96xf32> to vector<8x96xbf16>
      %c0_125 = arith.constant 0 : index
      %c0_126 = arith.constant 0 : index
      %553 = vector.load %arg16[%c0_125, %c0_126] : memref<96x64xbf16, #tpu.memory_space<vmem>>, vector<96x64xbf16>
      %cst_127 = arith.constant dense<0.000000e+00> : vector<8x64xf32>
      %554 = tpu.matmul %552, %553, %cst_127 {dimension_numbers = #tpu.dot_dimension_numbers<[1], [0], [0], [1], [0, 0, 1, 1], [], []>} : vector<8x96xbf16>, vector<96x64xbf16>, vector<8x64xf32> -> vector<8x64xf32>
      %c0_128 = arith.constant 0 : index
      %c0_129 = arith.constant 0 : index
      %555 = vector.load %arg17[%c0_128, %c0_129] : memref<1x64xf32, #tpu.memory_space<vmem>>, vector<1x64xf32>
      %c0_130 = arith.constant 0 : index
      %c0_131 = arith.constant 0 : index
      %556 = vector.load %arg18[%c0_130, %c0_131] : memref<1x64xf32, #tpu.memory_space<vmem>>, vector<1x64xf32>
      %cst_132 = arith.constant dense<0.000000e+00> : vector<8xf32>
      %557 = vector.multi_reduction <add>, %554, %cst_132 [1] : vector<8x64xf32> to vector<8xf32>
      %558 = vector.shape_cast %557 : vector<8xf32> to vector<8x1xf32>
      %cst_133 = arith.constant 6.400000e+01 : f32
      %559 = vector.broadcast %cst_133 : f32 to vector<8x1xf32>
      %560 = arith.divf %558, %559 : vector<8x1xf32>
      %561 = vector.broadcast %560 : vector<8x1xf32> to vector<8x64xf32>
      %562 = arith.subf %554, %561 : vector<8x64xf32>
      %563 = arith.mulf %562, %562 : vector<8x64xf32>
      %cst_134 = arith.constant dense<0.000000e+00> : vector<8xf32>
      %564 = vector.multi_reduction <add>, %563, %cst_134 [1] : vector<8x64xf32> to vector<8xf32>
      %565 = vector.shape_cast %564 : vector<8xf32> to vector<8x1xf32>
      %cst_135 = arith.constant 6.400000e+01 : f32
      %566 = vector.broadcast %cst_135 : f32 to vector<8x1xf32>
      %567 = arith.divf %565, %566 : vector<8x1xf32>
      %568 = vector.broadcast %560 : vector<8x1xf32> to vector<8x64xf32>
      %569 = arith.subf %554, %568 : vector<8x64xf32>
      %cst_136 = arith.constant 9.99999974E-6 : f32
      %570 = vector.broadcast %cst_136 : f32 to vector<8x1xf32>
      %571 = arith.addf %567, %570 : vector<8x1xf32>
      %572 = math.rsqrt %571 : vector<8x1xf32>
      %573 = vector.broadcast %572 : vector<8x1xf32> to vector<8x64xf32>
      %574 = arith.mulf %569, %573 : vector<8x64xf32>
      %575 = vector.broadcast %555 : vector<1x64xf32> to vector<8x64xf32>
      %576 = arith.mulf %574, %575 : vector<8x64xf32>
      %577 = vector.broadcast %556 : vector<1x64xf32> to vector<8x64xf32>
      %578 = arith.addf %576, %577 : vector<8x64xf32>
      %c0_137 = arith.constant 0 : index
      %c0_138 = arith.constant 0 : index
      %c0_139 = arith.constant 0 : index
      %579 = vector.load %arg19[%c0_137, %c0_138, %c0_139] : memref<1x8x64xf32, #tpu.memory_space<vmem>>, vector<1x8x64xf32>
      %580 = vector.shape_cast %579 : vector<1x8x64xf32> to vector<8x64xf32>
      %581 = vector.shape_cast %578 : vector<8x64xf32> to vector<1x8x64xf32>
      tpu.vector_store %arg19[%c0_137, %c0_138, %c0_139], %581 {strides = array<i32>} : memref<1x8x64xf32, #tpu.memory_space<vmem>>, vector<1x8x64xf32>,
    } else {
    }
    return
  }
  func.func @transform_0(%arg0: i32, %arg1: i32) -> (i32, i32, i32) {
    %c0_i32 = arith.constant 0 : i32
    %c0_i32_0 = arith.constant 0 : i32
    %c0_i32_1 = arith.constant 0 : i32
    return %arg0, %c0_i32, %c0_i32_0 : i32, i32, i32
  }
  func.func @transform_1(%arg0: i32, %arg1: i32) -> (i32, i32, i32) {
    %c0_i32 = arith.constant 0 : i32
    %c0_i32_0 = arith.constant 0 : i32
    %c0_i32_1 = arith.constant 0 : i32
    return %arg1, %c0_i32, %c0_i32_0 : i32, i32, i32
  }
  func.func @transform_2(%arg0: i32, %arg1: i32) -> (i32, i32, i32) {
    %c0_i32 = arith.constant 0 : i32
    %c0_i32_0 = arith.constant 0 : i32
    %c0_i32_1 = arith.constant 0 : i32
    return %arg1, %c0_i32, %c0_i32_0 : i32, i32, i32
  }
  func.func @transform_3(%arg0: i32, %arg1: i32) -> (i32, i32, i32) {
    %c0_i32 = arith.constant 0 : i32
    %c0_i32_0 = arith.constant 0 : i32
    %c0_i32_1 = arith.constant 0 : i32
    return %arg1, %c0_i32, %c0_i32_0 : i32, i32, i32
  }
  func.func @transform_4(%arg0: i32, %arg1: i32) -> (i32, i32, i32) {
    %c0_i32 = arith.constant 0 : i32
    %c0_i32_0 = arith.constant 0 : i32
    %c0_i32_1 = arith.constant 0 : i32
    return %arg1, %c0_i32, %c0_i32_0 : i32, i32, i32
  }
  func.func @transform_5(%arg0: i32, %arg1: i32) -> (i32, i32, i32) {
    %c0_i32 = arith.constant 0 : i32
    %c0_i32_0 = arith.constant 0 : i32
    %c0_i32_1 = arith.constant 0 : i32
    return %arg1, %c0_i32, %c0_i32_0 : i32, i32, i32
  }
  func.func @transform_6(%arg0: i32, %arg1: i32) -> (i32, i32, i32) {
    %c0_i32 = arith.constant 0 : i32
    %c0_i32_0 = arith.constant 0 : i32
    %c0_i32_1 = arith.constant 0 : i32
    return %arg1, %c0_i32, %c0_i32_0 : i32, i32, i32
  }
  func.func @transform_7(%arg0: i32, %arg1: i32) -> (i32, i32, i32) {
    %c0_i32 = arith.constant 0 : i32
    %c0_i32_0 = arith.constant 0 : i32
    %c0_i32_1 = arith.constant 0 : i32
    return %arg1, %c0_i32, %c0_i32_0 : i32, i32, i32
  }
  func.func @transform_8(%arg0: i32, %arg1: i32) -> (i32, i32, i32) {
    %c0_i32 = arith.constant 0 : i32
    %c0_i32_0 = arith.constant 0 : i32
    %c0_i32_1 = arith.constant 0 : i32
    return %arg1, %c0_i32, %c0_i32_0 : i32, i32, i32
  }
  func.func @transform_9(%arg0: i32, %arg1: i32) -> (i32, i32, i32) {
    %c0_i32 = arith.constant 0 : i32
    %c0_i32_0 = arith.constant 0 : i32
    %c0_i32_1 = arith.constant 0 : i32
    return %arg1, %c0_i32, %c0_i32_0 : i32, i32, i32
  }
  func.func @transform_10(%arg0: i32, %arg1: i32) -> (i32, i32, i32) {
    %c0_i32 = arith.constant 0 : i32
    %c0_i32_0 = arith.constant 0 : i32
    %c0_i32_1 = arith.constant 0 : i32
    return %arg1, %c0_i32, %c0_i32_0 : i32, i32, i32
  }
  func.func @transform_11(%arg0: i32, %arg1: i32) -> (i32, i32, i32) {
    %c0_i32 = arith.constant 0 : i32
    %c0_i32_0 = arith.constant 0 : i32
    %c0_i32_1 = arith.constant 0 : i32
    return %arg1, %c0_i32, %c0_i32_0 : i32, i32, i32
  }
  func.func @transform_12(%arg0: i32, %arg1: i32) -> (i32, i32, i32) {
    %c0_i32 = arith.constant 0 : i32
    %c0_i32_0 = arith.constant 0 : i32
    %c0_i32_1 = arith.constant 0 : i32
    return %arg1, %c0_i32, %c0_i32_0 : i32, i32, i32
  }
  func.func @transform_13(%arg0: i32, %arg1: i32) -> (i32, i32, i32) {
    %c0_i32 = arith.constant 0 : i32
    %c0_i32_0 = arith.constant 0 : i32
    %c0_i32_1 = arith.constant 0 : i32
    return %arg1, %c0_i32, %c0_i32_0 : i32, i32, i32
  }
  func.func @transform_14(%arg0: i32, %arg1: i32) -> (i32, i32) {
    %c0_i32 = arith.constant 0 : i32
    %c0_i32_0 = arith.constant 0 : i32
    %c0_i32_1 = arith.constant 0 : i32
    return %c0_i32, %c0_i32_0 : i32, i32
  }
  func.func @transform_15(%arg0: i32, %arg1: i32) -> (i32, i32) {
    %c0_i32 = arith.constant 0 : i32
    %c0_i32_0 = arith.constant 0 : i32
    %c0_i32_1 = arith.constant 0 : i32
    return %c0_i32, %c0_i32_0 : i32, i32
  }
  func.func @transform_16(%arg0: i32, %arg1: i32) -> (i32, i32) {
    %c0_i32 = arith.constant 0 : i32
    %c0_i32_0 = arith.constant 0 : i32
    %c0_i32_1 = arith.constant 0 : i32
    return %c0_i32, %c0_i32_0 : i32, i32
  }
  func.func @transform_17(%arg0: i32, %arg1: i32) -> (i32, i32, i32) {
    %c0_i32 = arith.constant 0 : i32
    %c0_i32_0 = arith.constant 0 : i32
    %c0_i32_1 = arith.constant 0 : i32
    return %arg0, %c0_i32, %c0_i32_0 : i32, i32, i32
  }
  func.func @transform_18(%arg0: i32, %arg1: i32) -> (i32, i32, i32) {
    %c0_i32 = arith.constant 0 : i32
    %c0_i32_0 = arith.constant 0 : i32
    %c0_i32_1 = arith.constant 0 : i32
    return %arg0, %c0_i32, %c0_i32_0 : i32, i32, i32
  }
}

</mosaic_0001>

<bundles_post_ra>
// kernel: tpu_custom_call.1
= control target key start
LH: loop header
LB: loop body
LE: loop exit
PB: predicated region body
PF: predicated region fallthrough
CT: control target
= control target key end

     0   :  { %s4750_s0 = inlined_call_operand.vmem [shape: f32[2,16,32], index: 0, kind: input, shape index: {}]   ;;  %s4751_s1 = inlined_call_operand.vmem [shape: f32[2,1,32], index: 1, kind: input, shape index: {}]   ;;  %s4752_s2 = inlined_call_operand.vmem [shape: f32[2,1,32], index: 2, kind: input, shape index: {}]   ;;  %s4753_s3 = inlined_call_operand.vmem [shape: bf16[2,32,96], index: 3, kind: input, shape index: {}]   ;;  %s4754_s4 = inlined_call_operand.vmem [shape: f32[2,1,96], index: 4, kind: input, shape index: {}]   ;;  %s4755_s5 = inlined_call_operand.vmem [shape: f32[2,4,9], index: 5, kind: input, shape index: {}]   ;;  %s4756_s6 = inlined_call_operand.vmem [shape: bf16[2,32,32], index: 6, kind: input, shape index: {}]   ;;  %s4757_s7 = inlined_call_operand.vmem [shape: f32[2,1,32], index: 7, kind: input, shape index: {}]   ;;  %s4758_s8 = inlined_call_operand.vmem [shape: f32[2,1,32], index: 8, kind: input, shape index: {}]   ;;  %s4759_s9 = inlined_call_operand.vmem [shape: f32[2,1,32], index: 9, kind: input, shape index: {}]   ;;  %s4760_s10 = inlined_call_operand.vmem [shape: bf16[2,32,128], index: 10, kind: input, shape index: {}]   ;;  %s4761_s11 = inlined_call_operand.vmem [shape: f32[2,1,128], index: 11, kind: input, shape index: {}]   ;;  %s4762_s12 = inlined_call_operand.vmem [shape: bf16[2,128,32], index: 12, kind: input, shape index: {}]   ;;  %s4763_s13 = inlined_call_operand.vmem [shape: f32[2,1,32], index: 13, kind: input, shape index: {}]   ;;  %s4764_s14 = inlined_call_operand.vmem [shape: bf16[96,64], index: 14, kind: input, shape index: {}]   ;;  %s4765_s15 = inlined_call_operand.vmem [shape: f32[1,64], index: 15, kind: input, shape index: {}]   ;;  %s4766_s16 = inlined_call_operand.vmem [shape: f32[1,64], index: 16, kind: input, shape index: {}]   ;;  %s4767_s17 = inlined_call_operand.hbm [shape: f32[2,8,64], index: 17, kind: output, shape index: {0}]   ;;  %s4768_s18 = inlined_call_operand.hbm [shape: f32[2,16,32], index: 18, kind: output, shape index: {1}]  }
   0x1   :  { %4794 = sst [smem:[#allocation23_spill]] %s4750_s0 }
   0x2   :  { %4795 = sst [smem:[#allocation24_spill]] %s4751_s1 }
   0x3   :  { %4796 = sst [smem:[#allocation25_spill]] %s4752_s2 }
   0x4   :  { %4797 = sst [smem:[#allocation26_spill]] %s4753_s3 }
   0x5   :  { %4798 = sst [smem:[#allocation27_spill]] %s4755_s5 }
   0x6   :  { %4799 = sst [smem:[#allocation28_spill]] %s4756_s6 }
   0x7   :  { %4800 = sst [smem:[#allocation29_spill]] %s4763_s13 }
   0x8   :  { %4801 = sst [smem:[#allocation30_spill]] %s4764_s14 }
   0x9   :  { %4802 = sst [smem:[#allocation31_spill]] %s4765_s15 }
   0xa   :  { %4803 = sst [smem:[#allocation32_spill]] %s4766_s16 }
   0xb   :  { %4804 = sst [smem:[#allocation33_spill]] %s4767_s17 }
   0xc   :  { %4805 = sst [smem:[#allocation34_spill]] %s4768_s18 }
   0xd   :  { %24 = vsyncpa [#allocation4], 0 }
   0xe   :  { %26 = vsyncpa [#allocation4 + $0x1], 0 }
   0xf   :  { %27 = vsyncpa [#allocation6], 0 }
  0x10   :  { %29 = vsyncpa [#allocation6 + $0x1], 0  ;;  %s3512_s27 = smov 0   ;;  %s3514_s28 = smov 0  }
  0x11   :  { %s3516_s29 = smov 0   ;;  %s3518_s30 = smov 0  }
  0x12   :  { %s3520_s0 = smov 0   ;;  %s3522_s19 = smov 0  }
  0x13   :  { %s3524_s1 = smov 0   ;;  %s3526_s20 = smov 0  }
  0x14 LB: > { %4806 = sst [smem:[#allocation9_spill]] %s3362_s27  ;;  %s2889_s21 = sadd.s32 4294967295, %s3390_s20   ;;  %s3390_s20 = sphi %s3526_s20, %s35_s20   ;;  %s3386_s1 = sphi %s3524_s1, %s4881_s1   ;;  %s3382_s19 = sphi %s3522_s19, %s4880_s19   ;;  %s3378_s0 = sphi %s3520_s0, %s4879_s0   ;;  %s3374_s30 = sphi %s3518_s30, %s4878_s30   ;;  %s3370_s29 = sphi %s3516_s29, %s4877_s29   ;;  %s3366_s28 = sphi %s3514_s28, %s4876_s28   ;;  %s3362_s27 = sphi %s3512_s27, %s4875_s27  }
  0x15   : > { %4807 = sst [smem:[#allocation10_spill]] %s3366_s28  ;;  %s2890_s22 = sadd.s32 4294967294, %s3390_s20  }
  0x16   : > { %4808 = sst [smem:[#allocation11_spill]] %s3370_s29  ;;  %s44_s2 = sadd.s32 1, %s3382_s19 }
  0x17   : > { %4809 = sst [smem:[#allocation12_spill]] %s3374_s30  ;;  %p45_p0 = scmp.ge.s32.totalorder %s44_s2, 2 }
  0x18   : > { %4810 = sst [smem:[#allocation13_spill]] %s3378_s0  ;;  %s47_s23 = sadd.s32 1, %s3386_s1 }
  0x19   : > { %4811 = sst [smem:[#allocation14_spill]] %s3382_s19  ;;  %p491_p1 = scmp.ne.s32.totalorder %s3370_s29, %s3366_s28 }
  0x1a   : > { %4812 = sst [smem:[#allocation15_spill]] %s3386_s1  ;;  %p492_p2 = scmp.eq.s32.totalorder %s2889_s21, 3 }
  0x1b   : > { %4813 = sst [smem:[#allocation16_spill]] %s3390_s20  ;;  %s4883_s2 = smov (%p45_p0, %s44_s2), 0 }
  0x1c   : > { %4814 = sst [smem:[#allocation17_spill]] %s4883_s2  ;;  %s4885_s23 = smov (!%p45_p0, %s47_s23), %s3386_s1 }
  0x1d   : > { %p3561_p3 = por %p492_p2, %p491_p1  ;;  %p497_p4 = scmp.ne.s32.totalorder %s3366_s28, %s3362_s27 }
  0x1e   : > { %p49_p5 = scmp.ge.s32.totalorder %s4885_s23, 2  ;;  %p498_p6 = scmp.eq.s32.totalorder %s2890_s22, 3 }
  0x1f   : > { %s4815_s24 = scalar_select %p3561_p3, 1, 0 }
  0x20   : > { %p2893_p7 = scmp.ge.s32.totalorder %s3390_s20, 1  ;;  %p646_p8 = scmp.lt.s32.totalorder %s3390_s20, 5 }
  0x21   : > { %4816 = sst [smem:[#allocation18_spill]] %s4815_s24  ;;  %s4887_s23 = smov (%p49_p5, %s4885_s23), 0 }
  0x22   : > { %4817 = sst [smem:[#allocation19_spill]] %s4887_s23  ;;  %p3571_p9 = por %p498_p6, %p497_p4 }
  0x23   : > { %p647_p10 = pnand %p2893_p7, %p646_p8  ;;  %s478_s26 = ssub.s32 %s3386_s1, %s4887_s23 }
  0x24   : > { %s4818_s25 = scalar_select %p3571_p9, 1, 0 }
  0x25   : > { %s481_s21 = sadd.s32 1, %s3370_s29  ;;  %p479_p11 = scmp.eq.s32.totalorder %s478_s26, 0 }
  0x26   : > { %4819 = sst [smem:[#allocation20_spill]] %s4818_s25  ;;  %650 = sbr.rel (%p647_p10) target bundleno = 3518 (0xdbe), region = 88 }
  0x27   : > { %s3579_s2 = scalar_select %p479_p11, %s3370_s29, %s481_s21  }
  0x29   : > { %4820 = sst [smem:[#allocation21_spill]] %s3579_s2 }
  0x2d   : > { %s3582_s22 = sand.u32 1, %s3366_s28   ;;  %p753_p12 = scmp.lt.s32.totalorder %s3378_s0, 1 }
  0x2e   : > { %4821 = sst [smem:[#allocation22_spill]] %s3582_s22  ;;  %s2894_s19 = sshll.u32 %s3582_s22, 3 }
  0x2f   : > { %s2895_s27 = sshll.u32 %s3582_s22, 4  ;;  %p758_p13 = scmp.lt.s32.totalorder %s3374_s30, 1 }
  0x30   : > { %s754_s25 = scalar_select %p753_p12, %s3378_s0, 1 }
  0x31   : > { %s4822_s21 = sld [smem:[#allocation23_spill]]  ;;  %s4825_s3 = sld [smem:[#allocation26_spill]] }
  0x32   : > { %s2954_s23 = sshll.u32 %s754_s25, 4  ;;  %s4826_s5 = sld [smem:[#allocation27_spill]] }
  0x33   : > { %s3593_s29 = scalar_select %p758_p13, %s3374_s30, 1 }
  0x34   : > { %s4827_s6 = sld [smem:[#allocation28_spill]]  ;;  %s4828_s0 = sld [smem:[#allocation29_spill]] }
  0x35   : > { %s2900_s15 = sshll.u32 %s3593_s29, 2  ;;  %s3655_s20 = scalar_lea.vmem [#allocation3], %s2894_s19 }
  0x37   : > { %s757_s2 = scalar_lea.vmem %s4822_s21, %s2954_s23  ;;  %s2955_s21 = sshll.u32 %s3593_s29, 4 }
  0x38   : > { %s3611_s16 = scalar_lea.vmem %s4825_s3, %s2955_s21  ;;  %s3617_s13 = scalar_lea.vmem %s4826_s5, %s2900_s15 }
  0x39   : > { %s3639_s30 = scalar_lea.vmem %s4760_s10, %s2955_s21  ;;  %s797_s5 = scalar_lea.vmem %s4761_s11, %s3593_s29 }
  0x3a   : > { %s3622_s28 = scalar_lea.vmem %s4827_s6, %s2955_s21  ;;  %s2958_s6 = sshll.u32 %s3593_s29, 6 }
  0x3b   : > { %s3649_s24 = scalar_lea.vmem %s4762_s12, %s2958_s6  ;;  %s805_s26 = scalar_lea.vmem %s4828_s0, %s3593_s29 }
  0x3c   : > { %s3657_s3 = scalar_lea.vmem [#allocation5], %s2895_s27  ;;  %s4829_s21 = sld [smem:[#allocation12_spill]] }
  0x42   : > { %p2907_p0 = scmp.ne.s32.totalorder %s4829_s21, 0 }
  0x43   : > { %v811_v0 = vld [vmem:[%s757_s2] sm:$0xff] (!%p2907_p0)  ;;  %vm813_vm0 = vcmask (!%p2907_p0), 261120   ;;  %v812_v1 = vld [vmem:[%s757_s2 + $0x8] sm:$0xff] (!%p2907_p0) }
  0x44   : > { %810 = sbr.rel (%p2907_p0) target bundleno = 75 (0x4b), region = 92  ;;  %814 = vst.msk [vmem:[#allocation2] sm:$0xff] (!%p2907_p0), %vm813_vm0, %v811_v0  ;;  %815 = vst.msk [vmem:[#allocation2 + $0x8] sm:$0xff] (!%p2907_p0), %vm813_vm0, %v812_v1 }
  0x4b PF: > { %v816_v2 = vld [vmem:[#allocation2] sm:$0xff]  ;;  %vm4789_vm1 = vcmask 261120   ;;  %v817_v3 = vld [vmem:[#allocation2 + $0x8] sm:$0xff]  ;;  %v3392_v17 = vmov 0.0   ;;  %vm4788_vm2 = vmmov 0   ;;  %s4830_s27 = sld [smem:[#allocation24_spill]]  ;;  %s4834_s1 = scalar_lea.vmem %s4754_s4, %s3593_s29  ;;  %v932_v49 = vlaneseq }
  0x4c   : > { %v821_v4 = vsel %vm4789_vm1, %v816_v2, 0.0  ;;  %v824_v5 = vsel %vm4789_vm1, %v817_v3, 0.0  ;;  %v3196_v16 = vld [vmem:[%s3611_s16] sm:$0xff]   ;;  %2985 = vmatprep.subr.bf16.mxu0 %v3392_v17  ;;  %2989 = vmatprep.mubr.msk.bf16.mxu0 %vm4788_vm2, %v3392_v17  ;;  %v3197_v18 = vld [vmem:[%s3611_s16 + $0x8] sm:$0xff]   ;;  %s4832_s14 = sld [smem:[#allocation25_spill]]  ;;  %s3394_s23 = smov 96  }
  0x4d   : > { %822 = vadd.xlane.f32.xlu0 %v821_v4  ;;  %2986 = vmatpush3.bf16.msra.mxu0 %v3196_v16  ;;  %v2910_v36 = vld [vmem:[%s4834_s1] ss:$0 sm:$0xff]  ;;  %s3395_s18 = smov 120   ;;  %s3396_s22 = smov 112   ;;  %vm1037_vm3 = vcmask 64512   ;;  %v3715_v50 = vshrl.u32 %v932_v49, 7 }
  0x4e   : > { %3009 = vmatprep.subr.bf16.mxu1 %v3392_v17  ;;  %2987 = vmatprep.subr.bf16.mxu0 %v3392_v17  ;;  %s3397_s21 = smov 104   ;;  %vm1108_vm12 = vcmask 7168   ;;  %vm1111_vm13 = vcmask 15360   ;;  %vm1114_vm14 = vcmask 23552   ;;  %s3399_s6 = smov 64   ;;  %vm1117_vm15 = vcmask 31744  }
  0x4f   : > { %3025 = vmatprep.mubr.msk.bf16.mxu1 %vm4788_vm2, %v3392_v17  ;;  %vm4793_vm4 = vcmp.lt.s32.totalorder %v3715_v50, 3  ;;  %vm968_vm5 = vcmp.lt.s32.totalorder %v3715_v50, 4  ;;  %vm992_vm6 = vcmp.lt.s32.totalorder %v3715_v50, 2  ;;  %vm1001_vm7 = vcmp.lt.s32.totalorder %v3715_v50, 1  ;;  %s4849_s16 = scalar_lea.vmem %s4757_s7, %s3593_s29  ;;  %s4854_s2 = scalar_lea.vmem %s4758_s8, %s3593_s29 }
  0x50   : > { %vm4792_vm8 = vcmp.lt.s32.totalorder %v3715_v50, 7  ;;  %vm4791_vm9 = vcmp.lt.s32.totalorder %v3715_v50, 6  ;;  %vm4790_vm10 = vcmp.lt.s32.totalorder %v3715_v50, 5  ;;  %vm1120_vm0 = vcmask 39936   ;;  %s4860_s1 = sld [smem:[#allocation12_spill]] }
  0x51   : > { %825 = vadd.xlane.f32.xlu0 %v824_v5  ;;  %2988 = vmatpush3.bf16.msra.mxu0 %v3197_v18  ;;  %s4831_s19 = scalar_lea.vmem %s4830_s27, %s3593_s29 }
  0x52   : > { %2993 = vmatprep.subr.bf16.mxu0 %v3392_v17  ;;  %v2908_v27 = vld [vmem:[%s4831_s19] ss:$0 sm:$0xff]  ;;  %s4833_s15 = scalar_lea.vmem %s4832_s14, %s3593_s29  ;;  %s4855_s14 = scalar_lea.vmem %s4759_s9, %s3593_s29 }
  0x53   : > { %v2909_v31 = vld [vmem:[%s4833_s15] ss:$0 sm:$0xff] }
  0x56   : > { %p2937_p1 = scmp.ne.s32.totalorder %s4860_s1, 1 }
  0x57   : > { %s3409_s29 = smov (!%p2937_p1), 32   ;;  %s4865_s25 = sld [smem:[#allocation31_spill]] (!%p2937_p1) }
  0x58   : > { %s4866_s17 = sld [smem:[#allocation32_spill]] (!%p2937_p1) }
  0xda   : > { %v823_v6 = vpop.xlane.xlu0 %822 }
  0xdb   : > { %v828_v7 = vmul.f32 0.03125, %v823_v6 }
  0xdd   : > { %v830_v8 = vsub.f32 %v816_v2, %v828_v7 }
  0xde   : > { %v826_v9 = vpop.xlane.xlu0 %825 }
  0xdf   : > { %v829_v10 = vmul.f32 0.03125, %v826_v9  ;;  %v832_v11 = vmul.f32 %v830_v8, %v830_v8 }
  0xe1   : > { %v831_v12 = vsub.f32 %v817_v3, %v829_v10  ;;  %v834_v13 = vsel %vm4789_vm1, %v832_v11, 0.0 }
  0xe2   : > { %835 = vadd.xlane.f32.xlu1 %v834_v13 }
  0xe3   : > { %v833_v14 = vmul.f32 %v831_v12, %v831_v12 }
  0xe5   : > { %v837_v15 = vsel %vm4789_vm1, %v833_v14, 0.0 }
  0xe6   : > { %838 = vadd.xlane.f32.xlu1 %v837_v15 }
 0x16f   : > { %v836_v19 = vpop.xlane.xlu1 %835 }
 0x170   : > { %v840_v20 = vmul.f32 0.03125, %v836_v19 }
 0x172   : > { %v842_v21 = vadd.f32 1e-05, %v840_v20 }
 0x173   : > { %v839_v22 = vpop.xlane.xlu1 %838 }
 0x174   : > { %3210 = vrsqrt.f32 %v842_v21  ;;  %v841_v23 = vmul.f32 0.03125, %v839_v22 }
 0x176   : > { %v843_v24 = vadd.f32 1e-05, %v841_v23 }
 0x178   : > { %3212 = vrsqrt.f32 %v843_v24 }
 0x17e   : > { %v3211_v25 = vpop.eup %3210 }
 0x17f   : > { %v846_v26 = vmul.f32 %v3211_v25, %v830_v8 }
 0x181   : > { %v854_v30 = vmul.f32 %v2908_v27, %v846_v26 }
 0x182   : > { %v3213_v28 = vpop.eup %3212 }
 0x183   : > { %v847_v29 = vmul.f32 %v3213_v28, %v831_v12  ;;  %v862_v33 = vadd.f32 %v2909_v31, %v854_v30 }
 0x185   : > { %v855_v32 = vmul.f32 %v2908_v27, %v847_v29 }
 0x187   : > { %v863_v34 = vadd.f32 %v2909_v31, %v855_v32 }
 0x189   : > { %v864_v35 = vpack.c.bf16 %v863_v34, %v862_v33 }
 0x18b   : > { %2990 = vmatmul.mubr.msk.bf16.vlgmr.msra.gmra.mrb[0].mxu0 %vm4789_vm1, %v864_v35 }
 0x18c   : > { %2997 = vmatprep.mubr.msk.bf16.mxu0 %vm4788_vm2, %v3392_v17  ;;  %vm1126_vm2 = vcmask 56320  }
 0x25e   : > { %v925_v37 = vpop.f32.mrb[0].mxu0 }
 0x25f   : > { %v3692_v38 = vadd.f32 %v2910_v36, %v925_v37  ;;  %v2991_v39 = vpop.f32.mrb[1].mxu0 }
 0x260   : > { %v928_v40 = vpop.f32.mrb[2].mxu0 }
 0x261   : > { %v3694_v41 = vadd.f32 %v2910_v36, %v928_v40  ;;  %960 = vrot.lane.b32.xlu0 %v3692_v38, %s3394_s23  ;;  %v2992_v42 = vpop.f32.mrb[3].mxu0 }
 0x263   : > { %962 = vrot.lane.b32.xlu1 %v3694_v41, %s3394_s23 }
 0x2d3   : > { %v3698_v43 = vpop.permute.xlu0 %960 }
 0x2d4   : > { %v1068_v44 = vmul.f32 %v3698_v43, %v3692_v38  ;;  %v981_v52 = vrot.slane %v3698_v43, 5  ;;  %v966_v55 = vrot.slane %v3698_v43, 4  ;;  %v990_v58 = vrot.slane %v3698_v43, 6 }
 0x2d5   : > { %v3702_v45 = vpop.permute.xlu1 %962  ;;  %v999_v5 = vrot.slane %v3698_v43, 7  ;;  %v1008_v12 = vrot.slane %v3698_v43, 1  ;;  %v1017_v16 = vrot.slane %v3698_v43, 2  ;;  %v1026_v23 = vrot.slane %v3698_v43, 3 }
 0x2d6   : > { %1189 = vrot.lane.b32.xlu0 %v1068_v44, %s3395_s18  ;;  %v1069_v46 = vmul.f32 %v3702_v45, %v3694_v41  ;;  %v1070_v47 = vsel %vm1037_vm3, %v1068_v44, 0.0  ;;  %v982_v51 = vrot.slane %v3702_v45, 5  ;;  %v967_v53 = vrot.slane %v3702_v45, 4 }
 0x2d7   : > { %v991_v56 = vrot.slane %v3702_v45, 6  ;;  %v1000_v2 = vrot.slane %v3702_v45, 7  ;;  %v1009_v11 = vrot.slane %v3702_v45, 1  ;;  %v1018_v15 = vrot.slane %v3702_v45, 2 }
 0x2d8   : > { %1191 = vrot.lane.b32.xlu1 %v1069_v46, %s3395_s18  ;;  %v1073_v48 = vsel %vm1037_vm3, %v1069_v46, 0.0  ;;  %v985_v54 = vsel %vm4793_vm4, %v982_v51, %v981_v52  ;;  %v3729_v57 = vsel %vm968_vm5, %v967_v53, %v966_v55  ;;  %v3745_v62 = vsel %vm968_vm5, %v966_v55, %v967_v53 }
 0x2d9   : > { %v3733_v59 = vmul.f32 %v985_v54, %v3692_v38  ;;  %v994_v60 = vsel %vm992_vm6, %v991_v56, %v990_v58  ;;  %v3741_v61 = vmul.f32 %v3729_v57, %v3692_v38  ;;  %v3756_v0 = vmul.f32 %v3745_v62, %v3694_v41 }
 0x2da   : > { %1321 = vrot.lane.b32.xlu0 %v1068_v44, %s3396_s22  ;;  %v3750_v63 = vmul.f32 %v994_v60, %v3692_v38  ;;  %v984_v1 = vsel %vm4793_vm4, %v981_v52, %v982_v51  ;;  %v993_v4 = vsel %vm992_vm6, %v990_v58, %v991_v56  ;;  %v1003_v6 = vsel %vm1001_vm7, %v1000_v2, %v999_v5 }
 0x2db   : > { %v3766_v3 = vmul.f32 %v984_v1, %v3694_v41  ;;  %v3779_v7 = vmul.f32 %v993_v4, %v3694_v41  ;;  %v3784_v8 = vmul.f32 %v1003_v6, %v3692_v38  ;;  %v1002_v9 = vsel %vm1001_vm7, %v999_v5, %v1000_v2 }
 0x2dc   : > { %1323 = vrot.lane.b32.xlu1 %v1069_v46, %s3396_s22  ;;  %v3799_v10 = vmul.f32 %v1002_v9, %v3694_v41  ;;  %v1011_v13 = vsel %vm4792_vm8, %v1008_v12, %v1009_v11  ;;  %v1020_v18 = vsel %vm4791_vm9, %v1017_v16, %v1018_v15  ;;  %v1012_v19 = vsel %vm4792_vm8, %v1009_v11, %v1008_v12 }
 0x2dd   : > { %v3821_v14 = vmul.f32 %v1011_v13, %v3692_v38  ;;  %v3839_v20 = vmul.f32 %v1020_v18, %v3692_v38  ;;  %v1027_v21 = vrot.slane %v3702_v45, 3  ;;  %v3845_v22 = vmul.f32 %v1012_v19, %v3694_v41 }
 0x2de   : > { %1445 = vrot.lane.b32.xlu0 %v1068_v44, %s3397_s21  ;;  %v1021_v25 = vsel %vm4791_vm9, %v1018_v15, %v1017_v16  ;;  %v1100_v30 = vmul.f32 %v3745_v62, %v3692_v38  ;;  %v3895_v31 = vmul.f32 %v3729_v57, %v3694_v41  ;;  %v1038_v37 = vsel %vm1037_vm3, %v3741_v61, 0.0 }
 0x2df   : > { %v1029_v24 = vsel %vm4790_vm10, %v1026_v23, %v1027_v21  ;;  %v3865_v27 = vmul.f32 %v1021_v25, %v3694_v41  ;;  %v1030_v28 = vsel %vm4790_vm10, %v1027_v21, %v1026_v23  ;;  %v1046_v42 = vsel %vm1037_vm3, %v3733_v59, 0.0 }
 0x2e0   : > { %1447 = vrot.lane.b32.xlu1 %v1069_v46, %s3397_s21  ;;  %v3860_v26 = vmul.f32 %v1029_v24, %v3692_v38  ;;  %v3878_v29 = vmul.f32 %v1030_v28, %v3694_v41  ;;  %v1049_v45 = vsel %vm1037_vm3, %v3766_v3, 0.0  ;;  %v1041_v51 = vsel %vm1037_vm3, %v3756_v0, 0.0 }
 0x2e1   : > { %v1062_v53 = vsel %vm1037_vm3, %v3784_v8, 0.0  ;;  %v1057_v55 = vsel %vm1037_vm3, %v3779_v7, 0.0  ;;  %v1078_v57 = vsel %vm1037_vm3, %v3821_v14, 0.0  ;;  %v1081_v62 = vsel %vm1037_vm3, %v3845_v22, 0.0 }
 0x2e2   : > { %v1089_v2 = vsel %vm1037_vm3, %v3865_v27, 0.0  ;;  %v1102_v4 = vsel %vm1037_vm3, %v1100_v30, 0.0  ;;  %v1097_v6 = vsel %vm1037_vm3, %v3878_v29, 0.0  ;;  %v1105_v9 = vsel %vm1037_vm3, %v3895_v31, 0.0 }
 0x2e3   : > { %vm1587_vm8 = vcmask 72704  }
 0x2fd   : > { %1071 = vadd.xlane.f32.xlu0 %v1070_v47 }
 0x304   : > { %1074 = vadd.xlane.f32.xlu1 %v1073_v48  ;;  %v1054_v48 = vsel %vm1037_vm3, %v3750_v63, 0.0 }
 0x313   : > { %1147 = vrot.lane.b32.xlu0 %v3733_v59, %s3395_s18 }
 0x315   : > { %1133 = vrot.lane.b32.xlu1 %v3741_v61, %s3395_s18 }
 0x317   : > { %1161 = vrot.lane.b32.xlu0 %v3750_v63, %s3395_s18 }
 0x319   : > { %1135 = vrot.lane.b32.xlu1 %v3756_v0, %s3395_s18 }
 0x31b   : > { %1273 = vrot.lane.b32.xlu0 %v3741_v61, %s3396_s22 }
 0x31d   : > { %1149 = vrot.lane.b32.xlu1 %v3766_v3, %s3395_s18 }
 0x31f   : > { %1285 = vrot.lane.b32.xlu0 %v3733_v59, %s3396_s22 }
 0x321   : > { %1163 = vrot.lane.b32.xlu1 %v3779_v7, %s3395_s18 }
 0x323   : > { %1175 = vrot.lane.b32.xlu0 %v3784_v8, %s3395_s18 }
 0x325   : > { %1275 = vrot.lane.b32.xlu1 %v3756_v0, %s3396_s22 }
 0x327   : > { %1297 = vrot.lane.b32.xlu0 %v3750_v63, %s3396_s22 }
 0x329   : > { %1287 = vrot.lane.b32.xlu1 %v3766_v3, %s3396_s22 }
 0x32b   : > { %1397 = vrot.lane.b32.xlu0 %v3741_v61, %s3397_s21  ;;  %v1086_v61 = vsel %vm1037_vm3, %v3839_v20, 0.0 }
 0x32d   : > { %1177 = vrot.lane.b32.xlu1 %v3799_v10, %s3395_s18 }
 0x32f   : > { %1409 = vrot.lane.b32.xlu0 %v3733_v59, %s3397_s21  ;;  %v1065_v59 = vsel %vm1037_vm3, %v3799_v10, 0.0 }
 0x331   : > { %1299 = vrot.lane.b32.xlu1 %v3779_v7, %s3396_s22 }
 0x333   : > { %1309 = vrot.lane.b32.xlu0 %v3784_v8, %s3396_s22 }
 0x335   : > { %1399 = vrot.lane.b32.xlu1 %v3756_v0, %s3397_s21  ;;  %v1094_v0 = vsel %vm1037_vm3, %v3860_v26, 0.0 }
 0x337   : > { %1421 = vrot.lane.b32.xlu0 %v3750_v63, %s3397_s21 }
 0x339   : > { %1411 = vrot.lane.b32.xlu1 %v3766_v3, %s3397_s21 }
 0x33b   : > { %1203 = vrot.lane.b32.xlu0 %v3821_v14, %s3395_s18 }
 0x33d   : > { %1311 = vrot.lane.b32.xlu1 %v3799_v10, %s3396_s22 }
 0x33f   : > { %1433 = vrot.lane.b32.xlu0 %v3784_v8, %s3397_s21 }
 0x341   : > { %1423 = vrot.lane.b32.xlu1 %v3779_v7, %s3397_s21 }
 0x343   : > { %1217 = vrot.lane.b32.xlu0 %v3839_v20, %s3395_s18 }
 0x345   : > { %1205 = vrot.lane.b32.xlu1 %v3845_v22, %s3395_s18 }
 0x347   : > { %1333 = vrot.lane.b32.xlu0 %v3821_v14, %s3396_s22 }
 0x348   : > { %v1190_v32 = vpop.permute.xlu0 %1189 }
 0x349   : > { %1435 = vrot.lane.b32.xlu1 %v3799_v10, %s3397_s21  ;;  %v1195_v8 = vsel %vm1037_vm3, %v1190_v32, 0.0 }
 0x34a   : > { %v1192_v34 = vpop.permute.xlu1 %1191 }
 0x34b   : > { %1231 = vrot.lane.b32.xlu0 %v3860_v26, %s3395_s18  ;;  %v1198_v13 = vsel %vm1037_vm3, %v1192_v34, 0.0 }
 0x34c   : > { %v1322_v33 = vpop.permute.xlu0 %1321 }
 0x34d   : > { %1219 = vrot.lane.b32.xlu1 %v3865_v27, %s3395_s18  ;;  %v1327_v10 = vsel %vm1037_vm3, %v1322_v33, 0.0 }
 0x34e   : > { %v1324_v36 = vpop.permute.xlu1 %1323 }
 0x34f   : > { %1345 = vrot.lane.b32.xlu0 %v3839_v20, %s3396_s22  ;;  %v1330_v16 = vsel %vm1037_vm3, %v1324_v36, 0.0 }
 0x350   : > { %v1446_v35 = vpop.permute.xlu0 %1445 }
 0x351   : > { %1335 = vrot.lane.b32.xlu1 %v3845_v22, %s3396_s22 }
 0x352   : > { %v1448_v40 = vpop.permute.xlu1 %1447 }
 0x353   : > { %1457 = vrot.lane.b32.xlu0 %v3821_v14, %s3397_s21  ;;  %v1451_v14 = vsel %vm1037_vm3, %v1446_v35, 0.0 }
 0x355   : > { %1233 = vrot.lane.b32.xlu1 %v3878_v29, %s3395_s18 }
 0x357   : > { %1245 = vrot.lane.b32.xlu0 %v1100_v30, %s3395_s18 }
 0x359   : > { %1347 = vrot.lane.b32.xlu1 %v3865_v27, %s3396_s22 }
 0x35b   : > { %1357 = vrot.lane.b32.xlu0 %v3860_v26, %s3396_s22 }
 0x35d   : > { %1459 = vrot.lane.b32.xlu1 %v3845_v22, %s3397_s21 }
 0x35f   : > { %1469 = vrot.lane.b32.xlu0 %v3839_v20, %s3397_s21  ;;  %v1454_v20 = vsel %vm1037_vm3, %v1448_v40, 0.0 }
 0x361   : > { %1247 = vrot.lane.b32.xlu1 %v3895_v31, %s3395_s18  ;;  %s4863_s18 = sld [smem:[#allocation30_spill]] (!%p2937_p1) }
 0x363   : > { %1369 = vrot.lane.b32.xlu0 %v1100_v30, %s3396_s22 }
 0x365   : > { %1359 = vrot.lane.b32.xlu1 %v3878_v29, %s3396_s22 }
 0x367   : > { %1481 = vrot.lane.b32.xlu0 %v3860_v26, %s3397_s21 }
 0x369   : > { %1471 = vrot.lane.b32.xlu1 %v3865_v27, %s3397_s21 }
 0x36b   : > { %1493 = vrot.lane.b32.xlu0 %v1100_v30, %s3397_s21 }
 0x36d   : > { %1371 = vrot.lane.b32.xlu1 %v3895_v31, %s3396_s22 }
 0x371   : > { %1483 = vrot.lane.b32.xlu1 %v3878_v29, %s3397_s21 }
 0x375   : > { %1495 = vrot.lane.b32.xlu1 %v3895_v31, %s3397_s21 }
 0x38a   : > { %v3915_v39 = vpop.xlane.xlu0 %1071  ;;  %1039 = vadd.xlane.f32.xlu0 %v1038_v37 }
 0x38e   : > { %v1148_v43 = vpop.permute.xlu0 %1147  ;;  %1047 = vadd.xlane.f32.xlu0 %v1046_v42 }
 0x38f   : > { %v1153_v21 = vsel %vm1037_vm3, %v1148_v43, 0.0 }
 0x391   : > { %v3919_v44 = vpop.xlane.xlu1 %1074 }
 0x392   : > { %1050 = vadd.xlane.f32.xlu0 %v1049_v45  ;;  %v1162_v46 = vpop.permute.xlu0 %1161 }
 0x393   : > { %v1167_v25 = vsel %vm1037_vm3, %v1162_v46, 0.0 }
 0x395   : > { %v1134_v47 = vpop.permute.xlu1 %1133 }
 0x396   : > { %1055 = vadd.xlane.f32.xlu0 %v1054_v48  ;;  %v1274_v54 = vpop.permute.xlu0 %1273  ;;  %v1139_v19 = vsel %vm1037_vm3, %v1134_v47, 0.0 }
 0x397   : > { %v1279_v29 = vsel %vm1037_vm3, %v1274_v54, 0.0 }
 0x399   : > { %v1136_v52 = vpop.permute.xlu1 %1135  ;;  %1042 = vadd.xlane.f32.xlu1 %v1041_v51 }
 0x39a   : > { %1063 = vadd.xlane.f32.xlu0 %v1062_v53  ;;  %v1286_v58 = vpop.permute.xlu0 %1285  ;;  %v1142_v24 = vsel %vm1037_vm3, %v1136_v52, 0.0 }
 0x39b   : > { %v1291_v31 = vsel %vm1037_vm3, %v1286_v58, 0.0 }
 0x39d   : > { %v1150_v56 = vpop.permute.xlu1 %1149  ;;  %1058 = vadd.xlane.f32.xlu1 %v1057_v55 }
 0x39e   : > { %1079 = vadd.xlane.f32.xlu0 %v1078_v57  ;;  %v1176_v1 = vpop.permute.xlu0 %1175  ;;  %v1156_v27 = vsel %vm1037_vm3, %v1150_v56, 0.0 }
 0x39f   : > { %v1181_v35 = vsel %vm1037_vm3, %v1176_v1, 0.0 }
 0x3a1   : > { %v1164_v60 = vpop.permute.xlu1 %1163  ;;  %1066 = vadd.xlane.f32.xlu1 %v1065_v59 }
 0x3a2   : > { %1087 = vadd.xlane.f32.xlu0 %v1086_v61  ;;  %v1298_v5 = vpop.permute.xlu0 %1297  ;;  %v1170_v30 = vsel %vm1037_vm3, %v1164_v60, 0.0 }
 0x3a3   : > { %v1303_v42 = vsel %vm1037_vm3, %v1298_v5, 0.0 }
 0x3a5   : > { %v1276_v63 = vpop.permute.xlu1 %1275  ;;  %1082 = vadd.xlane.f32.xlu1 %v1081_v62 }
 0x3a6   : > { %1095 = vadd.xlane.f32.xlu0 %v1094_v0  ;;  %v1398_v11 = vpop.permute.xlu0 %1397  ;;  %v1282_v34 = vsel %vm1037_vm3, %v1276_v63, 0.0 }
 0x3a7   : > { %v1403_v45 = vsel %vm1037_vm3, %v1398_v11, 0.0 }
 0x3a9   : > { %v1288_v3 = vpop.permute.xlu1 %1287  ;;  %1090 = vadd.xlane.f32.xlu1 %v1089_v2 }
 0x3aa   : > { %1103 = vadd.xlane.f32.xlu0 %v1102_v4  ;;  %v1410_v15 = vpop.permute.xlu0 %1409  ;;  %v1294_v37 = vsel %vm1037_vm3, %v1288_v3, 0.0 }
 0x3ab   : > { %v1415_v51 = vsel %vm1037_vm3, %v1410_v15, 0.0 }
 0x3ad   : > { %v1178_v7 = vpop.permute.xlu1 %1177  ;;  %1098 = vadd.xlane.f32.xlu1 %v1097_v6 }
 0x3ae   : > { %1196 = vadd.xlane.f32.xlu0 %v1195_v8  ;;  %v1310_v22 = vpop.permute.xlu0 %1309  ;;  %v1184_v43 = vsel %vm1037_vm3, %v1178_v7, 0.0 }
 0x3af   : > { %v1315_v55 = vsel %vm1037_vm3, %v1310_v22, 0.0 }
 0x3b1   : > { %1106 = vadd.xlane.f32.xlu1 %v1105_v9  ;;  %v1300_v12 = vpop.permute.xlu1 %1299 }
 0x3b2   : > { %1328 = vadd.xlane.f32.xlu0 %v1327_v10  ;;  %v1422_v26 = vpop.permute.xlu0 %1421  ;;  %v1306_v48 = vsel %vm1037_vm3, %v1300_v12, 0.0 }
 0x3b3   : > { %v1427_v57 = vsel %vm1037_vm3, %v1422_v26, 0.0 }
 0x3b5   : > { %1199 = vadd.xlane.f32.xlu1 %v1198_v13  ;;  %v1400_v18 = vpop.permute.xlu1 %1399 }
 0x3b6   : > { %1452 = vadd.xlane.f32.xlu0 %v1451_v14  ;;  %v1204_v32 = vpop.permute.xlu0 %1203  ;;  %v1406_v53 = vsel %vm1037_vm3, %v1400_v18, 0.0 }
 0x3b7   : > { %v1209_v61 = vsel %vm1037_vm3, %v1204_v32, 0.0 }
 0x3b9   : > { %1331 = vadd.xlane.f32.xlu1 %v1330_v16  ;;  %v1412_v23 = vpop.permute.xlu1 %1411 }
 0x3ba   : > { %1140 = vadd.xlane.f32.xlu0 %v1139_v19  ;;  %v1434_v36 = vpop.permute.xlu0 %1433  ;;  %v1418_v56 = vsel %vm1037_vm3, %v1412_v23, 0.0 }
 0x3bb   : > { %v1439_v1 = vsel %vm1037_vm3, %v1434_v36, 0.0 }
 0x3bd   : > { %1455 = vadd.xlane.f32.xlu1 %v1454_v20  ;;  %v1312_v28 = vpop.permute.xlu1 %1311 }
 0x3be   : > { %1154 = vadd.xlane.f32.xlu0 %v1153_v21  ;;  %v1218_v46 = vpop.permute.xlu0 %1217  ;;  %v1318_v60 = vsel %vm1037_vm3, %v1312_v28, 0.0 }
 0x3bf   : > { %v1223_v3 = vsel %vm1037_vm3, %v1218_v46, 0.0 }
 0x3c1   : > { %1143 = vadd.xlane.f32.xlu1 %v1142_v24  ;;  %v1424_v33 = vpop.permute.xlu1 %1423 }
 0x3c2   : > { %1168 = vadd.xlane.f32.xlu0 %v1167_v25  ;;  %v1334_v52 = vpop.permute.xlu0 %1333  ;;  %v1430_v63 = vsel %vm1037_vm3, %v1424_v33, 0.0 }
 0x3c3   : > { %v1339_v7 = vsel %vm1037_vm3, %v1334_v52, 0.0  ;;  %v3398_v52 = vmov 1966171168  }
 0x3c5   : > { %1157 = vadd.xlane.f32.xlu1 %v1156_v27  ;;  %v1206_v40 = vpop.permute.xlu1 %1205 }
 0x3c6   : > { %1280 = vadd.xlane.f32.xlu0 %v1279_v29  ;;  %v1232_v58 = vpop.permute.xlu0 %1231  ;;  %v1212_v2 = vsel %vm1037_vm3, %v1206_v40, 0.0 }
 0x3c7   : > { %v1237_v11 = vsel %vm1037_vm3, %v1232_v58, 0.0  ;;  %v936_v58 = vand.u32 127, %v932_v49 }
 0x3c9   : > { %1171 = vadd.xlane.f32.xlu1 %v1170_v30  ;;  %v1436_v47 = vpop.permute.xlu1 %1435 }
 0x3ca   : > { %1292 = vadd.xlane.f32.xlu0 %v1291_v31  ;;  %v1346_v62 = vpop.permute.xlu0 %1345  ;;  %v1442_v6 = vsel %vm1037_vm3, %v1436_v47, 0.0 }
 0x3cb   : > { %v1351_v13 = vsel %vm1037_vm3, %v1346_v62, 0.0  ;;  %v2914_v62 = vadd.s32 4294967292, %v936_v58 }
 0x3cd   : > { %1283 = vadd.xlane.f32.xlu1 %v1282_v34  ;;  %v1220_v54 = vpop.permute.xlu1 %1219 }
 0x3ce   : > { %1182 = vadd.xlane.f32.xlu0 %v1181_v35  ;;  %v1458_v4 = vpop.permute.xlu0 %1457  ;;  %v1226_v9 = vsel %vm1037_vm3, %v1220_v54, 0.0 }
 0x3cf   : > { %v1463_v18 = vsel %vm1037_vm3, %v1458_v4, 0.0  ;;  %v4015_v4 = vsub.s32 0, %v3715_v50 }
 0x3d1   : > { %1295 = vadd.xlane.f32.xlu1 %v1294_v37  ;;  %v1336_v59 = vpop.permute.xlu1 %1335 }
 0x3d2   : > { %1304 = vadd.xlane.f32.xlu0 %v1303_v42  ;;  %v1246_v8 = vpop.permute.xlu0 %1245  ;;  %v1342_v12 = vsel %vm1037_vm3, %v1336_v59, 0.0 }
 0x3d3   : > { %v1251_v22 = vsel %vm1037_vm3, %v1246_v8, 0.0 }
 0x3d5   : > { %1185 = vadd.xlane.f32.xlu1 %v1184_v43  ;;  %v1234_v0 = vpop.permute.xlu1 %1233 }
 0x3d6   : > { %1404 = vadd.xlane.f32.xlu0 %v1403_v45  ;;  %v1358_v14 = vpop.permute.xlu0 %1357  ;;  %v1240_v16 = vsel %vm1037_vm3, %v1234_v0, 0.0  ;;  %v4010_v0 = vld.sshfl [vmem:[%s3617_s13] sm:$0x33 pattern:$0x75316420] }
 0x3d7   : > { %v1363_v24 = vsel %vm1037_vm3, %v1358_v14, 0.0 }
 0x3d9   : > { %1307 = vadd.xlane.f32.xlu1 %v1306_v48  ;;  %v1348_v5 = vpop.permute.xlu1 %1347 }
 0x3da   : > { %1416 = vadd.xlane.f32.xlu0 %v1415_v51  ;;  %v1470_v19 = vpop.permute.xlu0 %1469  ;;  %v1354_v20 = vsel %vm1037_vm3, %v1348_v5, 0.0 }
 0x3db   : > { %v1475_v28 = vsel %vm1037_vm3, %v1470_v19, 0.0 }
 0x3dd   : > { %1407 = vadd.xlane.f32.xlu1 %v1406_v53  ;;  %v1460_v10 = vpop.permute.xlu1 %1459  ;;  %v1532_v53 = vunpack.c.l.s4 %v3398_v52 }
 0x3de   : > { %1316 = vadd.xlane.f32.xlu0 %v1315_v55  ;;  %v1466_v23 = vsel %vm1037_vm3, %v1460_v10, 0.0  ;;  %v1370_v25 = vpop.permute.xlu0 %1369 }
 0x3df   : > { %v1375_v32 = vsel %vm1037_vm3, %v1370_v25, 0.0 }
 0x3e1   : > { %1419 = vadd.xlane.f32.xlu1 %v1418_v56  ;;  %v1248_v15 = vpop.permute.xlu1 %1247  ;;  %v2915_v56 = vadd.s32 4294967294, %v3715_v50 }
 0x3e2   : > { %1428 = vadd.xlane.f32.xlu0 %v1427_v57  ;;  %v1254_v27 = vsel %vm1037_vm3, %v1248_v15, 0.0  ;;  %v1482_v29 = vpop.permute.xlu0 %1481  ;;  %v1533_v57 = vunpack.c.0.s8 %v1532_v53 }
 0x3e3   : > { %v1487_v34 = vsel %vm1037_vm3, %v1482_v29, 0.0  ;;  %vm940_vm11 = vcmp.gt.s32.totalorder %v2915_v56, 0 }
 0x3e5   : > { %1319 = vadd.xlane.f32.xlu1 %v1318_v60  ;;  %v1360_v21 = vpop.permute.xlu1 %1359 }
 0x3e6   : > { %1210 = vadd.xlane.f32.xlu0 %v1209_v61  ;;  %v1366_v30 = vsel %vm1037_vm3, %v1360_v21, 0.0  ;;  %v1494_v35 = vpop.permute.xlu0 %1493  ;;  %v4005_v61 = vsub.s32 %v1533_v57, %v3715_v50 }
 0x3e7   : > { %v1499_v40 = vsel %vm1037_vm3, %v1494_v35, 0.0 }
 0x3e9   : > { %1431 = vadd.xlane.f32.xlu1 %v1430_v63  ;;  %v1472_v26 = vpop.permute.xlu1 %1471 }
 0x3ea   : > { %1440 = vadd.xlane.f32.xlu0 %v1439_v1  ;;  %v1478_v33 = vsel %vm1037_vm3, %v1472_v26, 0.0  ;;  %v941_v1 = vsel %vm940_vm11, %v2915_v56, 0  ;;  %vm1123_vm11 = vcmask 48128  }
 0x3eb   : > { %v952_v8 = vadd.s32 5, %v941_v1 }
 0x3ed   : > { %1213 = vadd.xlane.f32.xlu1 %v1212_v2  ;;  %v1372_v31 = vpop.permute.xlu1 %1371 }
 0x3ee   : > { %1224 = vadd.xlane.f32.xlu0 %v1223_v3  ;;  %v1378_v37 = vsel %vm1037_vm3, %v1372_v31, 0.0 }
 0x3f1   : > { %1443 = vadd.xlane.f32.xlu1 %v1442_v6  ;;  %v1484_v36 = vpop.permute.xlu1 %1483  ;;  %v4020_v6 = vrot.slane %v4010_v0, %v4005_v61 }
 0x3f2   : > { %1340 = vadd.xlane.f32.xlu0 %v1339_v7  ;;  %v1490_v43 = vsel %vm1037_vm3, %v1484_v36, 0.0  ;;  %v948_v7 = vadd.s32 %v2914_v62, %v3715_v50 }
 0x3f4   : > { %vm950_vm1 = vcmp.ge.s32.totalorder %v948_v7, %v941_v1  ;;  %vm954_vm10 = vcmp.lt.s32.totalorder %v948_v7, %v952_v8 }
 0x3f5   : > { %1227 = vadd.xlane.f32.xlu1 %v1226_v9  ;;  %v1496_v45 = vpop.permute.xlu1 %1495  ;;  %vm4032_vm9 = vmand %vm950_vm1, %vm954_vm10 }
 0x3f6   : > { %1238 = vadd.xlane.f32.xlu0 %v1237_v11  ;;  %v1502_v47 = vsel %vm1037_vm3, %v1496_v45, 0.0 }
 0x3f9   : > { %1343 = vadd.xlane.f32.xlu1 %v1342_v12 }
 0x3fa   : > { %1352 = vadd.xlane.f32.xlu0 %v1351_v13  ;;  %v1550_v13 = vrot.slane %v4020_v6, %v4015_v4 }
 0x3fd   : > { %1241 = vadd.xlane.f32.xlu1 %v1240_v16  ;;  %v934_v16 = vadd.s32 8, %v3715_v50 }
 0x3fe   : > { %1464 = vadd.xlane.f32.xlu0 %v1463_v18 }
 0x401   : > { %1355 = vadd.xlane.f32.xlu1 %v1354_v20 }
 0x402   : > { %1252 = vadd.xlane.f32.xlu0 %v1251_v22 }
 0x405   : > { %1467 = vadd.xlane.f32.xlu1 %v1466_v23  ;;  %v2916_v23 = vadd.s32 4294967294, %v934_v16 }
 0x406   : > { %1364 = vadd.xlane.f32.xlu0 %v1363_v24 }
 0x407   : > { %vm946_vm1 = vcmp.lt.s32.totalorder %v2916_v23, 11 }
 0x409   : > { %1255 = vadd.xlane.f32.xlu1 %v1254_v27 }
 0x40a   : > { %1476 = vadd.xlane.f32.xlu0 %v1475_v28 }
 0x40d   : > { %1367 = vadd.xlane.f32.xlu1 %v1366_v30 }
 0x40e   : > { %1376 = vadd.xlane.f32.xlu0 %v1375_v32  ;;  %v947_v32 = vsel %vm946_vm1, %v2916_v23, 11  ;;  %v1530_v23 = vcombine.high %v4010_v0, %v4010_v0 }
 0x411   : > { %1479 = vadd.xlane.f32.xlu1 %v1478_v33 }
 0x412   : > { %1488 = vadd.xlane.f32.xlu0 %v1487_v34 }
 0x415   : > { %1379 = vadd.xlane.f32.xlu1 %v1378_v37  ;;  %v949_v37 = vadd.s32 %v2914_v62, %v934_v16 }
 0x416   : > { %1500 = vadd.xlane.f32.xlu0 %v1499_v40  ;;  %v953_v40 = vadd.s32 5, %v947_v32 }
 0x417   : > { %v1040_v42 = vpop.xlane.xlu0 %1039  ;;  %vm951_vm10 = vcmp.ge.s32.totalorder %v949_v37, %v947_v32  ;;  %v1544_v32 = vrot.slane %v1530_v23, %v4005_v61 }
 0x418   : > { %vm955_vm1 = vcmp.lt.s32.totalorder %v949_v37, %v953_v40 }
 0x419   : > { %1491 = vadd.xlane.f32.xlu1 %v1490_v43  ;;  %vm4063_vm4 = vmand %vm951_vm10, %vm955_vm1 }
 0x41b   : > { %v1048_v46 = vpop.xlane.xlu0 %1047 }
 0x41c   : > { %v1109_v49 = vsel %vm1108_vm12, %v1040_v42, %v1048_v46 }
 0x41d   : > { %1503 = vadd.xlane.f32.xlu1 %v1502_v47 }
 0x41f   : > { %v1051_v48 = vpop.xlane.xlu0 %1050 }
 0x423   : > { %v1056_v51 = vpop.xlane.xlu0 %1055 }
 0x424   : > { %v1112_v3 = vsel %vm1111_vm13, %v1109_v49, %v1056_v51 }
 0x426   : > { %v1043_v54 = vpop.xlane.xlu1 %1042 }
 0x427   : > { %v1064_v55 = vpop.xlane.xlu0 %1063  ;;  %v1110_v27 = vsel %vm1108_vm12, %v1043_v54, %v1051_v48 }
 0x428   : > { %v1115_v5 = vsel %vm1114_vm14, %v1112_v3, %v1064_v55 }
 0x429   : > { %v1118_v11 = vsel %vm1117_vm15, %v1115_v5, %v3915_v39 }
 0x42a   : > { %v1059_v59 = vpop.xlane.xlu1 %1058 }
 0x42b   : > { %v1080_v60 = vpop.xlane.xlu0 %1079  ;;  %v1113_v29 = vsel %vm1111_vm13, %v1110_v27, %v1059_v59 }
 0x42c   : > { %v1121_v12 = vsel %vm1120_vm0, %v1118_v11, %v1080_v60 }
 0x42e   : > { %971 = vrot.lane.b32.xlu1 %v3692_v38, %s3399_s6  ;;  %v1067_v63 = vpop.xlane.xlu1 %1066 }
 0x42f   : > { %v1088_v2 = vpop.xlane.xlu0 %1087  ;;  %v1116_v31 = vsel %vm1114_vm14, %v1113_v29, %v1067_v63 }
 0x430   : > { %v1124_v14 = vsel %vm1123_vm11, %v1121_v12, %v1088_v2  ;;  %v1119_v34 = vsel %vm1117_vm15, %v1116_v31, %v3919_v44 }
 0x432   : > { %v1083_v9 = vpop.xlane.xlu1 %1082 }
 0x433   : > { %v1096_v10 = vpop.xlane.xlu0 %1095  ;;  %v1122_v36 = vsel %vm1120_vm0, %v1119_v34, %v1083_v9 }
 0x434   : > { %v1127_v18 = vsel %vm1126_vm2, %v1124_v14, %v1096_v10 }
 0x436   : > { %v1091_v15 = vpop.xlane.xlu1 %1090 }
 0x437   : > { %v1104_v19 = vpop.xlane.xlu0 %1103  ;;  %v1125_v42 = vsel %vm1123_vm11, %v1122_v36, %v1091_v15 }
 0x438   : > { %v1129_v20 = vsel %vm1037_vm3, %v1127_v18, %v1104_v19 }
 0x439   : > { %v1567_v21 = vadd.f32 %v1550_v13, %v1129_v20 }
 0x43a   : > { %v1099_v22 = vpop.xlane.xlu1 %1098 }
 0x43b   : > { %v4036_v24 = vpop.xlane.xlu0 %1196  ;;  %v4040_v25 = vsel %vm4032_vm9, %v1567_v21, -1e+30  ;;  %v1128_v43 = vsel %vm1126_vm2, %v1125_v42, %v1099_v22  ;;  %v1554_v42 = vrot.slane %v1544_v32, %v4015_v4 }
 0x43c   : > { %v1588_v26 = vsel %vm1587_vm8, %v4040_v25, -inf }
 0x43d   : > { %1589 = vmax.xlane.f32.xlu0 %v1588_v26 }
 0x43e   : > { %v1107_v28 = vpop.xlane.xlu1 %1106 }
 0x43f   : > { %v4046_v30 = vpop.xlane.xlu0 %1328  ;;  %v1130_v46 = vsel %vm1037_vm3, %v1128_v43, %v1107_v28 }
 0x440   : > { %v1568_v48 = vadd.f32 %v1550_v13, %v1130_v46 }
 0x442   : > { %v4049_v33 = vpop.xlane.xlu1 %1199  ;;  %v4069_v54 = vsel %vm4063_vm4, %v1568_v48, -1e+30 }
 0x443   : > { %v4053_v35 = vpop.xlane.xlu0 %1452  ;;  %v1591_v56 = vsel %vm1587_vm8, %v4069_v54, -inf }
 0x446   : > { %v4058_v45 = vpop.xlane.xlu1 %1331 }
 0x447   : > { %v1141_v47 = vpop.xlane.xlu0 %1140 }
 0x44a   : > { %v4061_v51 = vpop.xlane.xlu1 %1455 }
 0x44b   : > { %v1155_v44 = vpop.xlane.xlu0 %1154 }
 0x44c   : > { %v1257_v27 = vsel %vm1108_vm12, %v1141_v47, %v1155_v44 }
 0x44e   : > { %v1144_v53 = vpop.xlane.xlu1 %1143 }
 0x44f   : > { %v1169_v55 = vpop.xlane.xlu0 %1168 }
 0x450   : > { %v1259_v29 = vsel %vm1111_vm13, %v1257_v27, %v1169_v55 }
 0x452   : > { %1592 = vmax.xlane.f32.xlu1 %v1591_v56  ;;  %v1158_v57 = vpop.xlane.xlu1 %1157 }
 0x453   : > { %v1281_v58 = vpop.xlane.xlu0 %1280  ;;  %v1258_v0 = vsel %vm1108_vm12, %v1144_v53, %v1158_v57 }
 0x456   : > { %v1172_v59 = vpop.xlane.xlu1 %1171 }
 0x457   : > { %v1293_v60 = vpop.xlane.xlu0 %1292  ;;  %v1260_v47 = vsel %vm1111_vm13, %v1258_v0, %v1172_v59 }
 0x45a   : > { %v4073_v62 = vpop.xlane.xlu1 %1283 }
 0x45b   : > { %v1183_v63 = vpop.xlane.xlu0 %1182 }
 0x45c   : > { %v1261_v31 = vsel %vm1114_vm14, %v1259_v29, %v1183_v63  ;;  %v1381_v63 = vsel %vm1108_vm12, %v1281_v58, %v1293_v60 }
 0x45d   : > { %v1263_v37 = vsel %vm1117_vm15, %v1261_v31, %v4036_v24 }
 0x45e   : > { %v1296_v1 = vpop.xlane.xlu1 %1295 }
 0x45f   : > { %v1305_v49 = vpop.xlane.xlu0 %1304 }
 0x460   : > { %v1383_v59 = vsel %vm1111_vm13, %v1381_v63, %v1305_v49 }
 0x462   : > { %v1186_v2 = vpop.xlane.xlu1 %1185 }
 0x463   : > { %v4075_v3 = vpop.xlane.xlu0 %1404  ;;  %v1262_v61 = vsel %vm1114_vm14, %v1260_v47, %v1186_v2 }
 0x464   : > { %v1264_v53 = vsel %vm1117_vm15, %v1262_v61, %v4049_v33  ;;  %v1545_v33 = vcombine.high %v4020_v6, %v4020_v6 }
 0x466   : > { %v1308_v5 = vpop.xlane.xlu1 %1307 }
 0x467   : > { %v1417_v7 = vpop.xlane.xlu0 %1416 }
 0x46a   : > { %v4077_v8 = vpop.xlane.xlu1 %1407 }
 0x46b   : > { %v1317_v9 = vpop.xlane.xlu0 %1316 }
 0x46e   : > { %v4079_v10 = vpop.xlane.xlu1 %1419 }
 0x46f   : > { %v1429_v11 = vpop.xlane.xlu0 %1428 }
 0x472   : > { %v1320_v12 = vpop.xlane.xlu1 %1319 }
 0x473   : > { %v1211_v13 = vpop.xlane.xlu0 %1210 }
 0x474   : > { %v1265_v40 = vsel %vm1120_vm0, %v1263_v37, %v1211_v13 }
 0x476   : > { %v4081_v14 = vpop.xlane.xlu1 %1431 }
 0x477   : > { %v1441_v15 = vpop.xlane.xlu0 %1440 }
 0x47a   : > { %v1214_v16 = vpop.xlane.xlu1 %1213 }
 0x47b   : > { %v1225_v18 = vpop.xlane.xlu0 %1224 }
 0x47c   : > { %v1267_v43 = vsel %vm1123_vm11, %v1265_v40, %v1225_v18  ;;  %v1266_v18 = vsel %vm1120_vm0, %v1264_v53, %v1214_v16 }
 0x47e   : > { %v4083_v19 = vpop.xlane.xlu1 %1443 }
 0x47f   : > { %v1341_v20 = vpop.xlane.xlu0 %1340 }
 0x482   : > { %v1228_v21 = vpop.xlane.xlu1 %1227 }
 0x483   : > { %v1239_v22 = vpop.xlane.xlu0 %1238  ;;  %v1268_v23 = vsel %vm1123_vm11, %v1266_v18, %v1228_v21  ;;  %v1382_v21 = vsel %vm1108_vm12, %v4073_v62, %v1296_v1 }
 0x484   : > { %v1269_v48 = vsel %vm1126_vm2, %v1267_v43, %v1239_v22  ;;  %v1385_v22 = vsel %vm1114_vm14, %v1383_v59, %v1317_v9  ;;  %v1558_v9 = vrot.slane %v1545_v33, %v4015_v4  ;;  %v1384_v40 = vsel %vm1111_vm13, %v1382_v21, %v1308_v5 }
 0x485   : > { %v1387_v49 = vsel %vm1117_vm15, %v1385_v22, %v4046_v30  ;;  %v1505_v30 = vsel %vm1108_vm12, %v4075_v3, %v1417_v7  ;;  %v1386_v1 = vsel %vm1114_vm14, %v1384_v40, %v1320_v12  ;;  %v1546_v5 = vcombine.high %v1544_v32, %v1544_v32 }
 0x486   : > { %v1344_v26 = vpop.xlane.xlu1 %1343  ;;  %v1389_v31 = vsel %vm1120_vm0, %v1387_v49, %v1341_v20  ;;  %v1507_v62 = vsel %vm1111_vm13, %v1505_v30, %v1429_v11  ;;  %v1388_v3 = vsel %vm1117_vm15, %v1386_v1, %v4058_v45 }
 0x487   : > { %v1353_v28 = vpop.xlane.xlu0 %1352  ;;  %v1509_v43 = vsel %vm1114_vm14, %v1507_v62, %v1441_v15  ;;  %v1390_v11 = vsel %vm1120_vm0, %v1388_v3, %v1344_v26  ;;  %v1562_v45 = vrot.slane %v1546_v5, %v4015_v4 }
 0x488   : > { %v1391_v37 = vsel %vm1123_vm11, %v1389_v31, %v1353_v28  ;;  %v1511_v12 = vsel %vm1117_vm15, %v1509_v43, %v4053_v35 }
 0x48a   : > { %v1242_v34 = vpop.xlane.xlu1 %1241 }
 0x48b   : > { %v1465_v36 = vpop.xlane.xlu0 %1464  ;;  %v1270_v58 = vsel %vm1126_vm2, %v1268_v23, %v1242_v34 }
 0x48c   : > { %v1513_v15 = vsel %vm1120_vm0, %v1511_v12, %v1465_v36 }
 0x48e   : > { %v1356_v46 = vpop.xlane.xlu1 %1355 }
 0x48f   : > { %v1253_v44 = vpop.xlane.xlu0 %1252  ;;  %v1392_v32 = vsel %vm1123_vm11, %v1390_v11, %v1356_v46 }
 0x490   : > { %v1271_v55 = vsel %vm1037_vm3, %v1269_v48, %v1253_v44 }
 0x491   : > { %v1569_v56 = vadd.f32 %v1554_v42, %v1271_v55  ;;  %v1506_v55 = vsel %vm1108_vm12, %v4077_v8, %v4079_v10 }
 0x492   : > { %v4101_v24 = vpop.xlane.xlu1 %1467  ;;  %v1508_v35 = vsel %vm1111_vm13, %v1506_v55, %v4081_v14  ;;  %vm2150_vm13 = vcmask 130048  }
 0x493   : > { %v1365_v57 = vpop.xlane.xlu0 %1364  ;;  %v4108_v13 = vsel %vm4032_vm9, %v1569_v56, -1e+30  ;;  %v1510_v4 = vsel %vm1114_vm14, %v1508_v35, %v4083_v19  ;;  %vm2153_vm14 = vcmask 195584  }
 0x494   : > { %v1594_v2 = vsel %vm1587_vm8, %v4108_v13, -inf }
 0x495   : > { %1595 = vmax.xlane.f32.xlu0 %v1594_v2  ;;  %v1512_v2 = vsel %vm1117_vm15, %v1510_v4, %v4061_v51  ;;  %vm4847_vm15 = vcmask 261120  }
 0x496   : > { %v1256_v60 = vpop.xlane.xlu1 %1255  ;;  %v1514_v23 = vsel %vm1120_vm0, %v1512_v2, %v4101_v24  ;;  %vm4850_vm0 = vmmov %vm4847_vm15 }
 0x497   : > { %v1272_v27 = vsel %vm1037_vm3, %v1270_v58, %v1256_v60  ;;  %v1477_v29 = vpop.xlane.xlu0 %1476  ;;  %vm4852_vm10 = vmmov %vm4850_vm0 }
 0x498   : > { %v1570_v16 = vadd.f32 %v1554_v42, %v1272_v27  ;;  %v1393_v42 = vsel %vm1126_vm2, %v1391_v37, %v1365_v57  ;;  %v1515_v56 = vsel %vm1123_vm11, %v1513_v15, %v1477_v29  ;;  %vm4853_vm1 = vmmov %vm4850_vm0 }
 0x49a   : > { %v1368_v6 = vpop.xlane.xlu1 %1367  ;;  %v4129_v34 = vsel %vm4063_vm4, %v1570_v16, -1e+30 }
 0x49b   : > { %v1377_v20 = vpop.xlane.xlu0 %1376  ;;  %v1597_v0 = vsel %vm1587_vm8, %v4129_v34, -inf  ;;  %v1394_v26 = vsel %vm1126_vm2, %v1392_v32, %v1368_v6 }
 0x49c   : > { %v1395_v28 = vsel %vm1037_vm3, %v1393_v42, %v1377_v20  ;;  %1598 = vmax.xlane.f32.xlu1 %v1597_v0  ;;  %v3400_v42 = vmov 4  }
 0x49d   : > { %v1571_v47 = vadd.f32 %v1558_v9, %v1395_v28  ;;  %3144 = vset.pattern.permute.xlu0 %v3400_v42  ;;  %3145 = vset.pattern.permute.xlu1 %v3400_v42 }
 0x49e   : > { %v1480_v48 = vpop.xlane.xlu1 %1479 }
 0x49f   : > { %v1489_v7 = vpop.xlane.xlu0 %1488  ;;  %v4145_v44 = vsel %vm4032_vm9, %v1571_v47, -1e+30  ;;  %v1516_v33 = vsel %vm1123_vm11, %v1514_v23, %v1480_v48  ;;  %v3403_v23 = vmov 3   ;;  %vm4851_vm11 = vmmov %vm4850_vm0 }
 0x4a0   : > { %v1600_v61 = vsel %vm1587_vm8, %v4145_v44, -inf  ;;  %v1517_v53 = vsel %vm1126_vm2, %v1515_v56, %v1489_v7 }
 0x4a1   : > { %1601 = vmax.xlane.f32.xlu0 %v1600_v61 }
 0x4a2   : > { %v1380_v63 = vpop.xlane.xlu1 %1379 }
 0x4a3   : > { %v1396_v36 = vsel %vm1037_vm3, %v1394_v26, %v1380_v63  ;;  %v1501_v46 = vpop.xlane.xlu0 %1500 }
 0x4a4   : > { %v1572_v57 = vadd.f32 %v1558_v9, %v1396_v36  ;;  %v1519_v59 = vsel %vm1037_vm3, %v1517_v53, %v1501_v46 }
 0x4a5   : > { %v1573_v8 = vadd.f32 %v1562_v45, %v1519_v59 }
 0x4a6   : > { %v1492_v10 = vpop.xlane.xlu1 %1491  ;;  %v1584_v18 = vsel %vm4063_vm4, %v1572_v57, -1e+30 }
 0x4a7   : > { %v1603_v14 = vsel %vm1587_vm8, %v1584_v18, -inf  ;;  %v1585_v22 = vsel %vm4032_vm9, %v1573_v8, -1e+30  ;;  %v1518_v58 = vsel %vm1126_vm2, %v1516_v33, %v1492_v10  ;;  %v3405_v33 = vmov 5  }
 0x4a8   : > { %1604 = vmax.xlane.f32.xlu1 %v1603_v14  ;;  %v1606_v19 = vsel %vm1587_vm8, %v1585_v22, -inf  ;;  %vm4839_vm2 = vcmp.lt.s32.totalorder %v3715_v50, 3  ;;  %vm4845_vm9 = vcmp.lt.s32.totalorder %v3715_v50, 5 }
 0x4a9   : > { %1607 = vmax.xlane.f32.xlu0 %v1606_v19  ;;  %v3404_v19 = vmov 1   ;;  %vm4846_vm12 = vmmov %vm4845_vm9 }
 0x4aa   : > { %v1504_v60 = vpop.xlane.xlu1 %1503 }
 0x4ab   : > { %v1520_v27 = vsel %vm1037_vm3, %v1518_v58, %v1504_v60  ;;  %v3406_v58 = vmov 6   ;;  %v3407_v60 = vmov 8  }
 0x4ac   : > { %v1574_v51 = vadd.f32 %v1562_v45, %v1520_v27  ;;  %v3408_v27 = vmov 7  }
 0x4ae   : > { %v1586_v29 = vsel %vm4063_vm4, %v1574_v51, -1e+30  ;;  %v4186_v9 = vpop.permute.xlu1 %971  ;;  %vm4840_vm4 = vmmov %vm4839_vm2 }
 0x4af   : > { %v1609_v39 = vsel %vm1587_vm8, %v1586_v29, -inf }
 0x4b0   : > { %1610 = vmax.xlane.f32.xlu1 %v1609_v39 }
 0x4bf   : > { %973 = vrot.lane.b32.xlu0 %v3694_v41, %s3399_s6 }
 0x4ca   : > { %v1590_v24 = vpop.xlane.xlu0 %1589 }
 0x4cb   : > { %v1612_v49 = vsub.f32 %v4040_v25, %v1590_v24 }
 0x4cd   : > { %v1620_v16 = vmul.f32 1.442695, %v1612_v49 }
 0x4cf   : > { %3214 = vpow2.f32 %v1620_v16 }
 0x4d9   : > { %v3215_v31 = vpop.eup %3214 }
 0x4da   : > { %v1636_v21 = vsel %vm1587_vm8, %v3215_v31, 0.0 }
 0x4de   : > { %1637 = vadd.xlane.f32.xlu0 %v1636_v21 }
 0x4df   : > { %v1593_v37 = vpop.xlane.xlu1 %1592 }
 0x4e0   : > { %v1613_v52 = vsub.f32 %v4069_v54, %v1593_v37 }
 0x4e2   : > { %v1622_v6 = vmul.f32 1.442695, %v1613_v52 }
 0x4e4   : > { %3216 = vpow2.f32 %v1622_v6 }
 0x4ee   : > { %v3217_v40 = vpop.eup %3216 }
 0x4ef   : > { %v1639_v30 = vsel %vm1587_vm8, %v3217_v40, 0.0 }
 0x4f0   : > { %1640 = vadd.xlane.f32.xlu1 %v1639_v30 }
 0x522   : > { %v1596_v25 = vpop.xlane.xlu0 %1595 }
 0x523   : > { %v1614_v20 = vsub.f32 %v4108_v13, %v1596_v25 }
 0x525   : > { %v1624_v0 = vmul.f32 1.442695, %v1614_v20 }
 0x527   : > { %3218 = vpow2.f32 %v1624_v0 }
 0x529   : > { %v1599_v62 = vpop.xlane.xlu1 %1598 }
 0x52a   : > { %v1615_v1 = vsub.f32 %v4129_v34, %v1599_v62 }
 0x52c   : > { %v1626_v54 = vmul.f32 1.442695, %v1615_v1 }
 0x52e   : > { %3220 = vpow2.f32 %v1626_v54  ;;  %v1602_v28 = vpop.xlane.xlu0 %1601 }
 0x52f   : > { %v1616_v43 = vsub.f32 %v4145_v44, %v1602_v28  ;;  %v977_v28 = vrot.slane %v4186_v9, 4 }
 0x531   : > { %v4196_v47 = vpop.eup %3218  ;;  %v1628_v5 = vmul.f32 1.442695, %v1616_v43 }
 0x532   : > { %v1642_v48 = vsel %vm1587_vm8, %v4196_v47, 0.0 }
 0x533   : > { %3222 = vpow2.f32 %v1628_v5  ;;  %1643 = vadd.xlane.f32.xlu0 %v1642_v48 }
 0x535   : > { %v1605_v3 = vpop.xlane.xlu1 %1604 }
 0x536   : > { %v1617_v13 = vsub.f32 %v1584_v18, %v1605_v3  ;;  %v1608_v7 = vpop.xlane.xlu0 %1607  ;;  %v3401_v18 = vmov 0  }
 0x537   : > { %v1618_v11 = vsub.f32 %v1585_v22, %v1608_v7  ;;  %v3402_v22 = vmov 2  }
 0x538   : > { %v4200_v12 = vpop.eup %3220  ;;  %v1630_v34 = vmul.f32 1.442695, %v1617_v13  ;;  %v995_v13 = vrot.slane %v4186_v9, 6 }
 0x539   : > { %v1632_v61 = vmul.f32 1.442695, %v1618_v11  ;;  %v1645_v15 = vsel %vm1587_vm8, %v4200_v12, 0.0 }
 0x53a   : > { %3224 = vpow2.f32 %v1630_v34  ;;  %1646 = vadd.xlane.f32.xlu1 %v1645_v15  ;;  %v4220_v4 = vpop.permute.xlu0 %973 }
 0x53b   : > { %3226 = vpow2.f32 %v1632_v61  ;;  %v978_v1 = vrot.slane %v4220_v4, 4  ;;  %v996_v3 = vrot.slane %v4220_v4, 6  ;;  %v1005_v61 = vrot.slane %v4220_v4, 7 }
 0x53c   : > { %v987_v15 = vrot.slane %v4220_v4, 5 }
 0x53d   : > { %v4204_v44 = vpop.eup %3222  ;;  %v1611_v32 = vpop.xlane.xlu1 %1610  ;;  %v4297_v43 = vsel %vm968_vm5, %v977_v28, %v978_v1  ;;  %v4310_v7 = vsel %vm992_vm6, %v996_v3, %v995_v13 }
 0x53e   : > { %v1619_v45 = vsub.f32 %v1586_v29, %v1611_v32  ;;  %v1648_v55 = vsel %vm1587_vm8, %v4204_v44, 0.0  ;;  %v986_v32 = vrot.slane %v4186_v9, 5 }
 0x53f   : > { %1649 = vadd.xlane.f32.xlu0 %v1648_v55 }
 0x540   : > { %v1634_v56 = vmul.f32 1.442695, %v1619_v45  ;;  %v4323_v45 = vsel %vm968_vm5, %v978_v1, %v977_v28  ;;  %vm4841_vm5 = vcmp.lt.s32.totalorder %v3715_v50, 7 }
 0x542   : > { %3228 = vpow2.f32 %v1634_v56 }
 0x544   : > { %v4208_v26 = vpop.eup %3224 }
 0x545   : > { %v4210_v63 = vpop.eup %3226  ;;  %v1651_v35 = vsel %vm1587_vm8, %v4208_v26, 0.0 }
 0x546   : > { %1652 = vadd.xlane.f32.xlu1 %v1651_v35  ;;  %v1654_v53 = vsel %vm1587_vm8, %v4210_v63, 0.0 }
 0x547   : > { %1655 = vadd.xlane.f32.xlu0 %v1654_v53 }
 0x54c   : > { %v4216_v36 = vpop.eup %3228 }
 0x54d   : > { %v1657_v46 = vsel %vm1587_vm8, %v4216_v36, 0.0  ;;  %vm4842_vm8 = vcmp.lt.s32.totalorder %v3715_v50, 6 }
 0x54e   : > { %1658 = vadd.xlane.f32.xlu1 %v1657_v46  ;;  %v1014_v46 = vrot.slane %v4220_v4, 1 }
 0x56b   : > { %v1638_v57 = vpop.xlane.xlu0 %1637 }
 0x56c   : > { %3230 = vrcp.f32 %v1638_v57 }
 0x576   : > { %v3231_v59 = vpop.eup %3230 }
 0x577   : > { %v1668_v8 = vmul.f32 %v3231_v59, %v3215_v31  ;;  %v1013_v59 = vrot.slane %v4186_v9, 1 }
 0x579   : > { %1727 = vperm.xlu0 %3144, %v1668_v8  }
 0x57d   : > { %v1641_v10 = vpop.xlane.xlu1 %1640  ;;  %3147 = vset.pattern.permute.xlu0 %v3401_v18 }
 0x57e   : > { %3232 = vrcp.f32 %v1641_v10 }
 0x588   : > { %v3233_v2 = vpop.eup %3232 }
 0x589   : > { %v1669_v14 = vmul.f32 %v3233_v2, %v3217_v40  ;;  %v4349_v2 = vsel %vm4841_vm5, %v1013_v59, %v1014_v46 }
 0x58b   : > { %1683 = vperm.xlu0 %3147, %v1669_v14   ;;  %1731 = vperm.xlu1 %3145, %v1669_v14  }
 0x58f   : > { %3149 = vset.pattern.permute.xlu0 %v3402_v22  ;;  %3146 = vset.pattern.permute.xlu1 %v3401_v18 }
 0x590   : > { %1703 = vperm.xlu0 %3149, %v1668_v8   ;;  %1678 = vperm.xlu1 %3146, %v1668_v8  }
 0x594   : > { %3152 = vset.pattern.permute.xlu0 %v3403_v23  ;;  %3148 = vset.pattern.permute.xlu1 %v3404_v19 }
 0x595   : > { %1719 = vperm.xlu0 %3152, %v1669_v14   ;;  %1691 = vperm.xlu1 %3148, %v1668_v8  }
 0x599   : > { %3153 = vset.pattern.permute.xlu0 %v3405_v33  ;;  %1695 = vperm.xlu1 %3148, %v1669_v14  }
 0x59a   : > { %1747 = vperm.xlu0 %3153, %v1668_v8  }
 0x59d   : > { %3150 = vset.pattern.permute.xlu1 %v3402_v22 }
 0x59e   : > { %3156 = vset.pattern.permute.xlu0 %v3406_v58  ;;  %1707 = vperm.xlu1 %3150, %v1669_v14  }
 0x59f   : > { %1763 = vperm.xlu0 %3156, %v1669_v14  }
 0x5a2   : > { %3151 = vset.pattern.permute.xlu1 %v3403_v23 }
 0x5a3   : > { %3158 = vset.pattern.permute.xlu0 %v3407_v60  ;;  %1715 = vperm.xlu1 %3151, %v1668_v8  }
 0x5a4   : > { %1783 = vperm.xlu0 %3158, %v1668_v8  }
 0x5a7   : > { %3154 = vset.pattern.permute.xlu1 %v3405_v33 }
 0x5a8   : > { %1751 = vperm.xlu1 %3154, %v1669_v14   ;;  %3161 = vset.pattern.permute.xlu0 %v3401_v18 }
 0x5ac   : > { %3155 = vset.pattern.permute.xlu1 %v3406_v58 }
 0x5ad   : > { %1759 = vperm.xlu1 %3155, %v1668_v8  }
 0x5b1   : > { %3157 = vset.pattern.permute.xlu1 %v3408_v27 }
 0x5b2   : > { %1771 = vperm.xlu1 %3157, %v1668_v8   ;;  %v4344_v8 = vsel %vm4840_vm4, %v986_v32, %v987_v15  ;;  %vm4858_vm4 = vmmov %vm4850_vm0 }
 0x5b6   : > { %1775 = vperm.xlu1 %3157, %v1669_v14  }
 0x5ba   : > { %3159 = vset.pattern.permute.xlu1 %v3407_v60 }
 0x5bb   : > { %1787 = vperm.xlu1 %3159, %v1669_v14  }
 0x5bf   : > { %3160 = vset.pattern.permute.xlu1 %v3400_v42 }
 0x5c0   : > { %v1644_v51 = vpop.xlane.xlu0 %1643 }
 0x5c1   : > { %3234 = vrcp.f32 %v1644_v51 }
 0x5c7   : > { %v1647_v29 = vpop.xlane.xlu1 %1646 }
 0x5c8   : > { %3236 = vrcp.f32 %v1647_v29  ;;  %v1023_v29 = vrot.slane %v4220_v4, 2 }
 0x5cb   : > { %v3235_v39 = vpop.eup %3234 }
 0x5cc   : > { %v4239_v24 = vmul.f32 %v3235_v39, %v4196_v47  ;;  %v1650_v49 = vpop.xlane.xlu0 %1649 }
 0x5cd   : > { %3238 = vrcp.f32 %v1650_v49  ;;  %v1022_v49 = vrot.slane %v4186_v9, 2 }
 0x5ce   : > { %1796 = vperm.xlu0 %3161, %v4239_v24   ;;  %1845 = vperm.xlu1 %3160, %v4239_v24  }
 0x5d2   : > { %v3237_v16 = vpop.eup %3236  ;;  %3163 = vset.pattern.permute.xlu0 %v3404_v19 }
 0x5d3   : > { %v4245_v31 = vmul.f32 %v3237_v16, %v4200_v12  ;;  %1809 = vperm.xlu0 %3163, %v4239_v24   ;;  %v1653_v21 = vpop.xlane.xlu1 %1652  ;;  %v4362_v16 = vsel %vm992_vm6, %v995_v13, %v996_v3  ;;  %vm4843_vm6 = vmmov %vm4841_vm5 }
 0x5d4   : > { %3240 = vrcp.f32 %v1653_v21  ;;  %v1656_v37 = vpop.xlane.xlu0 %1655  ;;  %vm4859_vm5 = vmmov %vm4850_vm0 }
 0x5d5   : > { %1849 = vperm.xlu1 %3160, %v4245_v31   ;;  %3242 = vrcp.f32 %v1656_v37 }
 0x5d7   : > { %v3239_v52 = vpop.eup %3238  ;;  %3166 = vset.pattern.permute.xlu0 %v3401_v18 }
 0x5d8   : > { %v4251_v6 = vmul.f32 %v3239_v52, %v4204_v44  ;;  %v1004_v44 = vrot.slane %v4186_v9, 7  ;;  %v4367_v52 = vsel %vm4842_vm8, %v1023_v29, %v1022_v49 }
 0x5da   : > { %1963 = vperm.xlu1 %3160, %v4251_v6   ;;  %v4327_v55 = vsel %vm1001_vm7, %v1004_v44, %v1005_v61 }
 0x5db   : > { %v1659_v40 = vpop.xlane.xlu1 %1658 }
 0x5dc   : > { %3244 = vrcp.f32 %v1659_v40 }
 0x5de   : > { %v3241_v30 = vpop.eup %3240 }
 0x5df   : > { %v4255_v42 = vmul.f32 %v3241_v30, %v4208_v26  ;;  %v3243_v25 = vpop.eup %3242  ;;  %v4333_v26 = vsel %vm4839_vm2, %v987_v15, %v986_v32  ;;  %v1031_v32 = vrot.slane %v4186_v9, 3  ;;  %vm4856_vm2 = vmmov %vm4850_vm0 }
 0x5e0   : > { %v4260_v20 = vmul.f32 %v3243_v25, %v4210_v63 }
 0x5e1   : > { %1919 = vperm.xlu0 %3166, %v4255_v42   ;;  %1967 = vperm.xlu1 %3160, %v4255_v42  }
 0x5e5   : > { %3169 = vset.pattern.permute.xlu0 %v3402_v22  ;;  %2081 = vperm.xlu1 %3160, %v4260_v20  }
 0x5e6   : > { %v3245_v0 = vpop.eup %3244  ;;  %1825 = vperm.xlu0 %3169, %v4245_v31  }
 0x5e7   : > { %v4266_v62 = vmul.f32 %v3245_v0, %v4216_v36  ;;  %v4378_v0 = vsel %vm1001_vm7, %v1005_v61, %v1004_v44  ;;  %vm4844_vm7 = vmmov %vm4842_vm8  ;;  %v1032_v44 = vrot.slane %v4220_v4, 3  ;;  %vm4861_vm8 = vcmask (!%p2937_p1), 261120  }
 0x5e8   : > { %v4404_v61 = vsel %vm4844_vm7, %v1022_v49, %v1023_v29  ;;  %vm3412_vm7 = vmmov (!%p2937_p1), 0  }
 0x5e9   : > { %2085 = vperm.xlu1 %3160, %v4266_v62  }
 0x5ea   : > { %3171 = vset.pattern.permute.xlu0 %v3401_v18 }
 0x5eb   : > { %2037 = vperm.xlu0 %3171, %v4266_v62  }
 0x5ed   : > { %3162 = vset.pattern.permute.xlu1 %v3401_v18 }
 0x5ee   : > { %1801 = vperm.xlu1 %3162, %v4245_v31  }
 0x5ef   : > { %3173 = vset.pattern.permute.xlu0 %v3402_v22 }
 0x5f0   : > { %1939 = vperm.xlu0 %3173, %v4251_v6  }
 0x5f2   : > { %3164 = vset.pattern.permute.xlu1 %v3404_v19 }
 0x5f3   : > { %1813 = vperm.xlu1 %3164, %v4245_v31  }
 0x5f4   : > { %2057 = vperm.xlu0 %3173, %v4260_v20  }
 0x5f7   : > { %3165 = vset.pattern.permute.xlu1 %v3401_v18 }
 0x5f8   : > { %3178 = vset.pattern.permute.xlu0 %v3403_v23  ;;  %1914 = vperm.xlu1 %3165, %v4251_v6   ;;  %v4290_v54 = vpop.permute.xlu0 %1727 }
 0x5f9   : > { %1955 = vperm.xlu0 %3178, %v4255_v42  }
 0x5fc   : > { %3167 = vset.pattern.permute.xlu1 %v3404_v19 }
 0x5fd   : > { %3180 = vset.pattern.permute.xlu0 %v3405_v33  ;;  %1927 = vperm.xlu1 %3167, %v4251_v6  }
 0x5fe   : > { %1869 = vperm.xlu0 %3180, %v4245_v31  }
 0x601   : > { %1931 = vperm.xlu1 %3167, %v4255_v42  }
 0x602   : > { %1987 = vperm.xlu0 %3180, %v4255_v42  }
 0x605   : > { %3168 = vset.pattern.permute.xlu1 %v3402_v22 }
 0x606   : > { %2101 = vperm.xlu0 %3180, %v4260_v20   ;;  %1821 = vperm.xlu1 %3168, %v4239_v24  }
 0x60a   : > { %v1684_v47 = vpop.permute.xlu0 %1683  ;;  %3184 = vset.pattern.permute.xlu0 %v3406_v58  ;;  %3170 = vset.pattern.permute.xlu1 %v3401_v18  ;;  %v4301_v5 = vpop.permute.xlu1 %1731 }
 0x60b   : > { %v1687_v48 = vmul.f32 %v1684_v47, %v4297_v43  ;;  %1999 = vperm.xlu0 %3184, %v4255_v42   ;;  %2032 = vperm.xlu1 %3170, %v4260_v20  }
 0x60f   : > { %v1704_v11 = vpop.permute.xlu0 %1703  ;;  %3185 = vset.pattern.permute.xlu0 %v3408_v27  ;;  %3172 = vset.pattern.permute.xlu1 %v3404_v19  ;;  %v1679_v12 = vpop.permute.xlu1 %1678 }
 0x610   : > { %v1710_v34 = vmul.f32 %v1704_v11, %v4310_v7  ;;  %1889 = vperm.xlu0 %3185, %v4239_v24   ;;  %2045 = vperm.xlu1 %3172, %v4260_v20   ;;  %v1686_v35 = vmul.f32 %v1679_v12, %v4323_v45  ;;  %v4394_v11 = vsel %vm4843_vm6, %v1014_v46, %v1013_v59  ;;  %vm4862_vm6 = vmmov (!%p2937_p1), %vm4861_vm8 }
 0x614   : > { %v1720_v56 = vpop.permute.xlu0 %1719  ;;  %3188 = vset.pattern.permute.xlu0 %v3406_v58  ;;  %2049 = vperm.xlu1 %3172, %v4266_v62   ;;  %v1692_v63 = vpop.permute.xlu1 %1691 }
 0x615   : > { %v1723_v53 = vmul.f32 %v1720_v56, %v4327_v55  ;;  %v1698_v36 = vmul.f32 %v1692_v63, %v4333_v26  ;;  %2117 = vperm.xlu0 %3188, %v4266_v62   ;;  %v4414_v56 = vsel %vm4845_vm9, %v1031_v32, %v1032_v44  ;;  %vm2483_vm9 = vcmp.eq.s32.totalorder (!%p2937_p1), %v3715_v50, 0 }
 0x617   : > { %v1700_v57 = vadd.f32 %v1698_v36, %v1686_v35  ;;  %v4422_v35 = vsel %vm4846_vm12, %v1032_v44, %v1031_v32  ;;  %v1734_v44 = vmul.f32 %v4290_v54, %v3692_v38  ;;  %vm2494_vm12 = vcmask (!%p2937_p1), 523264  }
 0x618   : > { %3174 = vset.pattern.permute.xlu1 %v3402_v22  ;;  %v1696_v10 = vpop.permute.xlu1 %1695 }
 0x619   : > { %v1699_v18 = vmul.f32 %v1696_v10, %v4344_v8  ;;  %v1748_v14 = vpop.permute.xlu0 %1747  ;;  %3191 = vset.pattern.permute.xlu0 %v3407_v60  ;;  %1943 = vperm.xlu1 %3174, %v4255_v42   ;;  %v1712_v19 = vadd.f32 %v1710_v34, %v1700_v57 }
 0x61a   : > { %v4354_v51 = vmul.f32 %v1748_v14, %v4349_v2  ;;  %1905 = vperm.xlu0 %3191, %v4245_v31  }
 0x61b   : > { %v1701_v39 = vadd.f32 %v1699_v18, %v1687_v48 }
 0x61d   : > { %3175 = vset.pattern.permute.xlu1 %v3403_v23  ;;  %v1708_v21 = vpop.permute.xlu1 %1707 }
 0x61e   : > { %v1711_v37 = vmul.f32 %v1708_v21, %v4362_v16  ;;  %v1764_v40 = vpop.permute.xlu0 %1763  ;;  %3193 = vset.pattern.permute.xlu0 %v3408_v27  ;;  %1833 = vperm.xlu1 %3175, %v4239_v24  }
 0x61f   : > { %v4372_v30 = vmul.f32 %v1764_v40, %v4367_v52  ;;  %2129 = vperm.xlu0 %3193, %v4266_v62  }
 0x620   : > { %v1713_v25 = vadd.f32 %v1711_v37, %v1701_v39 }
 0x622   : > { %1837 = vperm.xlu1 %3175, %v4245_v31   ;;  %v1716_v1 = vpop.permute.xlu1 %1715  ;;  %v4380_v28 = vadd.f32 %v1723_v53, %v1713_v25 }
 0x623   : > { %v1722_v47 = vmul.f32 %v1716_v1, %v4378_v0  ;;  %v1784_v48 = vpop.permute.xlu0 %1783  ;;  %3194 = vset.pattern.permute.xlu0 %v3407_v60 }
 0x624   : > { %v4385_v3 = vmul.f32 %v1784_v48, %v4297_v43  ;;  %2019 = vperm.xlu0 %3194, %v4251_v6  }
 0x625   : > { %v4388_v13 = vadd.f32 %v1722_v47, %v1712_v19 }
 0x626   : > { %3176 = vset.pattern.permute.xlu1 %v3402_v22 }
 0x627   : > { %2061 = vperm.xlu1 %3176, %v4266_v62   ;;  %v1752_v12 = vpop.permute.xlu1 %1751 }
 0x628   : > { %v4397_v34 = vmul.f32 %v1752_v12, %v4394_v11  ;;  %2141 = vperm.xlu0 %3194, %v4266_v62  }
 0x62b   : > { %3177 = vset.pattern.permute.xlu1 %v3403_v23 }
 0x62c   : > { %1951 = vperm.xlu1 %3177, %v4251_v6   ;;  %v1760_v22 = vpop.permute.xlu1 %1759 }
 0x62d   : > { %v4407_v15 = vmul.f32 %v1760_v22, %v4404_v61 }
 0x630   : > { %2069 = vperm.xlu1 %3177, %v4260_v20  }
 0x631   : > { %v1772_v23 = vpop.permute.xlu1 %1771 }
 0x632   : > { %v4417_v63 = vmul.f32 %v1772_v23, %v4414_v56 }
 0x634   : > { %2073 = vperm.xlu1 %3177, %v4266_v62  }
 0x635   : > { %v1776_v53 = vpop.permute.xlu1 %1775 }
 0x636   : > { %v4425_v4 = vmul.f32 %v1776_v53, %v4422_v35 }
 0x638   : > { %3179 = vset.pattern.permute.xlu1 %v3405_v33 }
 0x639   : > { %1865 = vperm.xlu1 %3179, %v4239_v24  }
 0x63a   : > { %v1788_v9 = vpop.permute.xlu1 %1787 }
 0x63b   : > { %v4430_v36 = vmul.f32 %v1788_v9, %v4323_v45 }
 0x63d   : > { %1983 = vperm.xlu1 %3179, %v4251_v6  }
 0x641   : > { %3181 = vset.pattern.permute.xlu1 %v3406_v58 }
 0x642   : > { %1877 = vperm.xlu1 %3181, %v4239_v24  }
 0x646   : > { %1881 = vperm.xlu1 %3181, %v4245_v31  }
 0x64a   : > { %3182 = vset.pattern.permute.xlu1 %v3405_v33 }
 0x64b   : > { %2105 = vperm.xlu1 %3182, %v4266_v62  }
 0x64d   : > { %v1797_v46 = vpop.permute.xlu0 %1796  ;;  %v1846_v57 = vpop.permute.xlu1 %1845 }
 0x64e   : > { %v1804_v59 = vmul.f32 %v1797_v46, %v4323_v45  ;;  %v1852_v10 = vmul.f32 %v1846_v57, %v3692_v38 }
 0x64f   : > { %3183 = vset.pattern.permute.xlu1 %v3406_v58 }
 0x650   : > { %1995 = vperm.xlu1 %3183, %v4251_v6   ;;  %1856 = vrot.lane.b32.xlu0 %v1852_v10, %s3399_s6 }
 0x652   : > { %v1810_v18 = vpop.permute.xlu0 %1809 }
 0x653   : > { %v1816_v14 = vmul.f32 %v1810_v18, %v4333_v26 }
 0x654   : > { %3186 = vset.pattern.permute.xlu1 %v3408_v27  ;;  %v1850_v62 = vpop.permute.xlu1 %1849 }
 0x655   : > { %v1818_v33 = vadd.f32 %v1816_v14, %v1804_v59  ;;  %1893 = vperm.xlu1 %3186, %v4245_v31   ;;  %v1853_v46 = vmul.f32 %v1850_v62, %v3694_v41 }
 0x659   : > { %3187 = vset.pattern.permute.xlu1 %v3406_v58  ;;  %v1964_v19 = vpop.permute.xlu1 %1963 }
 0x65a   : > { %2113 = vperm.xlu1 %3187, %v4260_v20   ;;  %v1970_v14 = vmul.f32 %v1964_v19, %v3692_v38 }
 0x65e   : > { %3189 = vset.pattern.permute.xlu1 %v3408_v27 }
 0x65f   : > { %2007 = vperm.xlu1 %3189, %v4251_v6  }
 0x660   : > { %v1968_v29 = vpop.permute.xlu1 %1967  ;;  %v1920_v49 = vpop.permute.xlu0 %1919 }
 0x661   : > { %v1971_v39 = vmul.f32 %v1968_v29, %v3694_v41  ;;  %v1923_v54 = vmul.f32 %v1920_v49, %v4297_v43 }
 0x663   : > { %2011 = vperm.xlu1 %3189, %v4255_v42   ;;  %1976 = vrot.lane.b32.xlu0 %v1971_v39, %s3399_s6 }
 0x664   : > { %v2082_v21 = vpop.permute.xlu1 %2081 }
 0x665   : > { %v1826_v37 = vpop.permute.xlu0 %1825 }
 0x666   : > { %v1829_v47 = vmul.f32 %v1826_v37, %v4362_v16 }
 0x667   : > { %3190 = vset.pattern.permute.xlu1 %v3407_v60 }
 0x668   : > { %1901 = vperm.xlu1 %3190, %v4239_v24   ;;  %v2086_v58 = vpop.permute.xlu1 %2085 }
 0x669   : > { %v2089_v31 = vmul.f32 %v2086_v58, %v3694_v41 }
 0x66a   : > { %v2038_v25 = vpop.permute.xlu0 %2037 }
 0x66b   : > { %2094 = vrot.lane.b32.xlu0 %v2089_v31, %s3399_s6 }
 0x66c   : > { %3192 = vset.pattern.permute.xlu1 %v3408_v27 }
 0x66d   : > { %2125 = vperm.xlu1 %3192, %v4260_v20   ;;  %v1802_v6 = vpop.permute.xlu1 %1801 }
 0x66e   : > { %v1805_v40 = vmul.f32 %v1802_v6, %v4297_v43 }
 0x66f   : > { %v1940_v12 = vpop.permute.xlu0 %1939 }
 0x671   : > { %3195 = vset.pattern.permute.xlu1 %v3407_v60  ;;  %v1735_v60 = vmul.f32 %v4301_v5, %v3694_v41  ;;  %v2088_v41 = vmul.f32 %v2082_v21, %v3692_v38  ;;  %v2041_v38 = vmul.f32 %v2038_v25, %v4297_v43 }
 0x672   : > { %2023 = vperm.xlu1 %3195, %v4255_v42   ;;  %v1814_v1 = vpop.permute.xlu1 %1813 }
 0x673   : > { %v1817_v24 = vmul.f32 %v1814_v1, %v4344_v8  ;;  %v2058_v42 = vpop.permute.xlu0 %2057 }
 0x675   : > { %v1819_v48 = vadd.f32 %v1817_v24, %v1805_v40  ;;  %v2064_v40 = vmul.f32 %v2058_v42, %v4310_v7  ;;  %v3198_v24 = vld [vmem:[%s3622_s28] sm:$0xff]  }
 0x676   : > { %2137 = vperm.xlu1 %3195, %v4260_v20   ;;  %v1946_v20 = vmul.f32 %v1940_v12, %v4310_v7  ;;  %2994 = vmatpush3.bf16.msra.mxu0 %v3198_v24  ;;  %v3199_v12 = vld [vmem:[%s3622_s28 + $0x8] sm:$0xff]  }
 0x677   : > { %v1915_v27 = vpop.permute.xlu1 %1914  ;;  %v1831_v22 = vadd.f32 %v1829_v47, %v1819_v48  ;;  %2995 = vmatprep.subr.bf16.mxu0 %v3392_v17 }
 0x678   : > { %v1922_v32 = vmul.f32 %v1915_v27, %v4323_v45  ;;  %v1956_v18 = vpop.permute.xlu0 %1955 }
 0x67a   : > { %1738 = vrot.lane.b32.xlu1 %v1734_v44, %s3399_s6  ;;  %2996 = vmatpush3.bf16.msra.mxu0 %v3199_v12 }
 0x67b   : > { %3001 = vmatprep.subr.bf16.mxu0 %v3392_v17 }
 0x67c   : > { %v1928_v23 = vpop.permute.xlu1 %1927 }
 0x67d   : > { %v1934_v53 = vmul.f32 %v1928_v23, %v4333_v26  ;;  %v4482_v62 = vpop.permute.xlu0 %1869 }
 0x67e   : > { %1740 = vrot.lane.b32.xlu1 %v1735_v60, %s3399_s6 }
 0x67f   : > { %v1936_v9 = vadd.f32 %v1934_v53, %v1922_v32  ;;  %v1959_v32 = vmul.f32 %v1956_v18, %v4327_v55 }
 0x680   : > { %v1932_v57 = vpop.permute.xlu1 %1931 }
 0x681   : > { %v1935_v59 = vmul.f32 %v1932_v57, %v4344_v8  ;;  %v1948_v10 = vadd.f32 %v1946_v20, %v1936_v9  ;;  %v4486_v37 = vpop.permute.xlu0 %1987 }
 0x682   : > { %1858 = vrot.lane.b32.xlu1 %v1853_v46, %s3399_s6 }
 0x683   : > { %v1937_v5 = vadd.f32 %v1935_v59, %v1923_v54 }
 0x685   : > { %v1822_v29 = vpop.permute.xlu1 %1821  ;;  %v4492_v21 = vpop.permute.xlu0 %2101 }
 0x686   : > { %v1828_v39 = vmul.f32 %v1822_v29, %v4310_v7  ;;  %1974 = vrot.lane.b32.xlu1 %v1970_v14, %s3399_s6 }
 0x688   : > { %v1830_v49 = vadd.f32 %v1828_v39, %v1818_v33 }
 0x68a   : > { %2092 = vrot.lane.b32.xlu1 %v2088_v41, %s3399_s6  ;;  %v2033_v58 = vpop.permute.xlu1 %2032  ;;  %v2000_v7 = vpop.permute.xlu0 %1999  ;;  %s3411_s6 = smov (!%p2937_p1), 64  }
 0x68b   : > { %v2040_v31 = vmul.f32 %v2033_v58, %v4323_v45 }
 0x68f   : > { %v2046_v6 = vpop.permute.xlu1 %2045  ;;  %v1890_v23 = vpop.permute.xlu0 %1889 }
 0x690   : > { %v2052_v19 = vmul.f32 %v2046_v6, %v4333_v26 }
 0x692   : > { %v2054_v1 = vadd.f32 %v2052_v19, %v2040_v31 }
 0x693   : > { %v2050_v47 = vpop.permute.xlu1 %2049 }
 0x694   : > { %v2053_v33 = vmul.f32 %v2050_v47, %v4344_v8  ;;  %v2066_v48 = vadd.f32 %v2064_v40, %v2054_v1  ;;  %v2118_v57 = vpop.permute.xlu0 %2117 }
 0x696   : > { %v2055_v27 = vadd.f32 %v2053_v33, %v2041_v38 }
 0x698   : > { %v1944_v44 = vpop.permute.xlu1 %1943 }
 0x699   : > { %v1947_v26 = vmul.f32 %v1944_v44, %v4362_v16  ;;  %v4505_v39 = vpop.permute.xlu0 %1905 }
 0x69b   : > { %v1949_v25 = vadd.f32 %v1947_v26, %v1937_v5 }
 0x69d   : > { %v1834_v60 = vpop.permute.xlu1 %1833  ;;  %v1961_v42 = vadd.f32 %v1959_v32, %v1949_v25 }
 0x69e   : > { %v1840_v8 = vmul.f32 %v1834_v60, %v4378_v0  ;;  %v2130_v58 = vpop.permute.xlu0 %2129 }
 0x6a0   : > { %v1842_v53 = vadd.f32 %v1840_v8, %v1830_v49 }
 0x6a1   : > { %v1838_v20 = vpop.permute.xlu1 %1837 }
 0x6a2   : > { %v1841_v9 = vmul.f32 %v1838_v20, %v4327_v55  ;;  %v1991_v20 = vmul.f32 %v4486_v37, %v4394_v11 }
 0x6a3   : > { %v4514_v40 = vpop.permute.xlu0 %2019 }
 0x6a4   : > { %v4502_v46 = vadd.f32 %v1841_v9, %v1831_v22 }
 0x6a6   : > { %v2062_v54 = vpop.permute.xlu1 %2061 }
 0x6a7   : > { %v2065_v59 = vmul.f32 %v2062_v54, %v4362_v16  ;;  %v2003_v54 = vmul.f32 %v2000_v7, %v4367_v52 }
 0x6a9   : > { %v2067_v14 = vadd.f32 %v2065_v59, %v2055_v27 }
 0x6ab   : > { %v1952_v29 = vpop.permute.xlu1 %1951 }
 0x6ac   : > { %v1958_v18 = vmul.f32 %v1952_v29, %v4378_v0 }
 0x6ae   : > { %v4508_v5 = vadd.f32 %v1958_v18, %v1948_v10  ;;  %v2142_v10 = vpop.permute.xlu0 %2141 }
 0x6af   : > { %v2070_v41 = vpop.permute.xlu1 %2069 }
 0x6b0   : > { %v2076_v49 = vmul.f32 %v2070_v41, %v4378_v0 }
 0x6b2   : > { %v4511_v31 = vadd.f32 %v2076_v49, %v2066_v48  ;;  %v2121_v49 = vmul.f32 %v2118_v57, %v4367_v52 }
 0x6b3   : > { %v2074_v22 = vpop.permute.xlu1 %2073 }
 0x6b4   : > { %v2077_v6 = vmul.f32 %v2074_v22, %v4327_v55  ;;  %v1896_v55 = vmul.f32 %v1890_v23, %v4414_v56 }
 0x6b6   : > { %v2079_v19 = vadd.f32 %v2077_v6, %v2067_v14  ;;  %v2133_v6 = vmul.f32 %v2130_v58, %v4422_v35 }
 0x6b8   : > { %v1866_v16 = vpop.permute.xlu1 %1865 }
 0x6b9   : > { %v1872_v1 = vmul.f32 %v1866_v16, %v4349_v2 }
 0x6bc   : > { %v1984_v24 = vpop.permute.xlu1 %1983 }
 0x6bd   : > { %v4518_v47 = vmul.f32 %v1984_v24, %v4349_v2 }
 0x6c1   : > { %v1878_v38 = vpop.permute.xlu1 %1877 }
 0x6c2   : > { %v1884_v0 = vmul.f32 %v1878_v38, %v4404_v61  ;;  %v1857_v33 = vpop.permute.xlu0 %1856 }
 0x6c3   : > { %v1862_v48 = vadd.f32 %v1857_v33, %v1842_v53 }
 0x6c5   : > { %v1874_v12 = vadd.f32 %v1872_v1, %v1862_v48  ;;  %v1882_v27 = vpop.permute.xlu1 %1881 }
 0x6c7   : > { %v1886_v44 = vadd.f32 %v1884_v0, %v1874_v12 }
 0x6c9   : > { %v1898_v26 = vadd.f32 %v1896_v55, %v1886_v44 }
 0x6ca   : > { %v2106_v32 = vpop.permute.xlu1 %2105 }
 0x6cb   : > { %v2109_v18 = vmul.f32 %v2106_v32, %v4394_v11 }
 0x6cf   : > { %v1996_v25 = vpop.permute.xlu1 %1995 }
 0x6d4   : > { %v1894_v60 = vpop.permute.xlu1 %1893 }
 0x6d5   : > { %v1977_v8 = vpop.permute.xlu0 %1976 }
 0x6d6   : > { %v1981_v9 = vadd.f32 %v1977_v8, %v1961_v42  ;;  %v2145_v42 = vmul.f32 %v2142_v10, %v4323_v45 }
 0x6d8   : > { %v1993_v59 = vadd.f32 %v1991_v20, %v1981_v9 }
 0x6d9   : > { %v2114_v14 = vpop.permute.xlu1 %2113 }
 0x6da   : > { %v2005_v29 = vadd.f32 %v2003_v54, %v1993_v59 }
 0x6dd   : > { %v2095_v53 = vpop.permute.xlu0 %2094 }
 0x6de   : > { %v2099_v41 = vadd.f32 %v2095_v53, %v2079_v19  ;;  %v2008_v23 = vpop.permute.xlu1 %2007 }
 0x6e0   : > { %v2111_v22 = vadd.f32 %v2109_v18, %v2099_v41 }
 0x6e2   : > { %v2123_v16 = vadd.f32 %v2121_v49, %v2111_v22  ;;  %v2012_v1 = vpop.permute.xlu1 %2011 }
 0x6e3   : > { %v2015_v37 = vmul.f32 %v2012_v1, %v4422_v35 }
 0x6e4   : > { %v2135_v7 = vadd.f32 %v2133_v6, %v2123_v16 }
 0x6e5   : > { %v2017_v24 = vadd.f32 %v2015_v37, %v2005_v29  ;;  %v1873_v29 = vmul.f32 %v4482_v62, %v4394_v11 }
 0x6e6   : > { %v2147_v38 = vadd.f32 %v2145_v42, %v2135_v7 }
 0x6e7   : > { %v1902_v0 = vpop.permute.xlu1 %1901 }
 0x6e8   : > { %v1908_v33 = vmul.f32 %v1902_v0, %v4297_v43 }
 0x6ea   : > { %v1910_v48 = vadd.f32 %v1908_v33, %v1898_v26 }
 0x6ec   : > { %v2126_v19 = vpop.permute.xlu1 %2125 }
 0x6f1   : > { %v2024_v12 = vpop.permute.xlu1 %2023 }
 0x6f2   : > { %v2027_v57 = vmul.f32 %v2024_v12, %v4323_v45 }
 0x6f4   : > { %v2029_v55 = vadd.f32 %v2027_v57, %v2017_v24 }
 0x6f5   : > { %v2138_v44 = vpop.permute.xlu1 %2137 }
 0x6f9   : > { %v1739_v58 = vpop.permute.xlu1 %1738 }
 0x6fa   : > { %v1744_v32 = vadd.f32 %v1739_v58, %v4388_v13 }
 0x6fc   : > { %v1756_v8 = vadd.f32 %v4354_v51, %v1744_v32  ;;  %v1885_v51 = vmul.f32 %v1882_v27, %v4367_v52 }
 0x6fd   : > { %v1741_v20 = vpop.permute.xlu1 %1740 }
 0x6fe   : > { %v1768_v10 = vadd.f32 %v4407_v15, %v1756_v8  ;;  %v1745_v9 = vadd.f32 %v1741_v20, %v4380_v28 }
 0x700   : > { %v1780_v54 = vadd.f32 %v4417_v63, %v1768_v10  ;;  %v1757_v26 = vadd.f32 %v4397_v34, %v1745_v9  ;;  %v1897_v34 = vmul.f32 %v1894_v60, %v4422_v35  ;;  %v2014_v35 = vmul.f32 %v2008_v23, %v4414_v56 }
 0x701   : > { %v1859_v59 = vpop.permute.xlu1 %1858 }
 0x702   : > { %v1792_v53 = vadd.f32 %v4385_v3, %v1780_v54  ;;  %v1769_v18 = vadd.f32 %v4372_v30, %v1757_v26  ;;  %v1863_v13 = vadd.f32 %v1859_v59, %v4502_v46  ;;  %v1909_v30 = vmul.f32 %v4505_v39, %v4323_v45 }
 0x703   : > { %v2002_v3 = vmul.f32 %v1996_v25, %v4404_v61  ;;  %v2120_v45 = vmul.f32 %v2114_v14, %v4404_v61 }
 0x704   : > { %v2148_v15 = vsel %vm1037_vm3, %v1792_v53, %v1910_v48  ;;  %v1781_v28 = vadd.f32 %v4425_v4, %v1769_v18  ;;  %v1875_v41 = vadd.f32 %v1873_v29, %v1863_v13  ;;  %v2108_v4 = vmul.f32 %v4492_v21, %v4349_v2  ;;  %v3200_v29 = vld [vmem:[%s3639_s30] sm:$0xff]   ;;  %v3201_v53 = vld [vmem:[%s3639_s30 + $0x8] sm:$0xff]  }
 0x705   : > { %v1975_v63 = vpop.permute.xlu1 %1974  ;;  %v2132_v21 = vmul.f32 %v2126_v19, %v4414_v56  ;;  %v2918_v56 = vld [vmem:[%s4849_s16] ss:$0 sm:$0xff]  ;;  %v3255_v19 = vld [vmem:[#allocation2 + $0x8] sm:$0xff] }
 0x706   : > { %v1793_v49 = vadd.f32 %v4430_v36, %v1781_v28  ;;  %v1887_v22 = vadd.f32 %v1885_v51, %v1875_v41  ;;  %v1980_v11 = vadd.f32 %v1975_v63, %v4508_v5  ;;  %v2026_v5 = vmul.f32 %v4514_v40, %v4297_v43 }
 0x708   : > { %v1899_v62 = vadd.f32 %v1897_v34, %v1887_v22  ;;  %v1992_v52 = vadd.f32 %v4518_v47, %v1980_v11  ;;  %v2922_v34 = vld [vmem:[%s4854_s2] ss:$0 sm:$0xff] }
 0x709   : > { %v2093_v46 = vpop.permute.xlu1 %2092 }
 0x70a   : > { %v1911_v27 = vadd.f32 %v1909_v30, %v1899_v62  ;;  %v2004_v36 = vadd.f32 %v2002_v3, %v1992_v52  ;;  %v2098_v60 = vadd.f32 %v2093_v46, %v4511_v31  ;;  %v2144_v31 = vmul.f32 %v2138_v44, %v4297_v43  ;;  %v2923_v3 = vld [vmem:[%s4855_s14] ss:$0 sm:$0xff] }
 0x70c   : > { %v2149_v39 = vsel %vm1037_vm3, %v1793_v49, %v1911_v27  ;;  %v2016_v47 = vadd.f32 %v2014_v35, %v2004_v36  ;;  %v2110_v25 = vadd.f32 %v2108_v4, %v2098_v60  ;;  %vm4848_vm3 = vmmov 0   ;;  %v3202_v35 = vld [vmem:[%s3649_s24] sm:$0xff]   ;;  %v3203_v27 = vld [vmem:[%s3649_s24 + $0x8] sm:$0xff]   ;;  %v3204_v36 = vld [vmem:[%s3649_s24 + $0x10] sm:$0xff]  }
 0x70d   : > { %v2152_v2 = vsel %vm2150_vm13, %v2149_v39, %v2029_v55  ;;  %3010 = vmatpush3.bf16.msra.mxu1 %v3202_v35  ;;  %v3205_v60 = vld [vmem:[%s3649_s24 + $0x18] sm:$0xff]   ;;  %v3208_v39 = vld [vmem:[%s3649_s24 + $0x30] sm:$0xff]  }
 0x70e   : > { %v2028_v23 = vadd.f32 %v2026_v5, %v2016_v47  ;;  %v2122_v6 = vadd.f32 %v2120_v45, %v2110_v25  ;;  %v2155_v16 = vsel %vm2153_vm14, %v2152_v2, %v2147_v38  ;;  %v3254_v38 = vld [vmem:[#allocation2] sm:$0xff]  ;;  %3011 = vmatprep.subr.bf16.mxu1 %v3392_v17  ;;  %v3207_v45 = vld [vmem:[%s3649_s24 + $0x28] sm:$0xff]   ;;  %v3209_v47 = vld [vmem:[%s3649_s24 + $0x38] sm:$0xff]  }
 0x70f   : > { %v3206_v5 = vld [vmem:[%s3649_s24 + $0x20] sm:$0xff]  }
 0x710   : > { %v2151_v1 = vsel %vm2150_vm13, %v2148_v15, %v2028_v23  ;;  %v2134_v40 = vadd.f32 %v2132_v21, %v2122_v6  ;;  %v2924_v25 = vld [vmem:[%s797_s5] ss:$0 sm:$0xff]  ;;  %vm4864_vm13 = vmmov (!%p2937_p1), %vm4862_vm6 }
 0x711   : > { %3012 = vmatpush3.bf16.msra.mxu1 %v3203_v27 }
 0x712   : > { %v2146_v37 = vadd.f32 %v2144_v31, %v2134_v40  ;;  %3013 = vmatprep.subr.bf16.mxu1 %v3392_v17 }
 0x714   : > { %v2154_v42 = vsel %vm2153_vm14, %v2151_v1, %v2146_v37  ;;  %vm2545_vm14 = vcmask (!%p2937_p1), 785408  }
 0x715   : > { %v2156_v61 = vpack.c.bf16 %v2155_v16, %v2154_v42  ;;  %3014 = vmatpush3.bf16.msra.mxu1 %v3204_v36 }
 0x716   : > { %3015 = vmatprep.subr.bf16.mxu1 %v3392_v17 }
 0x717   : > { %2998 = vmatmul.mubr.msk.bf16.vlgmr.msra.gmra.mrb[4].mxu0 %vm4847_vm15, %v2156_v61 }
 0x718   : > { %3005 = vmatprep.mubr.msk.bf16.mxu0 %vm4848_vm3, %v3392_v17  ;;  %3002 = vmatpush3.bf16.msra.mxu0 %v3200_v29 }
 0x719   : > { %3003 = vmatprep.subr.bf16.mxu0 %v3392_v17  ;;  %3016 = vmatpush3.bf16.msra.mxu1 %v3205_v60 }
 0x71a   : > { %3017 = vmatprep.subr.bf16.mxu1 %v3392_v17 }
 0x71c   : > { %3004 = vmatpush3.bf16.msra.mxu0 %v3201_v53 }
 0x71d   : > { %3018 = vmatpush3.bf16.msra.mxu1 %v3206_v5 }
 0x71e   : > { %3019 = vmatprep.subr.bf16.mxu1 %v3392_v17 }
 0x721   : > { %3020 = vmatpush3.bf16.msra.mxu1 %v3207_v45 }
 0x722   : > { %3021 = vmatprep.subr.bf16.mxu1 %v3392_v17 }
 0x725   : > { %3022 = vmatpush3.bf16.msra.mxu1 %v3208_v39 }
 0x726   : > { %3023 = vmatprep.subr.bf16.mxu1 %v3392_v17 }
 0x729   : > { %3024 = vmatpush3.bf16.msra.mxu1 %v3209_v47 }
 0x7ea   : > { %v2217_v14 = vpop.f32.mrb[4].mxu0 }
 0x7eb   : > { %v2218_v7 = vadd.f32 %v2918_v56, %v2217_v14  ;;  %v2999_v24 = vpop.f32.mrb[5].mxu0 }
 0x7ec   : > { %v2220_v43 = vpop.f32.mrb[6].mxu0 }
 0x7ed   : > { %v4573_v0 = vadd.f32 %v3254_v38, %v2218_v7  ;;  %v2221_v33 = vadd.f32 %v2918_v56, %v2220_v43  ;;  %v3000_v48 = vpop.f32.mrb[7].mxu0 }
 0x7ef   : > { %v4575_v12 = vadd.f32 %v3255_v19, %v2221_v33  ;;  %v2228_v57 = vsel %vm4850_vm0, %v4573_v0, 0.0 }
 0x7f0   : > { %2229 = vadd.xlane.f32.xlu1 %v2228_v57 }
 0x7f1   : > { %v2231_v55 = vsel %vm4851_vm11, %v4575_v12, 0.0 }
 0x7f2   : > { %2232 = vadd.xlane.f32.xlu0 %v2231_v55 }
 0x87d   : > { %v2230_v44 = vpop.xlane.xlu1 %2229 }
 0x87e   : > { %v2234_v58 = vmul.f32 0.03125, %v2230_v44 }
 0x87f   : > { %v2233_v32 = vpop.xlane.xlu0 %2232 }
 0x880   : > { %v2236_v8 = vsub.f32 %v4573_v0, %v2234_v58  ;;  %v2235_v20 = vmul.f32 0.03125, %v2233_v32  ;;  %v2928_v32 = vld [vmem:[%s805_s26] ss:$0 sm:$0xff] }
 0x882   : > { %v2237_v10 = vsub.f32 %v4575_v12, %v2235_v20  ;;  %v2238_v9 = vmul.f32 %v2236_v8, %v2236_v8 }
 0x884   : > { %v2240_v54 = vsel %vm4852_vm10, %v2238_v9, 0.0  ;;  %v2239_v26 = vmul.f32 %v2237_v10, %v2237_v10 }
 0x885   : > { %2241 = vadd.xlane.f32.xlu0 %v2240_v54 }
 0x886   : > { %v2243_v59 = vsel %vm4853_vm1, %v2239_v26, 0.0 }
 0x887   : > { %2244 = vadd.xlane.f32.xlu1 %v2243_v59 }
 0x912   : > { %v2242_v18 = vpop.xlane.xlu0 %2241 }
 0x913   : > { %v2246_v13 = vmul.f32 0.03125, %v2242_v18 }
 0x914   : > { %v2245_v51 = vpop.xlane.xlu1 %2244 }
 0x915   : > { %v2248_v15 = vadd.f32 1e-05, %v2246_v13  ;;  %v2247_v28 = vmul.f32 0.03125, %v2245_v51  ;;  %v3257_v13 = vld [vmem:[%s4863_s18 + $0x8] sm:$0xff] (!%p2937_p1)   ;;  %v3258_v51 = vld [vmem:[%s4863_s18 + $0x10] sm:$0xff] (!%p2937_p1)  }
 0x917   : > { %3246 = vrsqrt.f32 %v2248_v15  ;;  %v2249_v41 = vadd.f32 1e-05, %v2247_v28  ;;  %v3259_v15 = vld [vmem:[%s4863_s18 + $0x18] sm:$0xff] (!%p2937_p1)   ;;  %v3260_v28 = vld [vmem:[%s4863_s18 + $0x20] sm:$0xff] (!%p2937_p1)  }
 0x919   : > { %3248 = vrsqrt.f32 %v2249_v41  ;;  %v3261_v41 = vld [vmem:[%s4863_s18 + $0x28] sm:$0xff] (!%p2937_p1)  }
 0x921   : > { %v3247_v63 = vpop.eup %3246 }
 0x922   : > { %v2252_v49 = vmul.f32 %v3247_v63, %v2236_v8 }
 0x923   : > { %v3249_v22 = vpop.eup %3248 }
 0x924   : > { %v2260_v11 = vmul.f32 %v2922_v34, %v2252_v49  ;;  %v2253_v30 = vmul.f32 %v3249_v22, %v2237_v10 }
 0x926   : > { %v2261_v62 = vmul.f32 %v2922_v34, %v2253_v30  ;;  %v2268_v52 = vadd.f32 %v2923_v3, %v2260_v11 }
 0x928   : > { %v2269_v4 = vadd.f32 %v2923_v3, %v2261_v62 }
 0x92a   : > { %v2270_v46 = vpack.c.bf16 %v2269_v4, %v2268_v52 }
 0x92c   : > { %3006 = vmatmul.mubr.msk.bf16.vlgmr.msra.gmra.mrb[8].mxu0 %vm4856_vm2, %v2270_v46 }
 0x9ff   : > { %v2331_v2 = vpop.f32.mrb[8].mxu0 }
 0xa00   : > { %v2332_v21 = vadd.f32 %v2924_v25, %v2331_v2  ;;  %v3007_v23 = vpop.f32.mrb[9].mxu0  ;;  %v2945_v2 = vld [vmem:[%s4865_s25] ss:$0 sm:$0xff] (!%p2937_p1) }
 0xa01   : > { %v2334_v6 = vpop.f32.mrb[10].mxu0  ;;  %v2946_v23 = vld [vmem:[%s4866_s17] ss:$0 sm:$0xff] (!%p2937_p1) }
 0xa02   : > { %v2338_v16 = vmul.f32 %v2332_v21, %v2332_v21  ;;  %v2335_v31 = vadd.f32 %v2924_v25, %v2334_v6  ;;  %v3008_v1 = vpop.f32.mrb[11].mxu0 }
 0xa04   : > { %v2340_v40 = vmul.f32 %v2338_v16, %v2332_v21  ;;  %v2339_v37 = vmul.f32 %v2335_v31, %v2335_v31 }
 0xa06   : > { %v2342_v42 = vmul.f32 0.044715, %v2340_v40  ;;  %v2341_v61 = vmul.f32 %v2339_v37, %v2335_v31 }
 0xa08   : > { %v2344_v56 = vadd.f32 %v2342_v42, %v2332_v21  ;;  %v2343_v14 = vmul.f32 0.044715, %v2341_v61 }
 0xa0a   : > { %v2346_v17 = vmul.f32 0.7978846, %v2344_v56  ;;  %v2345_v7 = vadd.f32 %v2343_v14, %v2335_v31 }
 0xa0c   : > { %3250 = vtanh.f32 %v2346_v17  ;;  %v2347_v24 = vmul.f32 0.7978846, %v2345_v7 }
 0xa0e   : > { %3252 = vtanh.f32 %v2347_v24 }
 0xa16   : > { %v3251_v43 = vpop.eup %3250 }
 0xa17   : > { %v2350_v38 = vadd.f32 1.0, %v3251_v43 }
 0xa18   : > { %v3253_v33 = vpop.eup %3252 }
 0xa19   : > { %v2351_v48 = vadd.f32 1.0, %v3253_v33  ;;  %v2352_v19 = vmul.f32 0.5, %v2350_v38 }
 0xa1b   : > { %v2353_v57 = vmul.f32 0.5, %v2351_v48  ;;  %v2354_v55 = vmul.f32 %v2352_v19, %v2332_v21 }
 0xa1d   : > { %v2355_v44 = vmul.f32 %v2353_v57, %v2335_v31 }
 0xa1f   : > { %v2356_v58 = vpack.c.bf16 %v2355_v44, %v2354_v55 }
 0xa21   : > { %3026 = vmatmul.mubr.bf16.vlgmr.msra.gmra.mrb[0].mxu1 %v2356_v58 }
 0xaf4   : > { %v2462_v8 = vpop.f32.mrb[0].mxu1 }
 0xaf5   : > { %v2463_v20 = vadd.f32 %v2928_v32, %v2462_v8  ;;  %v3027_v10 = vpop.f32.mrb[1].mxu1  ;;  %2476 = sbr.rel (%p2937_p1) target bundleno = 3467 (0xd8b), region = 96 }
 0xaf6   : > { %v2465_v9 = vpop.f32.mrb[2].mxu1 }
 0xaf7   : > { %v2469_v54 = vadd.f32 %v2463_v20, %v4573_v0  ;;  %v2466_v26 = vadd.f32 %v2928_v32, %v2465_v9  ;;  %v3028_v59 = vpop.f32.mrb[3].mxu1  ;;  %v3410_v0 = vmov (!%p2937_p1), 0.0  }
 0xaf8   : > { %3029 = vmatprep.subr.bf16.mxu0 (!%p2937_p1), %v3410_v0  ;;  %3041 = vmatprep.mubr.msk.bf16.mxu0 (!%p2937_p1), %vm3412_vm7, %v3410_v0 }
 0xaf9   : > { %2471 = vst.msk [vmem:[#allocation2] sm:$0xff] %vm4858_vm4, %v2469_v54  ;;  %v2470_v29 = vadd.f32 %v2466_v26, %v4575_v12  ;;  %v3256_v12 = vld [vmem:[%s4863_s18] sm:$0xff] (!%p2937_p1)  }
 0xafa   : > { %2477 = vst.msk [vmem:[%s3657_s3] sm:$0xff] (!%p2937_p1), %vm4861_vm8, %v2469_v54  ;;  %3030 = vmatpush3.bf16.msra.mxu0 (!%p2937_p1), %v3256_v12 }
 0xafb   : > { %2472 = vst.msk [vmem:[#allocation2 + $0x8] sm:$0xff] %vm4859_vm5, %v2470_v29  ;;  %3031 = vmatprep.subr.bf16.mxu0 (!%p2937_p1), %v3410_v0 }
 0xafc   : > { %2478 = vst.msk [vmem:[%s3657_s3 + $0x8] sm:$0xff] %vm4862_vm6, %v2470_v29 }
 0xafe   : > { %3032 = vmatpush3.bf16.msra.mxu0 %v3257_v13 }
 0xaff   : > { %3033 = vmatprep.subr.bf16.mxu0 %v3410_v0 }
 0xb02   : > { %v2479_v53 = vld [vmem:[#allocation2] ss:$2 sm:$0xff]  ;;  %v2481_v18 = vld [vmem:[#allocation2 + $0x1] ss:$2 sm:$0xff]  ;;  %3034 = vmatpush3.bf16.msra.mxu0 %v3258_v51 }
 0xb03   : > { %2486 = vrot.lane.b32.xlu0 %v2479_v53, %s3409_s29  ;;  %3035 = vmatprep.subr.bf16.mxu0 %v3410_v0  ;;  %v2482_v63 = vrot.slane %v2481_v18, 7 }
 0xb05   : > { %v2484_v49 = vsel %vm2483_vm9, 0.0, %v2482_v63 }
 0xb06   : > { %3036 = vmatpush3.bf16.msra.mxu0 %v3259_v15 }
 0xb07   : > { %2490 = vrot.lane.b32.xlu0 %v2481_v18, %s3411_s6  ;;  %3037 = vmatprep.subr.bf16.mxu0 %v3410_v0 }
 0xb0a   : > { %3038 = vmatpush3.bf16.msra.mxu0 %v3260_v28 }
 0xb0b   : > { %3039 = vmatprep.subr.bf16.mxu0 %v3410_v0 }
 0xb0e   : > { %3040 = vmatpush3.bf16.msra.mxu0 %v3261_v41 }
 0xb75   : > { %v2487_v34 = vpop.permute.xlu0 %2486 }
 0xb76   : > { %v2493_v22 = vsel %vm4864_vm13, %v2484_v49, %v2487_v34 }
 0xb79   : > { %v2491_v11 = vpop.permute.xlu0 %2490 }
 0xb7a   : > { %v2495_v30 = vsel %vm2494_vm12, %v2493_v22, %v2491_v11 }
 0xb7b   : > { %v2496_v3 = vpack.c.bf16 %v2495_v30, %v2495_v30 }
 0xb7d   : > { %3042 = vmatmul.mubr.msk.bf16.vlgmr.msra.gmra.mrb[0].mxu0 %vm2545_vm14, %v2496_v3 }
 0xc50   : > { %v2583_v62 = vpop.f32.mrb[0].mxu0 }
 0xc51   : > { %v3043_v52 = vpop.f32.mrb[1].mxu0  ;;  %v2591_v4 = vsel %vm2494_vm12, %v2583_v62, 0.0 }
 0xc52   : > { %2592 = vadd.xlane.f32.xlu1 %v2591_v4  ;;  %v2586_v46 = vpop.f32.mrb[2].mxu0 }
 0xc53   : > { %v3044_v35 = vpop.f32.mrb[3].mxu0 }
 0xcdf   : > { %v2593_v27 = vpop.xlane.xlu1 %2592 }
 0xce0   : > { %v2595_v50 = vmul.f32 0.015625, %v2593_v27 }
 0xce2   : > { %v2596_v36 = vsub.f32 %v2583_v62, %v2595_v50 }
 0xce4   : > { %v2597_v60 = vmul.f32 %v2596_v36, %v2596_v36 }
 0xce6   : > { %v2598_v5 = vsel %vm2494_vm12, %v2597_v60, 0.0 }
 0xce7   : > { %2599 = vadd.xlane.f32.xlu1 %v2598_v5 }
 0xd74   : > { %v2600_v45 = vpop.xlane.xlu1 %2599 }
 0xd75   : > { %v2601_v39 = vmul.f32 0.015625, %v2600_v45 }
 0xd77   : > { %v2602_v47 = vadd.f32 1e-05, %v2601_v39 }
 0xd79   : > { %3262 = vrsqrt.f32 %v2602_v47 }
 0xd83   : > { %v3263_v25 = vpop.eup %3262 }
 0xd84   : > { %v2604_v21 = vmul.f32 %v3263_v25, %v2596_v36 }
 0xd86   : > { %v2611_v6 = vmul.f32 %v2945_v2, %v2604_v21 }
 0xd88   : > { %v2618_v16 = vadd.f32 %v2946_v23, %v2611_v6 }
 0xd8a   : > { %2619 = vst.msk [vmem:[%s3655_s20] sm:$0xff] %vm2494_vm12, %v2618_v16 }
 0xd8b PF: > { %s4867_s1 = sld [smem:[#allocation13_spill]]  ;;  %s4868_s29 = sld [smem:[#allocation22_spill]] }
 0xd8c   : > { %s4870_s6 = sld [smem:[#allocation33_spill]]  ;;  %s2639_s28 = sshll.u32 %s3655_s20, 4  ;;  %s2640_s28 = int_to_ptr.vmem [resolvable:$true] %s2639_s28 }
 0xd8d   : > { %s3264_s27 = scalar_lea.vmem %s2640_s28, 128  ;;  %s3413_s19 = smov [#allocation3]  }
 0xd8e   : > { %p3265_p2 = scmp.ne.s32.totalorder %s2640_s28, %s3264_s27  ;;  %s3268_s2 = sshll.u32 %s3413_s19, 4  ;;  %s3269_s2 = int_to_ptr.vmem [resolvable:$false] %s3268_s2 }
 0xd8f   : > { %s3270_s30 = scalar_lea.vmem %s3269_s2, 256  ;;  %p3271_p6 = scmp.lt.s32.totalorder %s2640_s28, %s3269_s2 }
 0xd90   : > { %p3266_p4 = pnand %p3265_p2, %p3561_p3  ;;  %p3272_p7 = scmp.lt.s32.totalorder %s3270_s30, %s3264_s27 }
 0xd91   : > { %s2949_s23 = sshll.u32 %s4867_s1, 7  ;;  %s2621_s16 = scalar_lea.sflag [#allocation4], %s4868_s29 }
 0xd92   : > { %s4668_s13 = scalar_lea.hbm %s4870_s6, %s2949_s23  ;;  %p3267_p5 = pneg %p3266_p4 }
 0xd93   : > { %p3273_p8 = por %p3272_p7, %p3271_p6 }
 0xd95   : > { %p3274_p10 = pnand %p3273_p8, %p3267_p5 }
 0xd97   : > { %3277 = shalt.err (!%p3274_p10)
}
 0xd98   : > { %s3278_s20 = scalar_lea.hbm %s4668_s13, 128  ;;  %s3282_s15 = scalar_lea.hbm %s4870_s6, 256 }
 0xd99   : > { %p3279_p11 = scmp.ne.s32.totalorder %s4668_s13, %s3278_s20  ;;  %p3283_p0 = scmp.lt.u32.totalorder %s4668_s13, %s4870_s6 }
 0xd9a   : > { %p3284_p1 = scmp.lt.u32.totalorder %s3282_s15, %s3278_s20  ;;  %p3286_p4 = scmp.lt.u32.totalorder %s3278_s20, %s4668_s13 }
 0xd9b   : > { %p3280_p12 = pnand %p3279_p11, %p3561_p3 }
 0xd9c   : > { %p3285_p2 = por %p3284_p1, %p3283_p0 }
 0xd9d   : > { %p3281_p13 = pneg %p3280_p12 }
 0xd9e   : > { %p3287_p5 = por %p3286_p4, %p3285_p2 }
 0xda0   : > { %p3288_p6 = pnand %p3287_p5, %p3281_p13 }
 0xda2   : > { %3291 = shalt.err (!%p3288_p6)
}
 0xda3   : > { %3045 = dma.vmem_to_hbm [thread:$0]  (%p3561_p3), %s2640_s28, 128, %s4668_s13, %s2621_s16  }
 0xda4   : > { %s2959_s24 = sshll.u32 %s4867_s1, 8  ;;  %s2652_s17 = sshll.u32 %s3657_s3, 4  ;;  %s4696_s17 = int_to_ptr.vmem [resolvable:$true] %s2652_s17 }
 0xda5   : > { %s4871_s21 = sld [smem:[#allocation34_spill]]  ;;  %s2626_s19 = scalar_lea.sflag [#allocation6], %s4868_s29 }
 0xda6   : > { %s3292_s2 = scalar_lea.vmem %s4696_s17, 256  ;;  %s3414_s30 = smov [#allocation5]  }
 0xda7   : > { %p3293_p7 = scmp.ne.s32.totalorder %s4696_s17, %s3292_s2  ;;  %s3296_s13 = sshll.u32 %s3414_s30, 4  ;;  %s3297_s13 = int_to_ptr.vmem [resolvable:$false] %s3296_s13 }
 0xda8   : > { %s3298_s3 = scalar_lea.vmem %s3297_s13, 512  ;;  %p3299_p11 = scmp.lt.s32.totalorder %s4696_s17, %s3297_s13 }
 0xda9   : > { %p3294_p8 = pnand %p3293_p7, %p3561_p3  ;;  %p3300_p12 = scmp.lt.s32.totalorder %s3298_s3, %s3292_s2 }
 0xdab   : > { %s4694_s27 = scalar_lea.hbm %s4871_s21, %s2959_s24  ;;  %p3295_p10 = pneg %p3294_p8 }
 0xdac   : > { %p3301_p13 = por %p3300_p12, %p3299_p11 }
 0xdae   : > { %p3302_p0 = pnand %p3301_p13, %p3295_p10 }
 0xdb0   : > { %3305 = shalt.err (!%p3302_p0)
}
 0xdb1   : > { %s3306_s1 = scalar_lea.hbm %s4694_s27, 256  ;;  %s3310_s20 = scalar_lea.hbm %s4871_s21, 512 }
 0xdb2   : > { %p3307_p1 = scmp.ne.s32.totalorder %s4694_s27, %s3306_s1  ;;  %p3311_p5 = scmp.lt.u32.totalorder %s4694_s27, %s4871_s21 }
 0xdb3   : > { %p3312_p6 = scmp.lt.u32.totalorder %s3310_s20, %s3306_s1  ;;  %p3314_p8 = scmp.lt.u32.totalorder %s3306_s1, %s4694_s27 }
 0xdb4   : > { %p3308_p2 = pnand %p3307_p1, %p3561_p3 }
 0xdb5   : > { %p3313_p7 = por %p3312_p6, %p3311_p5 }
 0xdb6   : > { %p3309_p4 = pneg %p3308_p2 }
 0xdb7   : > { %p3315_p10 = por %p3314_p8, %p3313_p7 }
 0xdb9   : > { %p3316_p11 = pnand %p3315_p10, %p3309_p4 }
 0xdbb   : > { %3319 = shalt.err (!%p3316_p11)
}
 0xdbc   : > { %s3415_s15 = smov 128   ;;  %s3416_s25 = smov 8  }
 0xdbd   : > { %3046 = dma.vmem_to_hbm [thread:$0]  (%p3561_p3), %s4696_s17, 256, %s4694_s27, %s2626_s19, %s3415_s15, %s3415_s15, %s3416_s25  }
 0xdbe PF: > { %s4872_s5 = sld [smem:[#allocation16_spill]]  ;;  %s4873_s24 = sld [smem:[#allocation9_spill]] }
 0xdc4   : > { %p3056_p12 = scmp.ge.s32.totalorder %s4872_s5, 2  ;;  %s2667_s22 = sand.u32 1, %s4873_s24  }
 0xdc5   : > { %s2668_s2 = scalar_lea.sflag [#allocation4], %s2667_s22 }
 0xdc6   : > { %p3050_p13 = pnand %p3056_p12, %p3571_p9 }
 0xdc8   : > { %3353 = dma.done.wait (!%p3050_p13), %s2668_s2, 128  }
 0xdc9   : > { %3355 = vsyncadd (!%p3050_p13), %s2668_s2, 4294967168  ;;  %s2677_s30 = scalar_lea.sflag [#allocation6], %s2667_s22 }
 0xdca   : > { %3357 = dma.done.wait (!%p3050_p13), %s2677_s30, 256  }
 0xdcb   : > { %3359 = vsyncadd (!%p3050_p13), %s2677_s30, 4294967040  ;;  %s35_s20 = sadd.s32 1, %s4872_s5   ;;  %s4875_s27 = sld [smem:[#allocation10_spill]] }
 0xdcc   : > { %p32_p0 = scmp.ge.s32.totalorder %s35_s20, 6   ;;  %s4876_s28 = sld [smem:[#allocation11_spill]] }
 0xdcd   : > { %s4877_s29 = sld [smem:[#allocation21_spill]]  ;;  %s4878_s30 = sld [smem:[#allocation14_spill]] }
 0xdce   : > { %s4879_s0 = sld [smem:[#allocation15_spill]]  ;;  %s4880_s19 = sld [smem:[#allocation17_spill]] }
 0xdcf   : > { %s4881_s1 = sld [smem:[#allocation19_spill]]  ;;  %34 = sbr.rel (!%p32_p0) target bundleno = 20 (0x14), region = 188 }
 0xdd6   :  { %2682 = vsyncpa [#allocation4], 1 }
 0xdd7   :  { %2684 = vsyncpa [#allocation4 + $0x1], 1 }
 0xdd8   :  { %2685 = vsyncpa [#allocation6], 1 }
 0xdd9   :  { %2687 = vsyncpa [#allocation6 + $0x1], 1 }

</bundles_post_ra>
